<compile_context>
chip_gen: v6e
topology: v6e:2x2x1
jax: 0.10.0
libtpu: 0.0.40
codegen_flags: <defaults>
</compile_context>

<pallas_src>
import jax
import jax.numpy as jnp
from jax.experimental import pallas as pl
from jax.experimental.pallas import tpu as pltpu

start_T = 5
time_step = 4          # number of simulated SNN time steps used by forward()
KT = 2                 # K tiles over fc1's input dimension (pipeline depth)

DECAY = 0.5
VTH = 1.0


# ----------------------------- fused Pallas kernel --------------------------

def _fused_snn_kernel(s_ref, w1_ref, b1_ref, w2_ref, b2_ref, w3_ref, b3_ref,
                      out_ref, i1_scr):
    """Fused NMNIST_FC forward, K-tiled over fc1's input dimension.

    s_ref  : [T*Bp, Ktile] bf16  flattened input spikes (time-major), K tile k
    w1_ref : [Ktile, D1]   bf16  fc1 weight K tile k
    w2_ref : [D1, D2] bf16, w3_ref : [D2, D3p] bf16   resident weights
    b*_ref : [1, D]   f32   biases
    out_ref: [Bp, D3p] f32  rate readout (mean of layer-3 spikes over T)
    i1_scr : [T*Bp, D1] f32 scratch accumulator for fc1 output (all T steps)

    Per layer & time step: I = s @ W + b ;
    mem = cur if prev_spike else mem*DECAY + cur ; spike = (mem > VTH).
    """
    k = pl.program_id(0)
    last_k = pl.num_programs(0) - 1

    # Layer-1 fc, batched over all T time steps (M = T*Bp), partial over K.
    part = jnp.dot(s_ref[...], w1_ref[...], preferred_element_type=jnp.float32)

    @pl.when(k == 0)
    def _():
        i1_scr[...] = part + b1_ref[...]

    @pl.when(k != 0)
    def _():
        i1_scr[...] += part

    @pl.when(k == last_k)
    def _():
        TBp, D1 = i1_scr.shape
        Bp = TBp // time_step
        D2 = w2_ref.shape[1]
        D3 = w3_ref.shape[1]

        # Hoisted bias broadcasts (JAX does not CSE broadcast_in_dim per iter).
        b2b = jnp.broadcast_to(b2_ref[...], (Bp, D2))
        b3b = jnp.broadcast_to(b3_ref[...], (Bp, D3))

        # LIF state: f32 membranes, bool spike masks.
        mem1 = jnp.zeros((Bp, D1), jnp.float32)
        spk1 = jnp.zeros((Bp, D1), jnp.bool_)
        mem2 = jnp.zeros((Bp, D2), jnp.float32)
        spk2 = jnp.zeros((Bp, D2), jnp.bool_)
        mem3 = jnp.zeros((Bp, D3), jnp.float32)
        spk3 = jnp.zeros((Bp, D3), jnp.bool_)
        acc = jnp.zeros((Bp, D3), jnp.float32)

        # T is a small static constant -> full unroll; LLO interleaves the
        # small MXU matmuls with the VPU membrane updates.
        for t in range(time_step):
            cur1 = i1_scr[t * Bp:(t + 1) * Bp, :]       # static aligned slice
            mem1 = jnp.where(spk1, cur1, mem1 * DECAY + cur1)
            spk1 = mem1 > VTH

            cur2 = jnp.dot(spk1.astype(jnp.bfloat16), w2_ref[...],
                           preferred_element_type=jnp.float32) + b2b
            mem2 = jnp.where(spk2, cur2, mem2 * DECAY + cur2)
            spk2 = mem2 > VTH

            cur3 = jnp.dot(spk2.astype(jnp.bfloat16), w3_ref[...],
                           preferred_element_type=jnp.float32) + b3b
            mem3 = jnp.where(spk3, cur3, mem3 * DECAY + cur3)
            spk3 = mem3 > VTH

            acc = acc + spk3.astype(jnp.float32)

        # BoundLast folded in: rate readout = mean over time of L3 spikes.
        out_ref[...] = acc * (1.0 / time_step)


# ------------------------------ glue / params -------------------------------

def _round_up(n, m):
    return (n + m - 1) // m * m


def _pad_to(x, shape):
    return jnp.pad(x, [(0, s - d) for d, s in zip(x.shape, shape)])


D0 = 2 * 34 * 34                         # 2312
D0P = _round_up(D0, KT * 128)            # 2560: K tiles stay 128-lane aligned
D3P = _round_up(10, 128)                 # 128


def init_params(key):
    """Deterministic params matching nn.Linear shapes of the module
    (fc1: 2*34*34 -> 512, fc2: 512 -> 256, fc3: 256 -> 10), pre-padded to TPU
    tiles and pre-cast to bf16 ONCE here (not per forward call).  Padded
    weight rows/cols and biases are zero, so padded feature lanes never spike.
    """
    def linear(k, din, dout, din_p, dout_p):
        kw, kb = jax.random.split(k)
        bound = din ** -0.5
        w = jax.random.uniform(kw, (din, dout), jnp.float32, -bound, bound)
        b = jax.random.uniform(kb, (1, dout), jnp.float32, -bound, bound)
        wp = _pad_to(w, (din_p, dout_p)).astype(jnp.bfloat16)
        bp = _pad_to(b, (1, dout_p)).astype(jnp.float32)
        return wp, bp

    k1, k2, k3 = jax.random.split(key, 3)
    return (linear(k1, D0, 512, D0P, 512),
            linear(k2, 512, 256, 512, 256),
            linear(k3, 256, 10, 256, D3P))


def nmnist_fc_forward(x_, params):
    """Forward pass of NMNIST_FC.  x_: [B, T_total, 2, 34, 34] -> logits [B, 10]."""
    (w1p, b1p), (w2p, b2p), (w3p, b3p) = params   # pre-padded, bf16/f32

    # x_.permute(1,0,2,3,4)[start_T:start_T+time_step].float()
    x = jnp.transpose(x_, (1, 0, 2, 3, 4))
    x = x[start_T:start_T + time_step].astype(jnp.float32)
    T, B = x.shape[0], x.shape[1]

    # BoundFlatten
    s = x.reshape(T, B, -1)

    # Pad to TPU tiles.  Padded feature lanes carry zero weights/spikes and
    # never fire; padded BATCH rows can fire (they see the biases) but are
    # sliced off below -- do not reduce over the batch axis of the raw output.
    Bp = _round_up(max(B, 8), 8)
    s = _pad_to(s, (T, Bp, D0P)).astype(jnp.bfloat16).reshape(T * Bp, D0P)

    TBp = T * Bp
    D1 = w1p.shape[1]
    D2 = w2p.shape[1]
    D3p = w3p.shape[1]
    k_tile = D0P // KT

    grid_spec = pltpu.PrefetchScalarGridSpec(
        num_scalar_prefetch=0,
        grid=(KT,),
        in_specs=[
            pl.BlockSpec((TBp, k_tile), lambda k: (0, k)),     # spikes, K tile
            pl.BlockSpec((k_tile, D1), lambda k: (k, 0)),      # w1, K tile
            pl.BlockSpec((1, D1), lambda k: (0, 0)),           # b1 (resident)
            pl.BlockSpec((D1, D2), lambda k: (0, 0)),          # w2 (resident)
            pl.BlockSpec((1, D2), lambda k: (0, 0)),           # b2 (resident)
            pl.BlockSpec((D2, D3p), lambda k: (0, 0)),         # w3 (resident)
            pl.BlockSpec((1, D3p), lambda k: (0, 0)),          # b3 (resident)
        ],
        out_specs=pl.BlockSpec((Bp, D3p), lambda k: (0, 0)),
        scratch_shapes=[pltpu.VMEM((TBp, D1), jnp.float32)],   # fc1 output
    )

    out = pl.pallas_call(
        _fused_snn_kernel,
        out_shape=jax.ShapeDtypeStruct((Bp, D3p), jnp.float32),
        grid_spec=grid_spec,
        compiler_params=pltpu.CompilerParams(
            dimension_semantics=("arbitrary",)),
    )(s, w1p, b1p, w2p, b2p, w3p, b3p)

    return out[:B, :10]


# ---------------------------------- main ------------------------------------

if __name__ == "__main__":
    key = jax.random.PRNGKey(0)
    kx, kp = jax.random.split(key)

    B = 2
    T_total = start_T + time_step + 2        # 11, enough frames to slice from
    # synthetic binary event frames (N-MNIST-like spikes)
    x_ = (jax.random.uniform(kx, (B, T_total, 2, 34, 34)) > 0.7).astype(jnp.float32)

    params = init_params(kp)

    out = jax.jit(nmnist_fc_forward)(x_, params)
    out = jax.block_until_ready(out)
    assert out.shape == (B, 10) and out.dtype == jnp.float32
    print("KERNEL_OK")
</pallas_src>

<mosaic_0001>
module attributes {stable_mosaic.version = 11 : i64} {
  func.func @_fused_snn_kernel(%arg0: i32, %arg1: memref<32x1280xbf16, #tpu.memory_space<vmem>>, %arg2: memref<1280x512xbf16, #tpu.memory_space<vmem>>, %arg3: memref<1x512xf32, #tpu.memory_space<vmem>>, %arg4: memref<512x256xbf16, #tpu.memory_space<vmem>>, %arg5: memref<1x256xf32, #tpu.memory_space<vmem>>, %arg6: memref<256x128xbf16, #tpu.memory_space<vmem>>, %arg7: memref<1x128xf32, #tpu.memory_space<vmem>>, %arg8: memref<8x128xf32, #tpu.memory_space<vmem>>, %arg9: memref<32x512xf32, #tpu.memory_space<vmem>>) attributes {dimension_semantics = [#tpu.dimension_semantics<arbitrary>], iteration_bounds = array<i64: 2>, scalar_prefetch = 0 : i64, scratch_operands = 1 : i64, tpu.core_type = #tpu.core_type<tc>, window_params = [{transform_indices = @transform_0, window_bounds = array<i64: 32, 1280>}, {transform_indices = @transform_1, window_bounds = array<i64: 1280, 512>}, {pipeline_mode = #tpu.pipeline_mode<synchronous>, transform_indices = @transform_2, window_bounds = array<i64: 1, 512>}, {pipeline_mode = #tpu.pipeline_mode<synchronous>, transform_indices = @transform_3, window_bounds = array<i64: 512, 256>}, {pipeline_mode = #tpu.pipeline_mode<synchronous>, transform_indices = @transform_4, window_bounds = array<i64: 1, 256>}, {pipeline_mode = #tpu.pipeline_mode<synchronous>, transform_indices = @transform_5, window_bounds = array<i64: 256, 128>}, {pipeline_mode = #tpu.pipeline_mode<synchronous>, transform_indices = @transform_6, window_bounds = array<i64: 1, 128>}, {pipeline_mode = #tpu.pipeline_mode<synchronous>, transform_indices = @transform_7, window_bounds = array<i64: 8, 128>}]} {
    %c0 = arith.constant 0 : index
    %c0_0 = arith.constant 0 : index
    %0 = vector.load %arg1[%c0, %c0_0] : memref<32x1280xbf16, #tpu.memory_space<vmem>>, vector<32x1280xbf16>
    %c0_1 = arith.constant 0 : index
    %c0_2 = arith.constant 0 : index
    %1 = vector.load %arg2[%c0_1, %c0_2] : memref<1280x512xbf16, #tpu.memory_space<vmem>>, vector<1280x512xbf16>
    %cst = arith.constant dense<0.000000e+00> : vector<32x512xf32>
    %2 = tpu.matmul %0, %1, %cst {dimension_numbers = #tpu.dot_dimension_numbers<[1], [0], [0], [1], [0, 0, 1, 1], [], []>} : vector<32x1280xbf16>, vector<1280x512xbf16>, vector<32x512xf32> -> vector<32x512xf32>
    %c0_i32 = arith.constant 0 : i32
    %3 = arith.cmpi eq, %arg0, %c0_i32 : i32
    %4 = arith.extui %3 : i1 to i32
    %c0_i32_3 = arith.constant 0 : i32
    %5 = arith.cmpi ne, %4, %c0_i32_3 : i32
    scf.if %5 {
      %c0_7 = arith.constant 0 : index
      %c0_8 = arith.constant 0 : index
      %12 = vector.load %arg3[%c0_7, %c0_8] : memref<1x512xf32, #tpu.memory_space<vmem>>, vector<1x512xf32>
      %13 = vector.broadcast %12 : vector<1x512xf32> to vector<32x512xf32>
      %14 = arith.addf %2, %13 : vector<32x512xf32>
      %c0_9 = arith.constant 0 : index
      %c0_10 = arith.constant 0 : index
      %15 = vector.load %arg9[%c0_9, %c0_10] : memref<32x512xf32, #tpu.memory_space<vmem>>, vector<32x512xf32>
      tpu.vector_store %arg9[%c0_9, %c0_10], %14 {strides = array<i32>} : memref<32x512xf32, #tpu.memory_space<vmem>>, vector<32x512xf32>,
    } else {
    }
    %c0_i32_4 = arith.constant 0 : i32
    %6 = arith.cmpi ne, %arg0, %c0_i32_4 : i32
    %7 = arith.extui %6 : i1 to i32
    %c0_i32_5 = arith.constant 0 : i32
    %8 = arith.cmpi ne, %7, %c0_i32_5 : i32
    scf.if %8 {
      %c0_7 = arith.constant 0 : index
      %c0_8 = arith.constant 0 : index
      %12 = vector.load %arg9[%c0_7, %c0_8] : memref<32x512xf32, #tpu.memory_space<vmem>>, vector<32x512xf32>
      %13 = arith.addf %12, %2 : vector<32x512xf32>
      %c0_9 = arith.constant 0 : index
      %c0_10 = arith.constant 0 : index
      %14 = vector.load %arg9[%c0_9, %c0_10] : memref<32x512xf32, #tpu.memory_space<vmem>>, vector<32x512xf32>
      tpu.vector_store %arg9[%c0_9, %c0_10], %13 {strides = array<i32>} : memref<32x512xf32, #tpu.memory_space<vmem>>, vector<32x512xf32>,
    } else {
    }
    %c1_i32 = arith.constant 1 : i32
    %9 = arith.cmpi eq, %arg0, %c1_i32 : i32
    %10 = arith.extui %9 : i1 to i32
    %c0_i32_6 = arith.constant 0 : i32
    %11 = arith.cmpi ne, %10, %c0_i32_6 : i32
    scf.if %11 {
      %c0_7 = arith.constant 0 : index
      %c0_8 = arith.constant 0 : index
      %12 = vector.load %arg5[%c0_7, %c0_8] : memref<1x256xf32, #tpu.memory_space<vmem>>, vector<1x256xf32>
      %13 = vector.shape_cast %12 : vector<1x256xf32> to vector<1x256xf32>
      %14 = vector.broadcast %13 : vector<1x256xf32> to vector<8x256xf32>
      %c0_9 = arith.constant 0 : index
      %c0_10 = arith.constant 0 : index
      %15 = vector.load %arg7[%c0_9, %c0_10] : memref<1x128xf32, #tpu.memory_space<vmem>>, vector<1x128xf32>
      %16 = vector.shape_cast %15 : vector<1x128xf32> to vector<1x128xf32>
      %17 = vector.broadcast %16 : vector<1x128xf32> to vector<8x128xf32>
      %cst_11 = arith.constant 0.000000e+00 : f32
      %18 = vector.broadcast %cst_11 : f32 to vector<8x512xf32>
      %false = arith.constant false
      %19 = vector.broadcast %false : i1 to vector<8x512xi1>
      %cst_12 = arith.constant 0.000000e+00 : f32
      %20 = vector.broadcast %cst_12 : f32 to vector<8x256xf32>
      %false_13 = arith.constant false
      %21 = vector.broadcast %false_13 : i1 to vector<8x256xi1>
      %cst_14 = arith.constant 0.000000e+00 : f32
      %22 = vector.broadcast %cst_14 : f32 to vector<8x128xf32>
      %false_15 = arith.constant false
      %23 = vector.broadcast %false_15 : i1 to vector<8x128xi1>
      %cst_16 = arith.constant 0.000000e+00 : f32
      %24 = vector.broadcast %cst_16 : f32 to vector<8x128xf32>
      %c0_17 = arith.constant 0 : index
      %c0_18 = arith.constant 0 : index
      %25 = vector.load %arg9[%c0_17, %c0_18] : memref<32x512xf32, #tpu.memory_space<vmem>>, vector<8x512xf32>
      %cst_19 = arith.constant 5.000000e-01 : f32
      %26 = vector.broadcast %cst_19 : f32 to vector<8x512xf32>
      %27 = arith.mulf %18, %26 : vector<8x512xf32>
      %28 = arith.addf %27, %25 : vector<8x512xf32>
      %29 = arith.select %19, %25, %28 : vector<8x512xi1>, vector<8x512xf32>
      %cst_20 = arith.constant 1.000000e+00 : f32
      %30 = vector.broadcast %cst_20 : f32 to vector<8x512xf32>
      %31 = arith.cmpf ogt, %29, %30 : vector<8x512xf32>
      %32 = arith.extui %31 : vector<8x512xi1> to vector<8x512xi32>
      %33 = arith.sitofp %32 : vector<8x512xi32> to vector<8x512xf32>
      %34 = arith.truncf %33 : vector<8x512xf32> to vector<8x512xbf16>
      %c0_21 = arith.constant 0 : index
      %c0_22 = arith.constant 0 : index
      %35 = vector.load %arg4[%c0_21, %c0_22] : memref<512x256xbf16, #tpu.memory_space<vmem>>, vector<512x256xbf16>
      %cst_23 = arith.constant dense<0.000000e+00> : vector<8x256xf32>
      %36 = tpu.matmul %34, %35, %cst_23 {dimension_numbers = #tpu.dot_dimension_numbers<[1], [0], [0], [1], [0, 0, 1, 1], [], []>} : vector<8x512xbf16>, vector<512x256xbf16>, vector<8x256xf32> -> vector<8x256xf32>
      %37 = arith.addf %36, %14 : vector<8x256xf32>
      %cst_24 = arith.constant 5.000000e-01 : f32
      %38 = vector.broadcast %cst_24 : f32 to vector<8x256xf32>
      %39 = arith.mulf %20, %38 : vector<8x256xf32>
      %40 = arith.addf %39, %37 : vector<8x256xf32>
      %41 = arith.select %21, %37, %40 : vector<8x256xi1>, vector<8x256xf32>
      %cst_25 = arith.constant 1.000000e+00 : f32
      %42 = vector.broadcast %cst_25 : f32 to vector<8x256xf32>
      %43 = arith.cmpf ogt, %41, %42 : vector<8x256xf32>
      %44 = arith.extui %43 : vector<8x256xi1> to vector<8x256xi32>
      %45 = arith.sitofp %44 : vector<8x256xi32> to vector<8x256xf32>
      %46 = arith.truncf %45 : vector<8x256xf32> to vector<8x256xbf16>
      %c0_26 = arith.constant 0 : index
      %c0_27 = arith.constant 0 : index
      %47 = vector.load %arg6[%c0_26, %c0_27] : memref<256x128xbf16, #tpu.memory_space<vmem>>, vector<256x128xbf16>
      %cst_28 = arith.constant dense<0.000000e+00> : vector<8x128xf32>
      %48 = tpu.matmul %46, %47, %cst_28 {dimension_numbers = #tpu.dot_dimension_numbers<[1], [0], [0], [1], [0, 0, 1, 1], [], []>} : vector<8x256xbf16>, vector<256x128xbf16>, vector<8x128xf32> -> vector<8x128xf32>
      %49 = arith.addf %48, %17 : vector<8x128xf32>
      %cst_29 = arith.constant 5.000000e-01 : f32
      %50 = vector.broadcast %cst_29 : f32 to vector<8x128xf32>
      %51 = arith.mulf %22, %50 : vector<8x128xf32>
      %52 = arith.addf %51, %49 : vector<8x128xf32>
      %53 = arith.select %23, %49, %52 : vector<8x128xi1>, vector<8x128xf32>
      %cst_30 = arith.constant 1.000000e+00 : f32
      %54 = vector.broadcast %cst_30 : f32 to vector<8x128xf32>
      %55 = arith.cmpf ogt, %53, %54 : vector<8x128xf32>
      %56 = arith.extui %55 : vector<8x128xi1> to vector<8x128xi32>
      %57 = arith.sitofp %56 : vector<8x128xi32> to vector<8x128xf32>
      %58 = arith.addf %24, %57 : vector<8x128xf32>
      %c8 = arith.constant 8 : index
      %c0_31 = arith.constant 0 : index
      %59 = vector.load %arg9[%c8, %c0_31] : memref<32x512xf32, #tpu.memory_space<vmem>>, vector<8x512xf32>
      %cst_32 = arith.constant 5.000000e-01 : f32
      %60 = vector.broadcast %cst_32 : f32 to vector<8x512xf32>
      %61 = arith.mulf %29, %60 : vector<8x512xf32>
      %62 = arith.addf %61, %59 : vector<8x512xf32>
      %63 = arith.select %31, %59, %62 : vector<8x512xi1>, vector<8x512xf32>
      %cst_33 = arith.constant 1.000000e+00 : f32
      %64 = vector.broadcast %cst_33 : f32 to vector<8x512xf32>
      %65 = arith.cmpf ogt, %63, %64 : vector<8x512xf32>
      %66 = arith.extui %65 : vector<8x512xi1> to vector<8x512xi32>
      %67 = arith.sitofp %66 : vector<8x512xi32> to vector<8x512xf32>
      %68 = arith.truncf %67 : vector<8x512xf32> to vector<8x512xbf16>
      %c0_34 = arith.constant 0 : index
      %c0_35 = arith.constant 0 : index
      %69 = vector.load %arg4[%c0_34, %c0_35] : memref<512x256xbf16, #tpu.memory_space<vmem>>, vector<512x256xbf16>
      %cst_36 = arith.constant dense<0.000000e+00> : vector<8x256xf32>
      %70 = tpu.matmul %68, %69, %cst_36 {dimension_numbers = #tpu.dot_dimension_numbers<[1], [0], [0], [1], [0, 0, 1, 1], [], []>} : vector<8x512xbf16>, vector<512x256xbf16>, vector<8x256xf32> -> vector<8x256xf32>
      %71 = arith.addf %70, %14 : vector<8x256xf32>
      %cst_37 = arith.constant 5.000000e-01 : f32
      %72 = vector.broadcast %cst_37 : f32 to vector<8x256xf32>
      %73 = arith.mulf %41, %72 : vector<8x256xf32>
      %74 = arith.addf %73, %71 : vector<8x256xf32>
      %75 = arith.select %43, %71, %74 : vector<8x256xi1>, vector<8x256xf32>
      %cst_38 = arith.constant 1.000000e+00 : f32
      %76 = vector.broadcast %cst_38 : f32 to vector<8x256xf32>
      %77 = arith.cmpf ogt, %75, %76 : vector<8x256xf32>
      %78 = arith.extui %77 : vector<8x256xi1> to vector<8x256xi32>
      %79 = arith.sitofp %78 : vector<8x256xi32> to vector<8x256xf32>
      %80 = arith.truncf %79 : vector<8x256xf32> to vector<8x256xbf16>
      %c0_39 = arith.constant 0 : index
      %c0_40 = arith.constant 0 : index
      %81 = vector.load %arg6[%c0_39, %c0_40] : memref<256x128xbf16, #tpu.memory_space<vmem>>, vector<256x128xbf16>
      %cst_41 = arith.constant dense<0.000000e+00> : vector<8x128xf32>
      %82 = tpu.matmul %80, %81, %cst_41 {dimension_numbers = #tpu.dot_dimension_numbers<[1], [0], [0], [1], [0, 0, 1, 1], [], []>} : vector<8x256xbf16>, vector<256x128xbf16>, vector<8x128xf32> -> vector<8x128xf32>
      %83 = arith.addf %82, %17 : vector<8x128xf32>
      %cst_42 = arith.constant 5.000000e-01 : f32
      %84 = vector.broadcast %cst_42 : f32 to vector<8x128xf32>
      %85 = arith.mulf %53, %84 : vector<8x128xf32>
      %86 = arith.addf %85, %83 : vector<8x128xf32>
      %87 = arith.select %55, %83, %86 : vector<8x128xi1>, vector<8x128xf32>
      %cst_43 = arith.constant 1.000000e+00 : f32
      %88 = vector.broadcast %cst_43 : f32 to vector<8x128xf32>
      %89 = arith.cmpf ogt, %87, %88 : vector<8x128xf32>
      %90 = arith.extui %89 : vector<8x128xi1> to vector<8x128xi32>
      %91 = arith.sitofp %90 : vector<8x128xi32> to vector<8x128xf32>
      %92 = arith.addf %58, %91 : vector<8x128xf32>
      %c16 = arith.constant 16 : index
      %c0_44 = arith.constant 0 : index
      %93 = vector.load %arg9[%c16, %c0_44] : memref<32x512xf32, #tpu.memory_space<vmem>>, vector<8x512xf32>
      %cst_45 = arith.constant 5.000000e-01 : f32
      %94 = vector.broadcast %cst_45 : f32 to vector<8x512xf32>
      %95 = arith.mulf %63, %94 : vector<8x512xf32>
      %96 = arith.addf %95, %93 : vector<8x512xf32>
      %97 = arith.select %65, %93, %96 : vector<8x512xi1>, vector<8x512xf32>
      %cst_46 = arith.constant 1.000000e+00 : f32
      %98 = vector.broadcast %cst_46 : f32 to vector<8x512xf32>
      %99 = arith.cmpf ogt, %97, %98 : vector<8x512xf32>
      %100 = arith.extui %99 : vector<8x512xi1> to vector<8x512xi32>
      %101 = arith.sitofp %100 : vector<8x512xi32> to vector<8x512xf32>
      %102 = arith.truncf %101 : vector<8x512xf32> to vector<8x512xbf16>
      %c0_47 = arith.constant 0 : index
      %c0_48 = arith.constant 0 : index
      %103 = vector.load %arg4[%c0_47, %c0_48] : memref<512x256xbf16, #tpu.memory_space<vmem>>, vector<512x256xbf16>
      %cst_49 = arith.constant dense<0.000000e+00> : vector<8x256xf32>
      %104 = tpu.matmul %102, %103, %cst_49 {dimension_numbers = #tpu.dot_dimension_numbers<[1], [0], [0], [1], [0, 0, 1, 1], [], []>} : vector<8x512xbf16>, vector<512x256xbf16>, vector<8x256xf32> -> vector<8x256xf32>
      %105 = arith.addf %104, %14 : vector<8x256xf32>
      %cst_50 = arith.constant 5.000000e-01 : f32
      %106 = vector.broadcast %cst_50 : f32 to vector<8x256xf32>
      %107 = arith.mulf %75, %106 : vector<8x256xf32>
      %108 = arith.addf %107, %105 : vector<8x256xf32>
      %109 = arith.select %77, %105, %108 : vector<8x256xi1>, vector<8x256xf32>
      %cst_51 = arith.constant 1.000000e+00 : f32
      %110 = vector.broadcast %cst_51 : f32 to vector<8x256xf32>
      %111 = arith.cmpf ogt, %109, %110 : vector<8x256xf32>
      %112 = arith.extui %111 : vector<8x256xi1> to vector<8x256xi32>
      %113 = arith.sitofp %112 : vector<8x256xi32> to vector<8x256xf32>
      %114 = arith.truncf %113 : vector<8x256xf32> to vector<8x256xbf16>
      %c0_52 = arith.constant 0 : index
      %c0_53 = arith.constant 0 : index
      %115 = vector.load %arg6[%c0_52, %c0_53] : memref<256x128xbf16, #tpu.memory_space<vmem>>, vector<256x128xbf16>
      %cst_54 = arith.constant dense<0.000000e+00> : vector<8x128xf32>
      %116 = tpu.matmul %114, %115, %cst_54 {dimension_numbers = #tpu.dot_dimension_numbers<[1], [0], [0], [1], [0, 0, 1, 1], [], []>} : vector<8x256xbf16>, vector<256x128xbf16>, vector<8x128xf32> -> vector<8x128xf32>
      %117 = arith.addf %116, %17 : vector<8x128xf32>
      %cst_55 = arith.constant 5.000000e-01 : f32
      %118 = vector.broadcast %cst_55 : f32 to vector<8x128xf32>
      %119 = arith.mulf %87, %118 : vector<8x128xf32>
      %120 = arith.addf %119, %117 : vector<8x128xf32>
      %121 = arith.select %89, %117, %120 : vector<8x128xi1>, vector<8x128xf32>
      %cst_56 = arith.constant 1.000000e+00 : f32
      %122 = vector.broadcast %cst_56 : f32 to vector<8x128xf32>
      %123 = arith.cmpf ogt, %121, %122 : vector<8x128xf32>
      %124 = arith.extui %123 : vector<8x128xi1> to vector<8x128xi32>
      %125 = arith.sitofp %124 : vector<8x128xi32> to vector<8x128xf32>
      %126 = arith.addf %92, %125 : vector<8x128xf32>
      %c24 = arith.constant 24 : index
      %c0_57 = arith.constant 0 : index
      %127 = vector.load %arg9[%c24, %c0_57] : memref<32x512xf32, #tpu.memory_space<vmem>>, vector<8x512xf32>
      %cst_58 = arith.constant 5.000000e-01 : f32
      %128 = vector.broadcast %cst_58 : f32 to vector<8x512xf32>
      %129 = arith.mulf %97, %128 : vector<8x512xf32>
      %130 = arith.addf %129, %127 : vector<8x512xf32>
      %131 = arith.select %99, %127, %130 : vector<8x512xi1>, vector<8x512xf32>
      %cst_59 = arith.constant 1.000000e+00 : f32
      %132 = vector.broadcast %cst_59 : f32 to vector<8x512xf32>
      %133 = arith.cmpf ogt, %131, %132 : vector<8x512xf32>
      %134 = arith.extui %133 : vector<8x512xi1> to vector<8x512xi32>
      %135 = arith.sitofp %134 : vector<8x512xi32> to vector<8x512xf32>
      %136 = arith.truncf %135 : vector<8x512xf32> to vector<8x512xbf16>
      %c0_60 = arith.constant 0 : index
      %c0_61 = arith.constant 0 : index
      %137 = vector.load %arg4[%c0_60, %c0_61] : memref<512x256xbf16, #tpu.memory_space<vmem>>, vector<512x256xbf16>
      %cst_62 = arith.constant dense<0.000000e+00> : vector<8x256xf32>
      %138 = tpu.matmul %136, %137, %cst_62 {dimension_numbers = #tpu.dot_dimension_numbers<[1], [0], [0], [1], [0, 0, 1, 1], [], []>} : vector<8x512xbf16>, vector<512x256xbf16>, vector<8x256xf32> -> vector<8x256xf32>
      %139 = arith.addf %138, %14 : vector<8x256xf32>
      %cst_63 = arith.constant 5.000000e-01 : f32
      %140 = vector.broadcast %cst_63 : f32 to vector<8x256xf32>
      %141 = arith.mulf %109, %140 : vector<8x256xf32>
      %142 = arith.addf %141, %139 : vector<8x256xf32>
      %143 = arith.select %111, %139, %142 : vector<8x256xi1>, vector<8x256xf32>
      %cst_64 = arith.constant 1.000000e+00 : f32
      %144 = vector.broadcast %cst_64 : f32 to vector<8x256xf32>
      %145 = arith.cmpf ogt, %143, %144 : vector<8x256xf32>
      %146 = arith.extui %145 : vector<8x256xi1> to vector<8x256xi32>
      %147 = arith.sitofp %146 : vector<8x256xi32> to vector<8x256xf32>
      %148 = arith.truncf %147 : vector<8x256xf32> to vector<8x256xbf16>
      %c0_65 = arith.constant 0 : index
      %c0_66 = arith.constant 0 : index
      %149 = vector.load %arg6[%c0_65, %c0_66] : memref<256x128xbf16, #tpu.memory_space<vmem>>, vector<256x128xbf16>
      %cst_67 = arith.constant dense<0.000000e+00> : vector<8x128xf32>
      %150 = tpu.matmul %148, %149, %cst_67 {dimension_numbers = #tpu.dot_dimension_numbers<[1], [0], [0], [1], [0, 0, 1, 1], [], []>} : vector<8x256xbf16>, vector<256x128xbf16>, vector<8x128xf32> -> vector<8x128xf32>
      %151 = arith.addf %150, %17 : vector<8x128xf32>
      %cst_68 = arith.constant 5.000000e-01 : f32
      %152 = vector.broadcast %cst_68 : f32 to vector<8x128xf32>
      %153 = arith.mulf %121, %152 : vector<8x128xf32>
      %154 = arith.addf %153, %151 : vector<8x128xf32>
      %155 = arith.select %123, %151, %154 : vector<8x128xi1>, vector<8x128xf32>
      %cst_69 = arith.constant 1.000000e+00 : f32
      %156 = vector.broadcast %cst_69 : f32 to vector<8x128xf32>
      %157 = arith.cmpf ogt, %155, %156 : vector<8x128xf32>
      %158 = arith.extui %157 : vector<8x128xi1> to vector<8x128xi32>
      %159 = arith.sitofp %158 : vector<8x128xi32> to vector<8x128xf32>
      %160 = arith.addf %126, %159 : vector<8x128xf32>
      %cst_70 = arith.constant 2.500000e-01 : f32
      %161 = vector.broadcast %cst_70 : f32 to vector<8x128xf32>
      %162 = arith.mulf %160, %161 : vector<8x128xf32>
      %c0_71 = arith.constant 0 : index
      %c0_72 = arith.constant 0 : index
      %163 = vector.load %arg8[%c0_71, %c0_72] : memref<8x128xf32, #tpu.memory_space<vmem>>, vector<8x128xf32>
      tpu.vector_store %arg8[%c0_71, %c0_72], %162 {strides = array<i32>} : memref<8x128xf32, #tpu.memory_space<vmem>>, vector<8x128xf32>,
    } else {
    }
    return
  }
  func.func @transform_0(%arg0: i32) -> (i32, i32) {
    %c0_i32 = arith.constant 0 : i32
    %c0_i32_0 = arith.constant 0 : i32
    return %c0_i32, %arg0 : i32, i32
  }
  func.func @transform_1(%arg0: i32) -> (i32, i32) {
    %c0_i32 = arith.constant 0 : i32
    %c0_i32_0 = arith.constant 0 : i32
    return %arg0, %c0_i32 : i32, i32
  }
  func.func @transform_2(%arg0: i32) -> (i32, i32) {
    %c0_i32 = arith.constant 0 : i32
    %c0_i32_0 = arith.constant 0 : i32
    %c0_i32_1 = arith.constant 0 : i32
    return %c0_i32, %c0_i32_0 : i32, i32
  }
  func.func @transform_3(%arg0: i32) -> (i32, i32) {
    %c0_i32 = arith.constant 0 : i32
    %c0_i32_0 = arith.constant 0 : i32
    %c0_i32_1 = arith.constant 0 : i32
    return %c0_i32, %c0_i32_0 : i32, i32
  }
  func.func @transform_4(%arg0: i32) -> (i32, i32) {
    %c0_i32 = arith.constant 0 : i32
    %c0_i32_0 = arith.constant 0 : i32
    %c0_i32_1 = arith.constant 0 : i32
    return %c0_i32, %c0_i32_0 : i32, i32
  }
  func.func @transform_5(%arg0: i32) -> (i32, i32) {
    %c0_i32 = arith.constant 0 : i32
    %c0_i32_0 = arith.constant 0 : i32
    %c0_i32_1 = arith.constant 0 : i32
    return %c0_i32, %c0_i32_0 : i32, i32
  }
  func.func @transform_6(%arg0: i32) -> (i32, i32) {
    %c0_i32 = arith.constant 0 : i32
    %c0_i32_0 = arith.constant 0 : i32
    %c0_i32_1 = arith.constant 0 : i32
    return %c0_i32, %c0_i32_0 : i32, i32
  }
  func.func @transform_7(%arg0: i32) -> (i32, i32) {
    %c0_i32 = arith.constant 0 : i32
    %c0_i32_0 = arith.constant 0 : i32
    %c0_i32_1 = arith.constant 0 : i32
    return %c0_i32, %c0_i32_0 : i32, i32
  }
}

</mosaic_0001>

<bundles_post_ra>
// kernel: nmnist_fc_forward.1
= control target key start
LH: loop header
LB: loop body
LE: loop exit
PB: predicated region body
PF: predicated region fallthrough
CT: control target
= control target key end

     0   :  { %12 = vsyncpa [#allocation5], 0  ;;  %s7428_s0 = inlined_call_operand.vmem [shape: bf16[32,2560], index: 0, kind: input, shape index: {}]   ;;  %s7429_s1 = inlined_call_operand.hbm [shape: bf16[2560,512], index: 1, kind: input, shape index: {}]   ;;  %s7430_s2 = inlined_call_operand.hbm [shape: f32[1,512], index: 2, kind: input, shape index: {}]   ;;  %s7431_s3 = inlined_call_operand.hbm [shape: bf16[512,256], index: 3, kind: input, shape index: {}]   ;;  %s7432_s4 = inlined_call_operand.hbm [shape: f32[1,256], index: 4, kind: input, shape index: {}]   ;;  %s7433_s5 = inlined_call_operand.hbm [shape: bf16[256,128], index: 5, kind: input, shape index: {}]   ;;  %s7434_s6 = inlined_call_operand.hbm [shape: f32[1,128], index: 6, kind: input, shape index: {}]   ;;  %s7435_s7 = inlined_call_operand.vmem [shape: f32[8,128], index: 7, kind: output, shape index: {}]  }
   0x1   :  { %14 = vsyncpa [#allocation5 + $0x1], 0 }
   0x2   :  { %15 = vsyncpa [#allocation7], 0 }
   0x3   :  { %16 = vsyncpa [#allocation10], 0 }
   0x4   :  { %17 = vsyncpa [#allocation13], 0  ;;  %s6068_s24 = smov 0   ;;  %s6070_s25 = smov 0  }
   0x5   :  { %s6072_s26 = smov 0   ;;  %s6074_s27 = smov 0  }
   0x6 LB: > { %s6087_s28 = sadd.s32 4294967295, %s6012_s27   ;;  %s6090_s29 = sadd.s32 1, %s6012_s27   ;;  %s6012_s27 = sphi %s6074_s27, %s7671_s27   ;;  %s6008_s26 = sphi %s6072_s26, %s7670_s26   ;;  %s6004_s25 = sphi %s6070_s25, %s7669_s25   ;;  %s6000_s24 = sphi %s6068_s24, %s7668_s24  }
   0x7   : > { %s27_s30 = ssub.s32 %s6012_s27, %s6090_s29  ;;  %s30_s8 = sadd.s32 1, %s6008_s26 }
   0x8   : > { %p28_p0 = scmp.eq.s32.totalorder %s27_s30, 0  ;;  %p37_p1 = scmp.ne.s32.totalorder %s6008_s26, %s6004_s25 }
   0x9   : > { %p38_p2 = scmp.eq.s32.totalorder %s6012_s27, 0  ;;  %p69_p3 = scmp.ne.s32.totalorder %s6004_s25, %s6000_s24 }
   0xa   : > { %s6100_s9 = scalar_select %p28_p0, %s6008_s26, %s30_s8  }
   0xb   : > { %p6102_p4 = por %p38_p2, %p37_p1  ;;  %p7436_p5 = scmp.eq.s32.totalorder %s6087_s28, 0 }
   0xc   : > { %p4442_p6 = scmp.ge.s32.totalorder %s6012_s27, 1  ;;  %p206_p7 = scmp.lt.s32.totalorder %s6012_s27, 3 }
   0xd   : > { %s7527_s10 = scalar_select %p6102_p4, 1, 0 }
   0xe   : > { %p6111_p8 = por %p7436_p5, %p69_p3  ;;  %p6116_p10 = pnand %p4442_p6, %p206_p7 }
   0xf   : > { %s6014_s13 = smov [#allocation6]   ;;  %s6015_s15 = smov [#allocation9]  }
  0x10   : > { %s7528_s11 = scalar_select %p6111_p8, 1, 0 }
  0x11   : > { %s7529_s12 = scalar_select %p6116_p10, 1, 0 }
  0x12   : > { %s219_s14 = sshll.u32 %s6014_s13, 4  ;;  %p5078_p11 = pneg %p6116_p10  ;;  %s220_s14 = int_to_ptr.vmem [resolvable:$true] %s219_s14 }
  0x13   : > { %s243_s16 = sshll.u32 %s6015_s15, 4  ;;  %s6016_s18 = smov [#allocation8]   ;;  %s244_s16 = int_to_ptr.vmem [resolvable:$true] %s243_s16 }
  0x14   : > { %p6124_p12 = pnand %p5078_p11, %p7436_p5  ;;  %s229_s19 = sshll.u32 %s6016_s18, 4  ;;  %s6128_s19 = int_to_ptr.vmem [resolvable:$true] %s229_s19 }
  0x15   : > { %s5821_s21 = scalar_lea.vmem %s220_s14, 64  ;;  %p5829_p3 = scmp.lt.s32.totalorder %s220_s14, %s220_s14 }
  0x16   : > { %p6132_p13 = pneg %p6124_p12  ;;  %p5822_p0 = scmp.ne.s32.totalorder %s220_s14, %s5821_s21 }
  0x17   : > { %p5830_p6 = scmp.lt.s32.totalorder %s5821_s21, %s5821_s21 }
  0x18   : > { %p5824_p1 = pnand %p5822_p0, %p6132_p13 }
  0x19   : > { %p5831_p7 = por %p5830_p6, %p5829_p3 }
  0x1a   : > { %p5825_p2 = pneg %p5824_p1 }
  0x1c   : > { %p5832_p11 = pnand %p5831_p7, %p5825_p2 }
  0x1e   : > { %5835 = shalt.err (!%p5832_p11)
}
  0x1f   : > { %5081 = dma.hbm_to_vmem [thread:$0]  (!%p6124_p12), %s7430_s2, 64, %s220_s14, [#allocation7]  }
  0x20   : > { %s5847_s24 = scalar_lea.vmem %s244_s16, 32  ;;  %p5855_p10 = scmp.lt.s32.totalorder %s244_s16, %s244_s16 }
  0x21   : > { %p5848_p9 = scmp.ne.s32.totalorder %s244_s16, %s5847_s24  ;;  %p5856_p0 = scmp.lt.s32.totalorder %s5847_s24, %s5847_s24 }
  0x23   : > { %p5850_p5 = pnand %p5848_p9, %p6132_p13  ;;  %p5857_p1 = por %p5856_p0, %p5855_p10 }
  0x25   : > { %p5851_p8 = pneg %p5850_p5 }
  0x27   : > { %p5858_p4 = pnand %p5857_p1, %p5851_p8 }
  0x29   : > { %5861 = shalt.err (!%p5858_p4)
}
  0x2a   : > { %5087 = dma.hbm_to_vmem [thread:$0]  (!%p6124_p12), %s7432_s4, 32, %s244_s16, [#allocation10]  }
  0x2b   : > { %s5873_s13 = scalar_lea.vmem %s6128_s19, 8192  ;;  %p5881_p3 = scmp.lt.s32.totalorder %s6128_s19, %s6128_s19 }
  0x2c   : > { %p5874_p2 = scmp.ne.s32.totalorder %s6128_s19, %s5873_s13  ;;  %p5882_p10 = scmp.lt.s32.totalorder %s5873_s13, %s5873_s13 }
  0x2e   : > { %p5876_p9 = pnand %p5874_p2, %p6132_p13  ;;  %p5883_p8 = por %p5882_p10, %p5881_p3 }
  0x30   : > { %p5877_p5 = pneg %p5876_p9 }
  0x32   : > { %p5884_p4 = pnand %p5883_p8, %p5877_p5 }
  0x34   : > { %5887 = shalt.err (!%p5884_p4)
}
  0x35   : > { %s6017_s14 = smov 128   ;;  %s6018_s15 = smov 8  }
  0x36   : > { %5084 = dma.hbm_to_vmem [thread:$0]  (!%p6124_p12), %s7431_s3, 8192, %s6128_s19, [#allocation7], %s6017_s14, %s6017_s14, %s6018_s15  }
  0x37   : > { %s6019_s16 = smov [#allocation11]  }
  0x38   : > { %s253_s22 = sshll.u32 %s6019_s16, 4  ;;  %s254_s22 = int_to_ptr.vmem [resolvable:$true] %s253_s22 }
  0x39   : > { %s5899_s23 = scalar_lea.vmem %s254_s22, 2048  ;;  %p5907_p0 = scmp.lt.s32.totalorder %s254_s22, %s254_s22 }
  0x3a   : > { %p5900_p6 = scmp.ne.s32.totalorder %s254_s22, %s5899_s23  ;;  %p5908_p1 = scmp.lt.s32.totalorder %s5899_s23, %s5899_s23 }
  0x3c   : > { %p5902_p7 = pnand %p5900_p6, %p6132_p13  ;;  %p5909_p2 = por %p5908_p1, %p5907_p0 }
  0x3e   : > { %p5903_p11 = pneg %p5902_p7 }
  0x40   : > { %p5910_p9 = pnand %p5909_p2, %p5903_p11 }
  0x42   : > { %5913 = shalt.err (!%p5910_p9)
}
  0x43   : > { %s6020_s24 = smov 64   ;;  %s6021_s30 = smov 4  }
  0x44   : > { %5090 = dma.hbm_to_vmem [thread:$0]  (!%p6124_p12), %s7433_s5, 2048, %s254_s22, [#allocation10], %s6020_s24, %s6020_s24, %s6021_s30  }
  0x45   : > { %s6022_s13 = smov [#allocation12]  }
  0x46   : > { %s267_s14 = sshll.u32 %s6022_s13, 4  ;;  %s268_s14 = int_to_ptr.vmem [resolvable:$true] %s267_s14 }
  0x47   : > { %s5925_s15 = scalar_lea.vmem %s268_s14, 16  ;;  %s5932_s18 = scalar_lea.vmem %s268_s14, 32 }
  0x48   : > { %p5926_p5 = scmp.ne.s32.totalorder %s268_s14, %s5925_s15  ;;  %p5933_p8 = scmp.lt.s32.totalorder %s268_s14, %s268_s14 }
  0x49   : > { %p5934_p4 = scmp.lt.s32.totalorder %s5932_s18, %s5925_s15 }
  0x4a   : > { %p5928_p3 = pnand %p5926_p5, %p6132_p13 }
  0x4b   : > { %p5935_p6 = por %p5934_p4, %p5933_p8 }
  0x4c   : > { %p5929_p10 = pneg %p5928_p3 }
  0x4e   : > { %p5936_p7 = pnand %p5935_p6, %p5929_p10 }
  0x50   : > { %5939 = shalt.err (!%p5936_p7)
}
  0x51   : > { %5093 = dma.hbm_to_vmem [thread:$0]  (!%p6124_p12), %s7434_s6, 16, %s268_s14, [#allocation13]  }
  0x52   : > { %p4448_p11 = scmp.ge.s32.totalorder %s6012_s27, 2 }
  0x53   : > { %p7532_p0 = scmp.ne.s32.totalorder (!%p4448_p11), %s7527_s10, 0 }
  0x54   : > { %274 = sbr.rel (%p4448_p11) target bundleno = 129 (0x81), region = 36 }
  0x59   : > { %277 = sbr.rel (!%p7532_p0) target bundleno = 104 (0x68), region = 40  ;;  %s279_s20 = sand.u32 (%p7532_p0), 1, %s6008_s26  }
  0x5a   : > { %s4960_s22 = smul.u32 (%p7532_p0), 40, %s6012_s27 }
  0x5b   : > { %s5052_s23 = smul.u32 (%p7532_p0), 160, %s279_s20 }
  0x5c   : > { %s6184_s8 = scalar_lea.vmem (%p7532_p0), %s7428_s0, %s4960_s22 }
  0x5d   : > { %v297_v0 = vld [vmem:[%s6184_s8] sm:$0xff] (%p7532_p0)  ;;  %v299_v1 = vld [vmem:[%s6184_s8 + $0x8] sm:$0xff] (%p7532_p0)  ;;  %v301_v2 = vld [vmem:[%s6184_s8 + $0x10] sm:$0xff] (%p7532_p0)  ;;  %s6189_s17 = scalar_lea.vmem (%p7532_p0), [#allocation3], %s5052_s23 }
  0x5e   : > { %298 = vst [vmem:[%s6189_s17] sm:$0xff] %v297_v0  ;;  %300 = vst [vmem:[%s6189_s17 + $0x8] sm:$0xff] %v299_v1  ;;  %v303_v3 = vld [vmem:[%s6184_s8 + $0x18] sm:$0xff]  ;;  %v305_v4 = vld [vmem:[%s6184_s8 + $0x20] sm:$0xff] }
  0x5f   : > { %302 = vst [vmem:[%s6189_s17 + $0x10] sm:$0xff] %v301_v2  ;;  %v307_v5 = vld [vmem:[%s6184_s8 + $0x50] sm:$0xff]  ;;  %304 = vst [vmem:[%s6189_s17 + $0x18] sm:$0xff] %v303_v3  ;;  %v309_v6 = vld [vmem:[%s6184_s8 + $0x58] sm:$0xff] }
  0x60   : > { %306 = vst [vmem:[%s6189_s17 + $0x20] sm:$0xff] %v305_v4  ;;  %308 = vst [vmem:[%s6189_s17 + $0x28] sm:$0xff] %v307_v5  ;;  %v311_v7 = vld [vmem:[%s6184_s8 + $0x60] sm:$0xff]  ;;  %v313_v8 = vld [vmem:[%s6184_s8 + $0x68] sm:$0xff] }
  0x61   : > { %310 = vst [vmem:[%s6189_s17 + $0x30] sm:$0xff] %v309_v6  ;;  %312 = vst [vmem:[%s6189_s17 + $0x38] sm:$0xff] %v311_v7  ;;  %v315_v9 = vld [vmem:[%s6184_s8 + $0x70] sm:$0xff]  ;;  %v317_v10 = vld [vmem:[%s6184_s8 + $0xa0] sm:$0xff] }
  0x62   : > { %314 = vst [vmem:[%s6189_s17 + $0x40] sm:$0xff] %v313_v8  ;;  %v319_v11 = vld [vmem:[%s6184_s8 + $0xa8] sm:$0xff]  ;;  %316 = vst [vmem:[%s6189_s17 + $0x48] sm:$0xff] %v315_v9  ;;  %v321_v12 = vld [vmem:[%s6184_s8 + $0xb0] sm:$0xff] }
  0x63   : > { %318 = vst [vmem:[%s6189_s17 + $0x50] sm:$0xff] %v317_v10  ;;  %320 = vst [vmem:[%s6189_s17 + $0x58] sm:$0xff] %v319_v11  ;;  %v323_v13 = vld [vmem:[%s6184_s8 + $0xb8] sm:$0xff]  ;;  %v325_v14 = vld [vmem:[%s6184_s8 + $0xc0] sm:$0xff] }
  0x64   : > { %322 = vst [vmem:[%s6189_s17 + $0x60] sm:$0xff] %v321_v12  ;;  %324 = vst [vmem:[%s6189_s17 + $0x68] sm:$0xff] %v323_v13  ;;  %v327_v15 = vld [vmem:[%s6184_s8 + $0xf0] sm:$0xff]  ;;  %v329_v16 = vld [vmem:[%s6184_s8 + $0xf8] sm:$0xff] }
  0x65   : > { %326 = vst [vmem:[%s6189_s17 + $0x70] sm:$0xff] %v325_v14  ;;  %v331_v17 = vld [vmem:[%s6184_s8 + $0x100] sm:$0xff]  ;;  %328 = vst [vmem:[%s6189_s17 + $0x78] sm:$0xff] %v327_v15  ;;  %v333_v18 = vld [vmem:[%s6184_s8 + $0x108] sm:$0xff] }
  0x66   : > { %330 = vst [vmem:[%s6189_s17 + $0x80] sm:$0xff] %v329_v16  ;;  %332 = vst [vmem:[%s6189_s17 + $0x88] sm:$0xff] %v331_v17  ;;  %v335_v19 = vld [vmem:[%s6184_s8 + $0x110] sm:$0xff] }
  0x67   : > { %334 = vst [vmem:[%s6189_s17 + $0x90] sm:$0xff] %v333_v18  ;;  %336 = vst [vmem:[%s6189_s17 + $0x98] sm:$0xff] %v335_v19 }
  0x68 PF: > { %s343_s19 = sand.u32 1, %s6008_s26   ;;  %s4963_s13 = smul.u32 40960, %s6012_s27 }
  0x69   : > { %s5053_s14 = smul.u32 2560, %s343_s19  ;;  %s6237_s22 = scalar_lea.sflag [#allocation5], %s343_s19 }
  0x6a   : > { %s6233_s21 = scalar_lea.hbm %s7429_s1, %s4963_s13  ;;  %p7533_p13 = scmp.ne.s32.totalorder %s7527_s10, 0 }
  0x6b   : > { %s347_s16 = scalar_lea.vmem [#allocation4], %s5053_s14  ;;  %s5940_s23 = scalar_lea.hbm %s6233_s21, 40960 }
  0x6c   : > { %s355_s20 = sshll.u32 %s347_s16, 4  ;;  %p5941_p12 = scmp.ne.s32.totalorder %s6233_s21, %s5940_s23  ;;  %s6235_s20 = int_to_ptr.vmem [resolvable:$true] %s355_s20 }
  0x6d   : > { %s5944_s30 = scalar_lea.hbm %s7429_s1, 81920  ;;  %p5945_p9 = scmp.lt.s32.totalorder %s6233_s21, %s7429_s1 }
  0x6e   : > { %p5942_p1 = pnand %p5941_p12, %p7533_p13  ;;  %p5946_p5 = scmp.lt.s32.totalorder %s5944_s30, %s5940_s23 }
  0x70   : > { %p5943_p2 = pneg %p5942_p1  ;;  %p5947_p3 = por %p5946_p5, %p5945_p9 }
  0x72   : > { %p5948_p10 = pnand %p5947_p3, %p5943_p2 }
  0x74   : > { %5951 = shalt.err (!%p5948_p10)
}
  0x75   : > { %s5952_s19 = scalar_lea.vmem %s6235_s20, 40960  ;;  %s6023_s13 = smov [#allocation4]  }
  0x76   : > { %p5953_p8 = scmp.ne.s32.totalorder %s6235_s20, %s5952_s19  ;;  %s5956_s14 = sshll.u32 %s6023_s13, 4  ;;  %s5957_s14 = int_to_ptr.vmem [resolvable:$false] %s5956_s14 }
  0x77   : > { %s5958_s15 = scalar_lea.vmem %s5957_s14, 81920  ;;  %p5959_p7 = scmp.lt.s32.totalorder %s6235_s20, %s5957_s14 }
  0x78   : > { %p5954_p4 = pnand %p5953_p8, %p7533_p13  ;;  %p5960_p11 = scmp.lt.s32.totalorder %s5958_s15, %s5952_s19 }
  0x7a   : > { %p5955_p6 = pneg %p5954_p4  ;;  %p5961_p0 = por %p5960_p11, %p5959_p7 }
  0x7c   : > { %p5962_p12 = pnand %p5961_p0, %p5955_p6 }
  0x7e   : > { %5965 = shalt.err (!%p5962_p12)
}
  0x7f   : > { %s6024_s18 = smov 256   ;;  %s6025_s16 = smov 16  }
  0x80   : > { %5066 = dma.hbm_to_vmem [thread:$0]  (%p7533_p13), %s6233_s21, 40960, %s6235_s20, %s6237_s22, %s6024_s18, %s6024_s18, %s6025_s16  }
  0x81 PF: > { %p7534_p1 = scmp.ne.s32.totalorder %s7529_s12, 0 }
  0x82   : > { %s370_s23 = sand.u32 (!%p7534_p1), 1, %s6004_s25   ;;  %p7535_p2 = scmp.ne.s32.totalorder (!%p7534_p1), %s7528_s11, 0 }
  0x83   : > { %367 = sbr.rel (%p7534_p1) target bundleno = 1999 (0x7cf), region = 67  ;;  %s377_s8 = scalar_lea.sflag (!%p7534_p1), [#allocation5], %s370_s23 }
  0x84   : > { %s5054_s27 = smul.u32 (!%p7534_p1), 160, %s370_s23 }
  0x85   : > { %s5055_s24 = smul.u32 (!%p7534_p1), 2560, %s370_s23 }
  0x86   : > { %s6263_s30 = scalar_lea.vmem (!%p7534_p1), [#allocation3], %s5054_s27 }
  0x87   : > { %s6265_s17 = scalar_lea.vmem (!%p7534_p1), [#allocation4], %s5055_s24 }
  0x88   : > { %5983 = dma.done.wait (%p7535_p2), %s377_s8, 40960  }
  0x89   : > { %5985 = vsyncadd (%p7535_p2), %s377_s8, 4294926336  ;;  %p7536_p13 = scmp.eq.s32.totalorder %s6087_s28, 0 }
  0x8b   : > { %5987 = dma.done.wait (%p7536_p13), [#allocation7], 8256   ;;  %p7537_p9 = pmov %p7536_p13 }
  0x8d   : > { %5989 = vsyncadd (%p7537_p9), [#allocation7], 4294959040  ;;  %p7538_p5 = pmov %p7537_p9 }
  0x8f   : > { %5991 = dma.done.wait (%p7538_p5), [#allocation10], 2080   ;;  %p7539_p3 = pmov %p7538_p5 }
  0x91   : > { %5993 = vsyncadd (%p7539_p3), [#allocation10], 4294965216  ;;  %p7540_p10 = pmov %p7539_p3 }
  0x92   : > { %p7541_p8 = pmov %p7539_p3 }
  0x93   : > { %5995 = dma.done.wait (%p7540_p10), [#allocation13], 16  }
  0x94   : > { %5997 = vsyncadd (%p7541_p8), [#allocation13], 4294967280  ;;  %v5149_v20 = vld [vmem:[%s6265_s17 + $0xe4] ss:$16 sps:$4 sm:$0xff]   ;;  %v5153_v22 = vld [vmem:[%s6265_s17 + $0xe0] ss:$16 sps:$4 sm:$0xff]  }
  0x95   : > { %v5151_v21 = vld [vmem:[%s6265_s17 + $0x2e4] ss:$16 sps:$4 sm:$0xff]   ;;  %2473 = vmatprep.subr.bf16.mxu0 %v5149_v20  ;;  %v5154_v23 = vld [vmem:[%s6265_s17 + $0x2e0] ss:$16 sps:$4 sm:$0xff]   ;;  %p7542_p4 = scmp.ne.s32.totalorder %s6087_s28, 0 }
  0x96   : > { %2526 = vmatprep.subr.bf16.mxu1 %v5151_v21  ;;  %v5155_v24 = vld [vmem:[%s6265_s17 + $0xc4] ss:$16 sps:$4 sm:$0xff]   ;;  %2474 = vmatpush1.bf16.msra.mxu0 %v5153_v22  ;;  %v5159_v26 = vld [vmem:[%s6265_s17 + $0xc0] ss:$16 sps:$4 sm:$0xff]  }
  0x97   : > { %2527 = vmatpush1.bf16.msra.mxu1 %v5154_v23  ;;  %v5157_v25 = vld [vmem:[%s6265_s17 + $0x2c4] ss:$16 sps:$4 sm:$0xff]   ;;  %2475 = vmatprep.subr.bf16.mxu0 %v5155_v24  ;;  %v5160_v27 = vld [vmem:[%s6265_s17 + $0x2c0] ss:$16 sps:$4 sm:$0xff]  }
  0x98   : > { %2528 = vmatprep.subr.bf16.mxu1 %v5157_v25  ;;  %v5161_v28 = vld [vmem:[%s6265_s17 + $0xa4] ss:$16 sps:$4 sm:$0xff]   ;;  %v5165_v30 = vld [vmem:[%s6265_s17 + $0xa0] ss:$16 sps:$4 sm:$0xff]  }
  0x99   : > { %v5163_v29 = vld [vmem:[%s6265_s17 + $0x2a4] ss:$16 sps:$4 sm:$0xff]   ;;  %v5166_v31 = vld [vmem:[%s6265_s17 + $0x2a0] ss:$16 sps:$4 sm:$0xff]  }
  0x9a   : > { %2476 = vmatpush1.bf16.msra.mxu0 %v5159_v26  ;;  %v5167_v32 = vld [vmem:[%s6265_s17 + $0x84] ss:$16 sps:$4 sm:$0xff]   ;;  %v5171_v34 = vld [vmem:[%s6265_s17 + $0x80] ss:$16 sps:$4 sm:$0xff]  }
  0x9b   : > { %2529 = vmatpush1.bf16.msra.mxu1 %v5160_v27  ;;  %2477 = vmatprep.subr.bf16.mxu0 %v5161_v28  ;;  %v5169_v33 = vld [vmem:[%s6265_s17 + $0x284] ss:$16 sps:$4 sm:$0xff]   ;;  %v5172_v35 = vld [vmem:[%s6265_s17 + $0x280] ss:$16 sps:$4 sm:$0xff]  }
  0x9c   : > { %2530 = vmatprep.subr.bf16.mxu1 %v5163_v29  ;;  %v5173_v36 = vld [vmem:[%s6265_s17 + $0x64] ss:$16 sps:$4 sm:$0xff]   ;;  %v5177_v38 = vld [vmem:[%s6265_s17 + $0x60] ss:$16 sps:$4 sm:$0xff]  }
  0x9d   : > { %v5175_v37 = vld [vmem:[%s6265_s17 + $0x264] ss:$16 sps:$4 sm:$0xff]   ;;  %v5178_v39 = vld [vmem:[%s6265_s17 + $0x260] ss:$16 sps:$4 sm:$0xff]  }
  0x9e   : > { %2478 = vmatpush1.bf16.msra.mxu0 %v5165_v30  ;;  %v5179_v40 = vld [vmem:[%s6265_s17 + $0x44] ss:$16 sps:$4 sm:$0xff]   ;;  %v5183_v42 = vld [vmem:[%s6265_s17 + $0x40] ss:$16 sps:$4 sm:$0xff]  }
  0x9f   : > { %2531 = vmatpush1.bf16.msra.mxu1 %v5166_v31  ;;  %2479 = vmatprep.subr.bf16.mxu0 %v5167_v32  ;;  %v5181_v41 = vld [vmem:[%s6265_s17 + $0x244] ss:$16 sps:$4 sm:$0xff]   ;;  %v5184_v43 = vld [vmem:[%s6265_s17 + $0x240] ss:$16 sps:$4 sm:$0xff]  }
  0xa0   : > { %2532 = vmatprep.subr.bf16.mxu1 %v5169_v33  ;;  %v5185_v44 = vld [vmem:[%s6265_s17 + $0x24] ss:$16 sps:$4 sm:$0xff]   ;;  %v5189_v46 = vld [vmem:[%s6265_s17 + $0x20] ss:$16 sps:$4 sm:$0xff]  }
  0xa1   : > { %v5187_v45 = vld [vmem:[%s6265_s17 + $0x224] ss:$16 sps:$4 sm:$0xff]   ;;  %v5190_v47 = vld [vmem:[%s6265_s17 + $0x220] ss:$16 sps:$4 sm:$0xff]  }
  0xa2   : > { %2480 = vmatpush1.bf16.msra.mxu0 %v5171_v34  ;;  %v5191_v48 = vld [vmem:[%s6265_s17 + $0x4] ss:$16 sps:$4 sm:$0xff]   ;;  %v5195_v50 = vld [vmem:[%s6265_s17] ss:$16 sps:$4 sm:$0xff]  }
  0xa3   : > { %2533 = vmatpush1.bf16.msra.mxu1 %v5172_v35  ;;  %2481 = vmatprep.subr.bf16.mxu0 %v5173_v36  ;;  %v5193_v49 = vld [vmem:[%s6265_s17 + $0x204] ss:$16 sps:$4 sm:$0xff]   ;;  %v5196_v51 = vld [vmem:[%s6265_s17 + $0x200] ss:$16 sps:$4 sm:$0xff]  }
  0xa4   : > { %2534 = vmatprep.subr.bf16.mxu1 %v5175_v37  ;;  %v5197_v52 = vld [vmem:[%s6265_s17 + $0x1e4] ss:$16 sps:$4 sm:$0xff]   ;;  %v5201_v54 = vld [vmem:[%s6265_s17 + $0x1e0] ss:$16 sps:$4 sm:$0xff]  }
  0xa5   : > { %v5199_v53 = vld [vmem:[%s6265_s17 + $0x3e4] ss:$16 sps:$4 sm:$0xff]   ;;  %v5202_v55 = vld [vmem:[%s6265_s17 + $0x3e0] ss:$16 sps:$4 sm:$0xff]  }
  0xa6   : > { %2482 = vmatpush1.bf16.msra.mxu0 %v5177_v38  ;;  %v5203_v56 = vld [vmem:[%s6265_s17 + $0x1c4] ss:$16 sps:$4 sm:$0xff]   ;;  %v5207_v58 = vld [vmem:[%s6265_s17 + $0x1c0] ss:$16 sps:$4 sm:$0xff]  }
  0xa7   : > { %2535 = vmatpush1.bf16.msra.mxu1 %v5178_v39  ;;  %2483 = vmatprep.subr.bf16.mxu0 %v5179_v40  ;;  %v5205_v57 = vld [vmem:[%s6265_s17 + $0x3c4] ss:$16 sps:$4 sm:$0xff]   ;;  %v5208_v59 = vld [vmem:[%s6265_s17 + $0x3c0] ss:$16 sps:$4 sm:$0xff]  }
  0xa8   : > { %2536 = vmatprep.subr.bf16.mxu1 %v5181_v41  ;;  %v5209_v60 = vld [vmem:[%s6265_s17 + $0x1a4] ss:$16 sps:$4 sm:$0xff]   ;;  %v5213_v62 = vld [vmem:[%s6265_s17 + $0x1a0] ss:$16 sps:$4 sm:$0xff]  }
  0xa9   : > { %v5211_v61 = vld [vmem:[%s6265_s17 + $0x3a4] ss:$16 sps:$4 sm:$0xff]   ;;  %v5214_v63 = vld [vmem:[%s6265_s17 + $0x3a0] ss:$16 sps:$4 sm:$0xff]  }
  0xaa   : > { %2484 = vmatpush1.bf16.msra.mxu0 %v5183_v42  ;;  %v5215_v0 = vld [vmem:[%s6265_s17 + $0x184] ss:$16 sps:$4 sm:$0xff]   ;;  %v5219_v2 = vld [vmem:[%s6265_s17 + $0x180] ss:$16 sps:$4 sm:$0xff]  }
  0xab   : > { %2537 = vmatpush1.bf16.msra.mxu1 %v5184_v43  ;;  %2485 = vmatprep.subr.bf16.mxu0 %v5185_v44  ;;  %v5217_v1 = vld [vmem:[%s6265_s17 + $0x384] ss:$16 sps:$4 sm:$0xff]   ;;  %v5220_v3 = vld [vmem:[%s6265_s17 + $0x380] ss:$16 sps:$4 sm:$0xff]  }
  0xac   : > { %2538 = vmatprep.subr.bf16.mxu1 %v5187_v45  ;;  %v5221_v4 = vld [vmem:[%s6265_s17 + $0x164] ss:$16 sps:$4 sm:$0xff]   ;;  %v5225_v8 = vld [vmem:[%s6265_s17 + $0x160] ss:$16 sps:$4 sm:$0xff]  }
  0xad   : > { %v6333_v5 = vld [vmem:[%s6263_s30 + $0x4] ss:$40 sps:$4 sm:$0xff]   ;;  %v5226_v9 = vld [vmem:[%s6265_s17 + $0x360] ss:$16 sps:$4 sm:$0xff]  }
  0xae   : > { %2486 = vmatpush1.bf16.msra.mxu0 %v5189_v46  ;;  %v5223_v6 = vld [vmem:[%s6265_s17 + $0x364] ss:$16 sps:$4 sm:$0xff]   ;;  %2505 = vmatprep.mubr.bf16.mxu0 %v6333_v5  ;;  %v5231_v12 = vld [vmem:[%s6265_s17 + $0x140] ss:$16 sps:$4 sm:$0xff]  }
  0xaf   : > { %2539 = vmatpush1.bf16.msra.mxu1 %v5190_v47  ;;  %2487 = vmatprep.subr.bf16.mxu0 %v5191_v48  ;;  %v5250_v7 = vld [vmem:[%s6263_s30 + $0xc] ss:$40 sps:$4 sm:$0xff]   ;;  %v5232_v13 = vld [vmem:[%s6265_s17 + $0x340] ss:$16 sps:$4 sm:$0xff]   ;;  %v5331_v47 = vld [vmem:[%s6263_s30 + $0x5c] ss:$40 sps:$4 sm:$0xff]  }
  0xb0   : > { %2540 = vmatprep.subr.bf16.mxu1 %v5193_v49  ;;  %2558 = vmatprep.mubr.bf16.mxu1 %v5250_v7  ;;  %v5227_v10 = vld [vmem:[%s6265_s17 + $0x144] ss:$16 sps:$4 sm:$0xff]   ;;  %v5237_v16 = vld [vmem:[%s6265_s17 + $0x120] ss:$16 sps:$4 sm:$0xff]  }
  0xb1   : > { %v5229_v11 = vld [vmem:[%s6265_s17 + $0x344] ss:$16 sps:$4 sm:$0xff]   ;;  %v5238_v17 = vld [vmem:[%s6265_s17 + $0x320] ss:$16 sps:$4 sm:$0xff]  }
  0xb2   : > { %2488 = vmatpush1.bf16.msra.mxu0 %v5195_v50  ;;  %v5233_v14 = vld [vmem:[%s6265_s17 + $0x124] ss:$16 sps:$4 sm:$0xff]   ;;  %v5243_v20 = vld [vmem:[%s6265_s17 + $0x100] ss:$16 sps:$4 sm:$0xff]  }
  0xb3   : > { %2541 = vmatpush1.bf16.msra.mxu1 %v5196_v51  ;;  %2489 = vmatprep.subr.bf16.mxu0 %v5197_v52  ;;  %v5235_v15 = vld [vmem:[%s6265_s17 + $0x324] ss:$16 sps:$4 sm:$0xff]   ;;  %v5244_v21 = vld [vmem:[%s6265_s17 + $0x300] ss:$16 sps:$4 sm:$0xff]  }
  0xb4   : > { %2542 = vmatprep.subr.bf16.mxu1 %v5199_v53  ;;  %v5239_v18 = vld [vmem:[%s6265_s17 + $0x104] ss:$16 sps:$4 sm:$0xff]   ;;  %v6355_v24 = vld [vmem:[%s6263_s30] ss:$40 sps:$4 sm:$0xff]   ;;  %v6385_v48 = vld [vmem:[%s6263_s30 + $0x50] ss:$40 sps:$4 sm:$0xff]  }
  0xb5   : > { %v5241_v19 = vld [vmem:[%s6265_s17 + $0x304] ss:$16 sps:$4 sm:$0xff]   ;;  %v5248_v25 = vld [vmem:[%s6263_s30 + $0x8] ss:$40 sps:$4 sm:$0xff]   ;;  %v5334_v49 = vld [vmem:[%s6263_s30 + $0x58] ss:$40 sps:$4 sm:$0xff]  }
  0xb6   : > { %2490 = vmatpush2.bf16.msra.mxu0 %v5201_v54  ;;  %v5253_v22 = vld [vmem:[%s6265_s17 + $0x4e4] ss:$16 sps:$4 sm:$0xff]   ;;  %v5251_v26 = vld [vmem:[%s6265_s17 + $0x4e0] ss:$16 sps:$4 sm:$0xff]  }
  0xb7   : > { %2543 = vmatpush2.bf16.msra.mxu1 %v5202_v55  ;;  %2491 = vmatprep.subr.bf16.mxu0 %v5203_v56  ;;  %v5256_v23 = vld [vmem:[%s6265_s17 + $0x6e4] ss:$16 sps:$4 sm:$0xff]   ;;  %v5254_v27 = vld [vmem:[%s6265_s17 + $0x6e0] ss:$16 sps:$4 sm:$0xff]  }
  0xb8   : > { %2544 = vmatprep.subr.bf16.mxu1 %v5205_v57  ;;  %v5259_v28 = vld [vmem:[%s6265_s17 + $0x4c4] ss:$16 sps:$4 sm:$0xff]   ;;  %v5257_v30 = vld [vmem:[%s6265_s17 + $0x4c0] ss:$16 sps:$4 sm:$0xff]  }
  0xb9   : > { %v5262_v29 = vld [vmem:[%s6265_s17 + $0x6c4] ss:$16 sps:$4 sm:$0xff]   ;;  %v5260_v31 = vld [vmem:[%s6265_s17 + $0x6c0] ss:$16 sps:$4 sm:$0xff]  }
  0xba   : > { %2492 = vmatpush2.bf16.msra.mxu0 %v5207_v58  ;;  %v5265_v32 = vld [vmem:[%s6265_s17 + $0x4a4] ss:$16 sps:$4 sm:$0xff]   ;;  %v5263_v34 = vld [vmem:[%s6265_s17 + $0x4a0] ss:$16 sps:$4 sm:$0xff]  }
  0xbb   : > { %2545 = vmatpush2.bf16.msra.mxu1 %v5208_v59  ;;  %2493 = vmatprep.subr.bf16.mxu0 %v5209_v60  ;;  %v5268_v33 = vld [vmem:[%s6265_s17 + $0x6a4] ss:$16 sps:$4 sm:$0xff]   ;;  %v5266_v35 = vld [vmem:[%s6265_s17 + $0x6a0] ss:$16 sps:$4 sm:$0xff]  }
  0xbc   : > { %2546 = vmatprep.subr.bf16.mxu1 %v5211_v61  ;;  %v5271_v36 = vld [vmem:[%s6265_s17 + $0x484] ss:$16 sps:$4 sm:$0xff]   ;;  %v5269_v38 = vld [vmem:[%s6265_s17 + $0x480] ss:$16 sps:$4 sm:$0xff]  }
  0xbd   : > { %v5274_v37 = vld [vmem:[%s6265_s17 + $0x684] ss:$16 sps:$4 sm:$0xff]   ;;  %v5272_v39 = vld [vmem:[%s6265_s17 + $0x680] ss:$16 sps:$4 sm:$0xff]  }
  0xbe   : > { %2494 = vmatpush2.bf16.msra.mxu0 %v5213_v62  ;;  %v5277_v40 = vld [vmem:[%s6265_s17 + $0x464] ss:$16 sps:$4 sm:$0xff]   ;;  %v5275_v42 = vld [vmem:[%s6265_s17 + $0x460] ss:$16 sps:$4 sm:$0xff]  }
  0xbf   : > { %2547 = vmatpush2.bf16.msra.mxu1 %v5214_v63  ;;  %2495 = vmatprep.subr.bf16.mxu0 %v5215_v0  ;;  %v5280_v41 = vld [vmem:[%s6265_s17 + $0x664] ss:$16 sps:$4 sm:$0xff]   ;;  %v5278_v43 = vld [vmem:[%s6265_s17 + $0x660] ss:$16 sps:$4 sm:$0xff]  }
  0xc0   : > { %2548 = vmatprep.subr.bf16.mxu1 %v5217_v1  ;;  %v5283_v44 = vld [vmem:[%s6265_s17 + $0x444] ss:$16 sps:$4 sm:$0xff]   ;;  %v5281_v50 = vld [vmem:[%s6265_s17 + $0x440] ss:$16 sps:$4 sm:$0xff]  }
  0xc1   : > { %v5286_v45 = vld [vmem:[%s6265_s17 + $0x644] ss:$16 sps:$4 sm:$0xff]   ;;  %v5284_v51 = vld [vmem:[%s6265_s17 + $0x640] ss:$16 sps:$4 sm:$0xff]  }
  0xc2   : > { %2496 = vmatpush2.bf16.msra.mxu0 %v5219_v2  ;;  %v6380_v46 = vld [vmem:[%s6263_s30 + $0x54] ss:$40 sps:$4 sm:$0xff]   ;;  %v5287_v54 = vld [vmem:[%s6265_s17 + $0x420] ss:$16 sps:$4 sm:$0xff]  }
  0xc3   : > { %2549 = vmatpush2.bf16.msra.mxu1 %v5220_v3  ;;  %2497 = vmatprep.subr.bf16.mxu0 %v5221_v4  ;;  %v5289_v52 = vld [vmem:[%s6265_s17 + $0x424] ss:$16 sps:$4 sm:$0xff]   ;;  %v5290_v55 = vld [vmem:[%s6265_s17 + $0x620] ss:$16 sps:$4 sm:$0xff]  }
  0xc4   : > { %2550 = vmatprep.subr.bf16.mxu1 %v5223_v6  ;;  %v5292_v53 = vld [vmem:[%s6265_s17 + $0x624] ss:$16 sps:$4 sm:$0xff]   ;;  %v5293_v58 = vld [vmem:[%s6265_s17 + $0x400] ss:$16 sps:$4 sm:$0xff]  }
  0xc5   : > { %v5295_v56 = vld [vmem:[%s6265_s17 + $0x404] ss:$16 sps:$4 sm:$0xff]   ;;  %v5296_v59 = vld [vmem:[%s6265_s17 + $0x600] ss:$16 sps:$4 sm:$0xff]  }
  0xc6   : > { %2498 = vmatpush2.bf16.msra.mxu0 %v5225_v8  ;;  %v5298_v57 = vld [vmem:[%s6265_s17 + $0x604] ss:$16 sps:$4 sm:$0xff]   ;;  %v5299_v0 = vld [vmem:[%s6265_s17 + $0x5e0] ss:$16 sps:$4 sm:$0xff]  }
  0xc7   : > { %2551 = vmatpush2.bf16.msra.mxu1 %v5226_v9  ;;  %2499 = vmatprep.subr.bf16.mxu0 %v5227_v10  ;;  %v5301_v60 = vld [vmem:[%s6265_s17 + $0x5e4] ss:$16 sps:$4 sm:$0xff]   ;;  %v5302_v1 = vld [vmem:[%s6265_s17 + $0x7e0] ss:$16 sps:$4 sm:$0xff]  }
  0xc8   : > { %2552 = vmatprep.subr.bf16.mxu1 %v5229_v11  ;;  %v6401_v61 = vld [vmem:[%s6263_s30 + $0x14] ss:$40 sps:$4 sm:$0xff]   ;;  %v5305_v4 = vld [vmem:[%s6265_s17 + $0x5c0] ss:$16 sps:$4 sm:$0xff]  }
  0xc9   : > { %v5304_v62 = vld [vmem:[%s6265_s17 + $0x7e4] ss:$16 sps:$4 sm:$0xff]   ;;  %v5308_v6 = vld [vmem:[%s6265_s17 + $0x7c0] ss:$16 sps:$4 sm:$0xff]  }
  0xca   : > { %2500 = vmatpush2.bf16.msra.mxu0 %v5231_v12  ;;  %v5358_v63 = vld [vmem:[%s6263_s30 + $0x1c] ss:$40 sps:$4 sm:$0xff]   ;;  %v5311_v9 = vld [vmem:[%s6265_s17 + $0x5a0] ss:$16 sps:$4 sm:$0xff]  }
  0xcb   : > { %2553 = vmatpush2.bf16.msra.mxu1 %v5232_v13  ;;  %2501 = vmatprep.subr.bf16.mxu0 %v5233_v14  ;;  %v5307_v2 = vld [vmem:[%s6265_s17 + $0x5c4] ss:$16 sps:$4 sm:$0xff]   ;;  %v5314_v10 = vld [vmem:[%s6265_s17 + $0x7a0] ss:$16 sps:$4 sm:$0xff]  }
  0xcc   : > { %2554 = vmatprep.subr.bf16.mxu1 %v5235_v15  ;;  %v5310_v3 = vld [vmem:[%s6265_s17 + $0x7c4] ss:$16 sps:$4 sm:$0xff]   ;;  %v5317_v13 = vld [vmem:[%s6265_s17 + $0x580] ss:$16 sps:$4 sm:$0xff]  }
  0xcd   : > { %v5313_v7 = vld [vmem:[%s6265_s17 + $0x5a4] ss:$16 sps:$4 sm:$0xff]   ;;  %v5320_v14 = vld [vmem:[%s6265_s17 + $0x780] ss:$16 sps:$4 sm:$0xff]  }
  0xce   : > { %2502 = vmatpush2.bf16.msra.mxu0 %v5237_v16  ;;  %v5316_v8 = vld [vmem:[%s6265_s17 + $0x7a4] ss:$16 sps:$4 sm:$0xff]  }
  0xcf   : > { %2555 = vmatpush2.bf16.msra.mxu1 %v5238_v17  ;;  %2503 = vmatprep.subr.bf16.mxu0 %v5239_v18  ;;  %v5319_v11 = vld [vmem:[%s6265_s17 + $0x584] ss:$16 sps:$4 sm:$0xff]   ;;  %v5323_v17 = vld [vmem:[%s6265_s17 + $0x560] ss:$16 sps:$4 sm:$0xff]  }
  0xd0   : > { %2556 = vmatprep.subr.bf16.mxu1 %v5241_v19  ;;  %v5322_v12 = vld [vmem:[%s6265_s17 + $0x784] ss:$16 sps:$4 sm:$0xff]   ;;  %v5326_v18 = vld [vmem:[%s6265_s17 + $0x760] ss:$16 sps:$4 sm:$0xff]  }
  0xd1   : > { %v5325_v15 = vld [vmem:[%s6265_s17 + $0x564] ss:$16 sps:$4 sm:$0xff]  }
  0xd2   : > { %2504 = vmatpush2.bf16.msra.mxu0 %v5243_v20  ;;  %v5328_v16 = vld [vmem:[%s6265_s17 + $0x764] ss:$16 sps:$4 sm:$0xff]  }
  0xd3   : > { %2557 = vmatpush2.bf16.msra.mxu1 %v5244_v21  ;;  %2579 = vmatprep.subr.bf16.mxu0 %v5253_v22  ;;  %v5337_v19 = vld [vmem:[%s6265_s17 + $0x544] ss:$16 sps:$4 sm:$0xff]   ;;  %v5335_v21 = vld [vmem:[%s6265_s17 + $0x540] ss:$16 sps:$4 sm:$0xff]  }
  0xd4   : > { %2632 = vmatprep.subr.bf16.mxu1 %v5256_v23  ;;  %v5340_v20 = vld [vmem:[%s6265_s17 + $0x744] ss:$16 sps:$4 sm:$0xff]   ;;  %v5338_v22 = vld [vmem:[%s6265_s17 + $0x740] ss:$16 sps:$4 sm:$0xff]  }
  0xd5   : > { %2506 = vmatmul.mubr.bf16.vlgmr.msra.gmra.mxu0 %v6355_v24  ;;  %v5343_v23 = vld [vmem:[%s6265_s17 + $0x524] ss:$16 sps:$4 sm:$0xff]  }
  0xd6   : > { %2559 = vmatmul.mubr.bf16.vlgmr.msra.gmra.mxu1 %v5248_v25  ;;  %2580 = vmatpush1.bf16.msra.mxu0 %v5251_v26  ;;  %v5346_v25 = vld [vmem:[%s6265_s17 + $0x724] ss:$16 sps:$4 sm:$0xff]   ;;  %v5341_v26 = vld [vmem:[%s6265_s17 + $0x520] ss:$16 sps:$4 sm:$0xff]  }
  0xd7   : > { %2633 = vmatpush1.bf16.msra.mxu1 %v5254_v27  ;;  %2581 = vmatprep.subr.bf16.mxu0 %v5259_v28  ;;  %v5344_v27 = vld [vmem:[%s6265_s17 + $0x720] ss:$16 sps:$4 sm:$0xff]   ;;  %v5349_v28 = vld [vmem:[%s6265_s17 + $0x504] ss:$16 sps:$4 sm:$0xff]  }
  0xd8   : > { %2634 = vmatprep.subr.bf16.mxu1 %v5262_v29  ;;  %2515 = vmatprep.mubr.bf16.mxu0 %v6380_v46  ;;  %v5352_v29 = vld [vmem:[%s6265_s17 + $0x704] ss:$16 sps:$4 sm:$0xff]  }
  0xd9   : > { %2568 = vmatprep.mubr.bf16.mxu1 %v5331_v47  ;;  %v6457_v47 = vld [vmem:[%s6263_s30 + $0x60] ss:$40 sps:$4 sm:$0xff]  }
  0xda   : > { %2582 = vmatpush1.bf16.msra.mxu0 %v5257_v30  ;;  %v5347_v30 = vld [vmem:[%s6265_s17 + $0x500] ss:$16 sps:$4 sm:$0xff]  }
  0xdb   : > { %2635 = vmatpush1.bf16.msra.mxu1 %v5260_v31  ;;  %2583 = vmatprep.subr.bf16.mxu0 %v5265_v32  ;;  %v5350_v31 = vld [vmem:[%s6265_s17 + $0x700] ss:$16 sps:$4 sm:$0xff]   ;;  %v5361_v32 = vld [vmem:[%s6265_s17 + $0x8e4] ss:$16 sps:$4 sm:$0xff]  }
  0xdc   : > { %2636 = vmatprep.subr.bf16.mxu1 %v5268_v33  ;;  %v5364_v33 = vld [vmem:[%s6265_s17 + $0xec] ss:$16 sps:$4 sm:$0xff]  }
  0xdd   : > { %2516 = vmatmul.mubr.bf16.gmra.mxu0 %v6385_v48 }
  0xde   : > { %2584 = vmatpush1.bf16.msra.mxu0 %v5263_v34  ;;  %2569 = vmatmul.mubr.bf16.gmra.mxu1 %v5334_v49  ;;  %v6439_v34 = vld [vmem:[%s6263_s30 + $0x10] ss:$40 sps:$4 sm:$0xff]  }
  0xdf   : > { %2637 = vmatpush1.bf16.msra.mxu1 %v5266_v35  ;;  %2585 = vmatprep.subr.bf16.mxu0 %v5271_v36  ;;  %v5356_v35 = vld [vmem:[%s6263_s30 + $0x18] ss:$40 sps:$4 sm:$0xff]  }
  0xe0   : > { %2638 = vmatprep.subr.bf16.mxu1 %v5274_v37  ;;  %2611 = vmatprep.mubr.bf16.mxu0 %v6401_v61  ;;  %v5359_v36 = vld [vmem:[%s6265_s17 + $0x8e0] ss:$16 sps:$4 sm:$0xff]   ;;  %v5362_v37 = vld [vmem:[%s6265_s17 + $0xe8] ss:$16 sps:$4 sm:$0xff]  }
  0xe1   : > { %2664 = vmatprep.mubr.bf16.mxu1 %v5358_v63  ;;  %v5374_v49 = vld [vmem:[%s6265_s17 + $0x8a0] ss:$16 sps:$4 sm:$0xff]   ;;  %v5400_v63 = vld [vmem:[%s6265_s17 + $0x4c] ss:$16 sps:$4 sm:$0xff]  }
  0xe2   : > { %2586 = vmatpush1.bf16.msra.mxu0 %v5269_v38  ;;  %v5367_v38 = vld [vmem:[%s6265_s17 + $0x8c4] ss:$16 sps:$4 sm:$0xff]  }
  0xe3   : > { %2639 = vmatpush1.bf16.msra.mxu1 %v5272_v39  ;;  %2587 = vmatprep.subr.bf16.mxu0 %v5277_v40  ;;  %v5370_v39 = vld [vmem:[%s6265_s17 + $0xcc] ss:$16 sps:$4 sm:$0xff]  }
  0xe4   : > { %2640 = vmatprep.subr.bf16.mxu1 %v5280_v41  ;;  %v6447_v40 = vld [vmem:[%s6263_s30 + $0x64] ss:$40 sps:$4 sm:$0xff]  }
  0xe5   : > { %v5380_v41 = vld [vmem:[%s6263_s30 + $0x6c] ss:$40 sps:$4 sm:$0xff]  }
  0xe6   : > { %2588 = vmatpush1.bf16.msra.mxu0 %v5275_v42  ;;  %v5365_v42 = vld [vmem:[%s6265_s17 + $0x8c0] ss:$16 sps:$4 sm:$0xff]  }
  0xe7   : > { %2641 = vmatpush1.bf16.msra.mxu1 %v5278_v43  ;;  %2589 = vmatprep.subr.bf16.mxu0 %v5283_v44  ;;  %v5368_v43 = vld [vmem:[%s6265_s17 + $0xc8] ss:$16 sps:$4 sm:$0xff]   ;;  %v5376_v44 = vld [vmem:[%s6265_s17 + $0x8a4] ss:$16 sps:$4 sm:$0xff]  }
  0xe8   : > { %2642 = vmatprep.subr.bf16.mxu1 %v5286_v45  ;;  %v5379_v45 = vld [vmem:[%s6265_s17 + $0xac] ss:$16 sps:$4 sm:$0xff]  }
  0xea   : > { %2590 = vmatpush1.bf16.msra.mxu0 %v5281_v50  ;;  %v5377_v50 = vld [vmem:[%s6265_s17 + $0xa8] ss:$16 sps:$4 sm:$0xff]  }
  0xeb   : > { %2643 = vmatpush1.bf16.msra.mxu1 %v5284_v51  ;;  %2591 = vmatprep.subr.bf16.mxu0 %v5289_v52  ;;  %v5382_v51 = vld [vmem:[%s6263_s30 + $0x68] ss:$40 sps:$4 sm:$0xff]   ;;  %v5385_v52 = vld [vmem:[%s6265_s17 + $0x884] ss:$16 sps:$4 sm:$0xff]  }
  0xec   : > { %2644 = vmatprep.subr.bf16.mxu1 %v5292_v53  ;;  %v5388_v53 = vld [vmem:[%s6265_s17 + $0x8c] ss:$16 sps:$4 sm:$0xff]  }
  0xee   : > { %2592 = vmatpush1.bf16.msra.mxu0 %v5287_v54  ;;  %v5383_v54 = vld [vmem:[%s6265_s17 + $0x880] ss:$16 sps:$4 sm:$0xff]  }
  0xef   : > { %2645 = vmatpush1.bf16.msra.mxu1 %v5290_v55  ;;  %2593 = vmatprep.subr.bf16.mxu0 %v5295_v56  ;;  %v5386_v55 = vld [vmem:[%s6265_s17 + $0x88] ss:$16 sps:$4 sm:$0xff]   ;;  %v6468_v56 = vld [vmem:[%s6263_s30 + $0x24] ss:$40 sps:$4 sm:$0xff]  }
  0xf0   : > { %2646 = vmatprep.subr.bf16.mxu1 %v5298_v57  ;;  %v5391_v57 = vld [vmem:[%s6265_s17 + $0x864] ss:$16 sps:$4 sm:$0xff]  }
  0xf2   : > { %2594 = vmatpush1.bf16.msra.mxu0 %v5293_v58  ;;  %v5394_v58 = vld [vmem:[%s6265_s17 + $0x6c] ss:$16 sps:$4 sm:$0xff]  }
  0xf3   : > { %2647 = vmatpush1.bf16.msra.mxu1 %v5296_v59  ;;  %2595 = vmatprep.subr.bf16.mxu0 %v5301_v60  ;;  %v5389_v59 = vld [vmem:[%s6265_s17 + $0x860] ss:$16 sps:$4 sm:$0xff]   ;;  %v5392_v60 = vld [vmem:[%s6265_s17 + $0x68] ss:$16 sps:$4 sm:$0xff]  }
  0xf4   : > { %2648 = vmatprep.subr.bf16.mxu1 %v5304_v62  ;;  %v5397_v62 = vld [vmem:[%s6265_s17 + $0x844] ss:$16 sps:$4 sm:$0xff]  }
  0xf6   : > { %2596 = vmatpush2.bf16.msra.mxu0 %v5299_v0  ;;  %v5395_v0 = vld [vmem:[%s6265_s17 + $0x840] ss:$16 sps:$4 sm:$0xff]  }
  0xf7   : > { %2649 = vmatpush2.bf16.msra.mxu1 %v5302_v1  ;;  %2597 = vmatprep.subr.bf16.mxu0 %v5307_v2  ;;  %v5398_v1 = vld [vmem:[%s6265_s17 + $0x48] ss:$16 sps:$4 sm:$0xff]   ;;  %v5406_v2 = vld [vmem:[%s6265_s17 + $0x2c] ss:$16 sps:$4 sm:$0xff]  }
  0xf8   : > { %2650 = vmatprep.subr.bf16.mxu1 %v5310_v3  ;;  %v5401_v3 = vld [vmem:[%s6265_s17 + $0x820] ss:$16 sps:$4 sm:$0xff]  }
  0xfa   : > { %2598 = vmatpush2.bf16.msra.mxu0 %v5305_v4  ;;  %v5404_v4 = vld [vmem:[%s6265_s17 + $0x28] ss:$16 sps:$4 sm:$0xff]  }
  0xfb   : > { %2651 = vmatpush2.bf16.msra.mxu1 %v5308_v6  ;;  %2599 = vmatprep.subr.bf16.mxu0 %v5313_v7  ;;  %v5409_v6 = vld [vmem:[%s6265_s17 + $0x804] ss:$16 sps:$4 sm:$0xff]   ;;  %v5412_v7 = vld [vmem:[%s6265_s17 + $0xc] ss:$16 sps:$4 sm:$0xff]  }
  0xfc   : > { %2652 = vmatprep.subr.bf16.mxu1 %v5316_v8  ;;  %v5407_v8 = vld [vmem:[%s6265_s17 + $0x800] ss:$16 sps:$4 sm:$0xff]  }
  0xfe   : > { %2600 = vmatpush2.bf16.msra.mxu0 %v5311_v9  ;;  %v5410_v9 = vld [vmem:[%s6265_s17 + $0x8] ss:$16 sps:$4 sm:$0xff]  }
  0xff   : > { %2653 = vmatpush2.bf16.msra.mxu1 %v5314_v10  ;;  %2601 = vmatprep.subr.bf16.mxu0 %v5319_v11  ;;  %v5415_v10 = vld [vmem:[%s6265_s17 + $0x9e4] ss:$16 sps:$4 sm:$0xff]   ;;  %v5418_v11 = vld [vmem:[%s6265_s17 + $0x1ec] ss:$16 sps:$4 sm:$0xff]  }
 0x100   : > { %2654 = vmatprep.subr.bf16.mxu1 %v5322_v12  ;;  %v5413_v12 = vld [vmem:[%s6265_s17 + $0x9e0] ss:$16 sps:$4 sm:$0xff]  }
 0x102   : > { %2602 = vmatpush2.bf16.msra.mxu0 %v5317_v13  ;;  %v5416_v13 = vld [vmem:[%s6265_s17 + $0x1e8] ss:$16 sps:$4 sm:$0xff]  }
 0x103   : > { %2655 = vmatpush2.bf16.msra.mxu1 %v5320_v14  ;;  %2603 = vmatprep.subr.bf16.mxu0 %v5325_v15  ;;  %v5421_v14 = vld [vmem:[%s6265_s17 + $0x9c4] ss:$16 sps:$4 sm:$0xff]   ;;  %v5424_v15 = vld [vmem:[%s6265_s17 + $0x1cc] ss:$16 sps:$4 sm:$0xff]  }
 0x104   : > { %2656 = vmatprep.subr.bf16.mxu1 %v5328_v16  ;;  %v5419_v16 = vld [vmem:[%s6265_s17 + $0x9c0] ss:$16 sps:$4 sm:$0xff]  }
 0x106   : > { %2604 = vmatpush2.bf16.msra.mxu0 %v5323_v17  ;;  %v5422_v17 = vld [vmem:[%s6265_s17 + $0x1c8] ss:$16 sps:$4 sm:$0xff]  }
 0x107   : > { %2657 = vmatpush2.bf16.msra.mxu1 %v5326_v18  ;;  %2605 = vmatprep.subr.bf16.mxu0 %v5337_v19  ;;  %v5427_v18 = vld [vmem:[%s6265_s17 + $0x9a4] ss:$16 sps:$4 sm:$0xff]   ;;  %v5430_v19 = vld [vmem:[%s6265_s17 + $0x1ac] ss:$16 sps:$4 sm:$0xff]  }
 0x108   : > { %2658 = vmatprep.subr.bf16.mxu1 %v5340_v20  ;;  %v5425_v20 = vld [vmem:[%s6265_s17 + $0x9a0] ss:$16 sps:$4 sm:$0xff]  }
 0x10a   : > { %2606 = vmatpush2.bf16.msra.mxu0 %v5335_v21  ;;  %v5428_v21 = vld [vmem:[%s6265_s17 + $0x1a8] ss:$16 sps:$4 sm:$0xff]  }
 0x10b   : > { %2659 = vmatpush2.bf16.msra.mxu1 %v5338_v22  ;;  %2607 = vmatprep.subr.bf16.mxu0 %v5343_v23  ;;  %v5433_v22 = vld [vmem:[%s6265_s17 + $0x984] ss:$16 sps:$4 sm:$0xff]   ;;  %v5436_v23 = vld [vmem:[%s6265_s17 + $0x18c] ss:$16 sps:$4 sm:$0xff]  }
 0x10c   : > { %2660 = vmatprep.subr.bf16.mxu1 %v5346_v25  ;;  %v5431_v25 = vld [vmem:[%s6265_s17 + $0x980] ss:$16 sps:$4 sm:$0xff]  }
 0x10e   : > { %2608 = vmatpush2.bf16.msra.mxu0 %v5341_v26  ;;  %v5434_v26 = vld [vmem:[%s6265_s17 + $0x188] ss:$16 sps:$4 sm:$0xff]  }
 0x10f   : > { %2661 = vmatpush2.bf16.msra.mxu1 %v5344_v27  ;;  %2609 = vmatprep.subr.bf16.mxu0 %v5349_v28  ;;  %v5439_v27 = vld [vmem:[%s6265_s17 + $0x964] ss:$16 sps:$4 sm:$0xff]   ;;  %v5442_v28 = vld [vmem:[%s6265_s17 + $0x16c] ss:$16 sps:$4 sm:$0xff]  }
 0x110   : > { %2662 = vmatprep.subr.bf16.mxu1 %v5352_v29  ;;  %v5437_v29 = vld [vmem:[%s6265_s17 + $0x960] ss:$16 sps:$4 sm:$0xff]  }
 0x112   : > { %2610 = vmatpush2.bf16.msra.mxu0 %v5347_v30  ;;  %v5440_v30 = vld [vmem:[%s6265_s17 + $0x168] ss:$16 sps:$4 sm:$0xff]  }
 0x113   : > { %2663 = vmatpush2.bf16.msra.mxu1 %v5350_v31  ;;  %2685 = vmatprep.subr.bf16.mxu0 %v5361_v32  ;;  %v5445_v31 = vld [vmem:[%s6265_s17 + $0x944] ss:$16 sps:$4 sm:$0xff]   ;;  %v5448_v32 = vld [vmem:[%s6265_s17 + $0x14c] ss:$16 sps:$4 sm:$0xff]  }
 0x114   : > { %2738 = vmatprep.subr.bf16.mxu1 %v5364_v33  ;;  %v5443_v33 = vld [vmem:[%s6265_s17 + $0x940] ss:$16 sps:$4 sm:$0xff]  }
 0x115   : > { %2612 = vmatmul.mubr.bf16.vlgmr.msra.gmra.mxu0 %v6439_v34 }
 0x116   : > { %2665 = vmatmul.mubr.bf16.vlgmr.msra.gmra.mxu1 %v5356_v35  ;;  %2686 = vmatpush1.bf16.msra.mxu0 %v5359_v36  ;;  %v5446_v35 = vld [vmem:[%s6265_s17 + $0x148] ss:$16 sps:$4 sm:$0xff]   ;;  %v5451_v36 = vld [vmem:[%s6265_s17 + $0x924] ss:$16 sps:$4 sm:$0xff]  }
 0x117   : > { %2739 = vmatpush1.bf16.msra.mxu1 %v5362_v37  ;;  %2687 = vmatprep.subr.bf16.mxu0 %v5367_v38  ;;  %v5454_v37 = vld [vmem:[%s6265_s17 + $0x12c] ss:$16 sps:$4 sm:$0xff]   ;;  %v5449_v38 = vld [vmem:[%s6265_s17 + $0x920] ss:$16 sps:$4 sm:$0xff]  }
 0x118   : > { %2740 = vmatprep.subr.bf16.mxu1 %v5370_v39  ;;  %2621 = vmatprep.mubr.bf16.mxu0 %v6447_v40  ;;  %v5452_v39 = vld [vmem:[%s6265_s17 + $0x128] ss:$16 sps:$4 sm:$0xff]  }
 0x119   : > { %2674 = vmatprep.mubr.bf16.mxu1 %v5380_v41  ;;  %v5457_v41 = vld [vmem:[%s6265_s17 + $0x904] ss:$16 sps:$4 sm:$0xff]  }
 0x11a   : > { %2688 = vmatpush1.bf16.msra.mxu0 %v5365_v42  ;;  %v5460_v42 = vld [vmem:[%s6265_s17 + $0x10c] ss:$16 sps:$4 sm:$0xff]  }
 0x11b   : > { %2741 = vmatpush1.bf16.msra.mxu1 %v5368_v43  ;;  %2689 = vmatprep.subr.bf16.mxu0 %v5376_v44  ;;  %v5455_v43 = vld [vmem:[%s6265_s17 + $0x900] ss:$16 sps:$4 sm:$0xff]   ;;  %v5458_v44 = vld [vmem:[%s6265_s17 + $0x108] ss:$16 sps:$4 sm:$0xff]  }
 0x11c   : > { %2742 = vmatprep.subr.bf16.mxu1 %v5379_v45  ;;  %v5466_v45 = vld [vmem:[%s6265_s17 + $0x2ec] ss:$16 sps:$4 sm:$0xff]  }
 0x11d   : > { %2622 = vmatmul.mubr.bf16.gmra.mxu0 %v6457_v47 }
 0x11e   : > { %2675 = vmatmul.mubr.bf16.gmra.mxu1 %v5382_v51  ;;  %2690 = vmatpush1.bf16.msra.mxu0 %v5374_v49  ;;  %v5469_v49 = vld [vmem:[%s6265_s17 + $0x4ec] ss:$16 sps:$4 sm:$0xff]   ;;  %v5464_v51 = vld [vmem:[%s6265_s17 + $0x2e8] ss:$16 sps:$4 sm:$0xff]  }
 0x11f   : > { %2743 = vmatpush1.bf16.msra.mxu1 %v5377_v50  ;;  %2691 = vmatprep.subr.bf16.mxu0 %v5385_v52  ;;  %v6523_v50 = vld [vmem:[%s6263_s30 + $0x20] ss:$40 sps:$4 sm:$0xff]  }
 0x120   : > { %2744 = vmatprep.subr.bf16.mxu1 %v5388_v53  ;;  %2717 = vmatprep.mubr.bf16.mxu0 %v6468_v56  ;;  %v5467_v52 = vld [vmem:[%s6265_s17 + $0x4e8] ss:$16 sps:$4 sm:$0xff]   ;;  %v5472_v53 = vld [vmem:[%s6265_s17 + $0x2cc] ss:$16 sps:$4 sm:$0xff]  }
 0x121   : > { %2770 = vmatprep.mubr.bf16.mxu1 %v6333_v5  ;;  %v5403_v5 = vld [vmem:[%s6265_s17 + $0x824] ss:$16 sps:$4 sm:$0xff]  }
 0x122   : > { %2692 = vmatpush1.bf16.msra.mxu0 %v5383_v54  ;;  %v5475_v54 = vld [vmem:[%s6265_s17 + $0x4cc] ss:$16 sps:$4 sm:$0xff]  }
 0x123   : > { %2745 = vmatpush1.bf16.msra.mxu1 %v5386_v55  ;;  %2693 = vmatprep.subr.bf16.mxu0 %v5391_v57  ;;  %v6530_v55 = vld [vmem:[%s6263_s30 + $0x74] ss:$40 sps:$4 sm:$0xff]   ;;  %v5470_v57 = vld [vmem:[%s6265_s17 + $0x2c8] ss:$16 sps:$4 sm:$0xff]  }
 0x124   : > { %2746 = vmatprep.subr.bf16.mxu1 %v5394_v58  ;;  %v5473_v58 = vld [vmem:[%s6265_s17 + $0x4c8] ss:$16 sps:$4 sm:$0xff]  }
 0x126   : > { %2694 = vmatpush1.bf16.msra.mxu0 %v5389_v59  ;;  %v5481_v59 = vld [vmem:[%s6265_s17 + $0x2ac] ss:$16 sps:$4 sm:$0xff]  }
 0x127   : > { %2747 = vmatpush1.bf16.msra.mxu1 %v5392_v60  ;;  %2695 = vmatprep.subr.bf16.mxu0 %v5397_v62  ;;  %v5484_v60 = vld [vmem:[%s6265_s17 + $0x4ac] ss:$16 sps:$4 sm:$0xff]   ;;  %v6540_v62 = vld [vmem:[%s6263_s30 + $0x70] ss:$40 sps:$4 sm:$0xff]  }
 0x128   : > { %2748 = vmatprep.subr.bf16.mxu1 %v5400_v63  ;;  %v5482_v63 = vld [vmem:[%s6265_s17 + $0x4a8] ss:$16 sps:$4 sm:$0xff]  }
 0x12a   : > { %2696 = vmatpush1.bf16.msra.mxu0 %v5395_v0  ;;  %v5487_v0 = vld [vmem:[%s6265_s17 + $0x28c] ss:$16 sps:$4 sm:$0xff]  }
 0x12b   : > { %2749 = vmatpush1.bf16.msra.mxu1 %v5398_v1  ;;  %2697 = vmatprep.subr.bf16.mxu0 %v5403_v5  ;;  %v5490_v1 = vld [vmem:[%s6265_s17 + $0x48c] ss:$16 sps:$4 sm:$0xff]   ;;  %v5485_v5 = vld [vmem:[%s6265_s17 + $0x288] ss:$16 sps:$4 sm:$0xff]  }
 0x12c   : > { %2750 = vmatprep.subr.bf16.mxu1 %v5406_v2  ;;  %v5488_v2 = vld [vmem:[%s6265_s17 + $0x488] ss:$16 sps:$4 sm:$0xff]  }
 0x12e   : > { %2698 = vmatpush1.bf16.msra.mxu0 %v5401_v3  ;;  %v5496_v3 = vld [vmem:[%s6265_s17 + $0x46c] ss:$16 sps:$4 sm:$0xff]  }
 0x12f   : > { %2751 = vmatpush1.bf16.msra.mxu1 %v5404_v4  ;;  %2699 = vmatprep.subr.bf16.mxu0 %v5409_v6  ;;  %v5659_v4 = vld [vmem:[%s6263_s30 + $0xc] ss:$40 sps:$4 sm:$0xff]   ;;  %v5491_v6 = vld [vmem:[%s6265_s17 + $0x268] ss:$16 sps:$4 sm:$0xff]  }
 0x130   : > { %2752 = vmatprep.subr.bf16.mxu1 %v5412_v7  ;;  %v5494_v7 = vld [vmem:[%s6265_s17 + $0x468] ss:$16 sps:$4 sm:$0xff]  }
 0x132   : > { %2700 = vmatpush1.bf16.msra.mxu0 %v5407_v8  ;;  %v5502_v8 = vld [vmem:[%s6265_s17 + $0x44c] ss:$16 sps:$4 sm:$0xff]  }
 0x133   : > { %2753 = vmatpush1.bf16.msra.mxu1 %v5410_v9  ;;  %2701 = vmatprep.subr.bf16.mxu0 %v5415_v10  ;;  %v5497_v9 = vld [vmem:[%s6265_s17 + $0x248] ss:$16 sps:$4 sm:$0xff]  }
 0x134   : > { %2754 = vmatprep.subr.bf16.mxu1 %v5418_v11  ;;  %v5500_v10 = vld [vmem:[%s6265_s17 + $0x448] ss:$16 sps:$4 sm:$0xff]   ;;  %v5508_v11 = vld [vmem:[%s6265_s17 + $0x42c] ss:$16 sps:$4 sm:$0xff]  }
 0x136   : > { %2702 = vmatpush2.bf16.msra.mxu0 %v5413_v12  ;;  %v5503_v12 = vld [vmem:[%s6265_s17 + $0x228] ss:$16 sps:$4 sm:$0xff]  }
 0x137   : > { %2755 = vmatpush2.bf16.msra.mxu1 %v5416_v13  ;;  %2703 = vmatprep.subr.bf16.mxu0 %v5421_v14  ;;  %v5506_v13 = vld [vmem:[%s6265_s17 + $0x428] ss:$16 sps:$4 sm:$0xff]   ;;  %v5511_v14 = vld [vmem:[%s6265_s17 + $0x20c] ss:$16 sps:$4 sm:$0xff]  }
 0x138   : > { %2756 = vmatprep.subr.bf16.mxu1 %v5424_v15  ;;  %v5514_v15 = vld [vmem:[%s6265_s17 + $0x40c] ss:$16 sps:$4 sm:$0xff]  }
 0x13a   : > { %2704 = vmatpush2.bf16.msra.mxu0 %v5419_v16  ;;  %v5509_v16 = vld [vmem:[%s6265_s17 + $0x208] ss:$16 sps:$4 sm:$0xff]  }
 0x13b   : > { %2757 = vmatpush2.bf16.msra.mxu1 %v5422_v17  ;;  %2705 = vmatprep.subr.bf16.mxu0 %v5427_v18  ;;  %v5512_v17 = vld [vmem:[%s6265_s17 + $0x408] ss:$16 sps:$4 sm:$0xff]   ;;  %v5517_v18 = vld [vmem:[%s6265_s17 + $0x3ec] ss:$16 sps:$4 sm:$0xff]  }
 0x13c   : > { %2758 = vmatprep.subr.bf16.mxu1 %v5430_v19  ;;  %v5520_v19 = vld [vmem:[%s6265_s17 + $0x5ec] ss:$16 sps:$4 sm:$0xff]  }
 0x13e   : > { %2706 = vmatpush2.bf16.msra.mxu0 %v5425_v20  ;;  %v5515_v20 = vld [vmem:[%s6265_s17 + $0x3e8] ss:$16 sps:$4 sm:$0xff]  }
 0x13f   : > { %2759 = vmatpush2.bf16.msra.mxu1 %v5428_v21  ;;  %2707 = vmatprep.subr.bf16.mxu0 %v5433_v22  ;;  %v5518_v21 = vld [vmem:[%s6265_s17 + $0x5e8] ss:$16 sps:$4 sm:$0xff]   ;;  %v5523_v22 = vld [vmem:[%s6265_s17 + $0x3cc] ss:$16 sps:$4 sm:$0xff]  }
 0x140   : > { %2760 = vmatprep.subr.bf16.mxu1 %v5436_v23  ;;  %v5526_v23 = vld [vmem:[%s6265_s17 + $0x5cc] ss:$16 sps:$4 sm:$0xff]  }
 0x142   : > { %2708 = vmatpush2.bf16.msra.mxu0 %v5431_v25  ;;  %v5521_v25 = vld [vmem:[%s6265_s17 + $0x3c8] ss:$16 sps:$4 sm:$0xff]  }
 0x143   : > { %2761 = vmatpush2.bf16.msra.mxu1 %v5434_v26  ;;  %2709 = vmatprep.subr.bf16.mxu0 %v5439_v27  ;;  %v5524_v26 = vld [vmem:[%s6265_s17 + $0x5c8] ss:$16 sps:$4 sm:$0xff]   ;;  %v5529_v27 = vld [vmem:[%s6265_s17 + $0x3ac] ss:$16 sps:$4 sm:$0xff]  }
 0x144   : > { %2762 = vmatprep.subr.bf16.mxu1 %v5442_v28  ;;  %v5532_v28 = vld [vmem:[%s6265_s17 + $0x5ac] ss:$16 sps:$4 sm:$0xff]  }
 0x146   : > { %2710 = vmatpush2.bf16.msra.mxu0 %v5437_v29  ;;  %v5527_v29 = vld [vmem:[%s6265_s17 + $0x3a8] ss:$16 sps:$4 sm:$0xff]  }
 0x147   : > { %2763 = vmatpush2.bf16.msra.mxu1 %v5440_v30  ;;  %2711 = vmatprep.subr.bf16.mxu0 %v5445_v31  ;;  %v5530_v30 = vld [vmem:[%s6265_s17 + $0x5a8] ss:$16 sps:$4 sm:$0xff]   ;;  %v5535_v31 = vld [vmem:[%s6265_s17 + $0x38c] ss:$16 sps:$4 sm:$0xff]  }
 0x148   : > { %2764 = vmatprep.subr.bf16.mxu1 %v5448_v32  ;;  %v5538_v32 = vld [vmem:[%s6265_s17 + $0x58c] ss:$16 sps:$4 sm:$0xff]  }
 0x14a   : > { %2712 = vmatpush2.bf16.msra.mxu0 %v5443_v33  ;;  %v5533_v33 = vld [vmem:[%s6265_s17 + $0x388] ss:$16 sps:$4 sm:$0xff]  }
 0x14b   : > { %2765 = vmatpush2.bf16.msra.mxu1 %v5446_v35  ;;  %2713 = vmatprep.subr.bf16.mxu0 %v5451_v36  ;;  %v5536_v35 = vld [vmem:[%s6265_s17 + $0x588] ss:$16 sps:$4 sm:$0xff]   ;;  %v5541_v36 = vld [vmem:[%s6265_s17 + $0x36c] ss:$16 sps:$4 sm:$0xff]  }
 0x14c   : > { %2766 = vmatprep.subr.bf16.mxu1 %v5454_v37  ;;  %v5544_v37 = vld [vmem:[%s6265_s17 + $0x56c] ss:$16 sps:$4 sm:$0xff]  }
 0x14e   : > { %2714 = vmatpush2.bf16.msra.mxu0 %v5449_v38  ;;  %v5539_v38 = vld [vmem:[%s6265_s17 + $0x368] ss:$16 sps:$4 sm:$0xff]  }
 0x14f   : > { %2767 = vmatpush2.bf16.msra.mxu1 %v5452_v39  ;;  %2715 = vmatprep.subr.bf16.mxu0 %v5457_v41  ;;  %v5542_v39 = vld [vmem:[%s6265_s17 + $0x568] ss:$16 sps:$4 sm:$0xff]   ;;  %v5547_v41 = vld [vmem:[%s6265_s17 + $0x34c] ss:$16 sps:$4 sm:$0xff]  }
 0x150   : > { %2768 = vmatprep.subr.bf16.mxu1 %v5460_v42  ;;  %v5550_v42 = vld [vmem:[%s6265_s17 + $0x54c] ss:$16 sps:$4 sm:$0xff]  }
 0x152   : > { %2716 = vmatpush2.bf16.msra.mxu0 %v5455_v43  ;;  %v5545_v43 = vld [vmem:[%s6265_s17 + $0x348] ss:$16 sps:$4 sm:$0xff]  }
 0x153   : > { %2769 = vmatpush2.bf16.msra.mxu1 %v5458_v44  ;;  %2791 = vmatprep.subr.bf16.mxu0 %v5466_v45  ;;  %v5548_v44 = vld [vmem:[%s6265_s17 + $0x548] ss:$16 sps:$4 sm:$0xff]   ;;  %v5553_v45 = vld [vmem:[%s6265_s17 + $0x32c] ss:$16 sps:$4 sm:$0xff]  }
 0x154   : > { %2844 = vmatprep.subr.bf16.mxu1 %v5469_v49  ;;  %v5556_v49 = vld [vmem:[%s6265_s17 + $0x52c] ss:$16 sps:$4 sm:$0xff]  }
 0x155   : > { %2718 = vmatmul.mubr.bf16.vlgmr.msra.gmra.mxu0 %v6523_v50 }
 0x156   : > { %2771 = vmatmul.mubr.bf16.vlgmr.msra.gmra.mxu1 %v6355_v24  ;;  %2792 = vmatpush1.bf16.msra.mxu0 %v5464_v51  ;;  %v5479_v24 = vld [vmem:[%s6265_s17 + $0x2a8] ss:$16 sps:$4 sm:$0xff]  }
 0x157   : > { %2845 = vmatpush1.bf16.msra.mxu1 %v5467_v52  ;;  %2793 = vmatprep.subr.bf16.mxu0 %v5472_v53  ;;  %v5551_v51 = vld [vmem:[%s6265_s17 + $0x328] ss:$16 sps:$4 sm:$0xff]   ;;  %v5559_v53 = vld [vmem:[%s6265_s17 + $0x30c] ss:$16 sps:$4 sm:$0xff]  }
 0x158   : > { %2846 = vmatprep.subr.bf16.mxu1 %v5475_v54  ;;  %2727 = vmatprep.mubr.bf16.mxu0 %v6530_v55  ;;  %v5554_v52 = vld [vmem:[%s6265_s17 + $0x528] ss:$16 sps:$4 sm:$0xff]   ;;  %v5562_v54 = vld [vmem:[%s6265_s17 + $0x50c] ss:$16 sps:$4 sm:$0xff]  }
 0x159   : > { %2780 = vmatprep.mubr.bf16.mxu1 %v6380_v46  ;;  %v5493_v46 = vld [vmem:[%s6265_s17 + $0x26c] ss:$16 sps:$4 sm:$0xff]  }
 0x15a   : > { %2794 = vmatpush1.bf16.msra.mxu0 %v5470_v57  ;;  %v5557_v57 = vld [vmem:[%s6265_s17 + $0x308] ss:$16 sps:$4 sm:$0xff]  }
 0x15b   : > { %2847 = vmatpush1.bf16.msra.mxu1 %v5473_v58  ;;  %2795 = vmatprep.subr.bf16.mxu0 %v5481_v59  ;;  %v5560_v58 = vld [vmem:[%s6265_s17 + $0x508] ss:$16 sps:$4 sm:$0xff]   ;;  %v5565_v59 = vld [vmem:[%s6265_s17 + $0x6ec] ss:$16 sps:$4 sm:$0xff]  }
 0x15c   : > { %2848 = vmatprep.subr.bf16.mxu1 %v5484_v60  ;;  %v5568_v60 = vld [vmem:[%s6265_s17 + $0x8ec] ss:$16 sps:$4 sm:$0xff]  }
 0x15d   : > { %2728 = vmatmul.mubr.bf16.gmra.mxu0 %v6540_v62 }
 0x15e   : > { %2781 = vmatmul.mubr.bf16.gmra.mxu1 %v6385_v48  ;;  %2796 = vmatpush1.bf16.msra.mxu0 %v5479_v24  ;;  %v5499_v48 = vld [vmem:[%s6265_s17 + $0x24c] ss:$16 sps:$4 sm:$0xff]   ;;  %v5563_v24 = vld [vmem:[%s6265_s17 + $0x6e8] ss:$16 sps:$4 sm:$0xff]  }
 0x15f   : > { %2849 = vmatpush1.bf16.msra.mxu1 %v5482_v63  ;;  %2797 = vmatprep.subr.bf16.mxu0 %v5487_v0  ;;  %v5566_v63 = vld [vmem:[%s6265_s17 + $0x8e8] ss:$16 sps:$4 sm:$0xff]   ;;  %v5571_v0 = vld [vmem:[%s6265_s17 + $0x6cc] ss:$16 sps:$4 sm:$0xff]  }
 0x160   : > { %2850 = vmatprep.subr.bf16.mxu1 %v5490_v1  ;;  %2823 = vmatprep.mubr.bf16.mxu0 %v5659_v4  ;;  %v5574_v1 = vld [vmem:[%s6265_s17 + $0x8cc] ss:$16 sps:$4 sm:$0xff]   ;;  %v5569_v4 = vld [vmem:[%s6265_s17 + $0x6c8] ss:$16 sps:$4 sm:$0xff]  }
 0x161   : > { %2876 = vmatprep.mubr.bf16.mxu1 %v6401_v61  ;;  %v5505_v61 = vld [vmem:[%s6265_s17 + $0x22c] ss:$16 sps:$4 sm:$0xff]  }
 0x162   : > { %2798 = vmatpush1.bf16.msra.mxu0 %v5485_v5 }
 0x163   : > { %2851 = vmatpush1.bf16.msra.mxu1 %v5488_v2  ;;  %2799 = vmatprep.subr.bf16.mxu0 %v5493_v46  ;;  %v5660_v46 = vld [vmem:[%s6263_s30 + $0x8] ss:$40 sps:$4 sm:$0xff]  }
 0x164   : > { %2852 = vmatprep.subr.bf16.mxu1 %v5496_v3 }
 0x166   : > { %2800 = vmatpush1.bf16.msra.mxu0 %v5491_v6  ;;  %v5572_v6 = vld [vmem:[%s6265_s17 + $0x8c8] ss:$16 sps:$4 sm:$0xff]  }
 0x167   : > { %2853 = vmatpush1.bf16.msra.mxu1 %v5494_v7  ;;  %2801 = vmatprep.subr.bf16.mxu0 %v5499_v48 }
 0x168   : > { %2854 = vmatprep.subr.bf16.mxu1 %v5502_v8  ;;  %v5577_v8 = vld [vmem:[%s6265_s17 + $0x6ac] ss:$16 sps:$4 sm:$0xff]  }
 0x16a   : > { %2802 = vmatpush1.bf16.msra.mxu0 %v5497_v9  ;;  %v5580_v9 = vld [vmem:[%s6265_s17 + $0x8ac] ss:$16 sps:$4 sm:$0xff]  }
 0x16b   : > { %2855 = vmatpush1.bf16.msra.mxu1 %v5500_v10  ;;  %2803 = vmatprep.subr.bf16.mxu0 %v5505_v61  ;;  %v5661_v61 = vld [vmem:[%s6263_s30 + $0x5c] ss:$40 sps:$4 sm:$0xff]  }
 0x16c   : > { %2856 = vmatprep.subr.bf16.mxu1 %v5508_v11 }
 0x16e   : > { %2804 = vmatpush1.bf16.msra.mxu0 %v5503_v12 }
 0x16f   : > { %2857 = vmatpush1.bf16.msra.mxu1 %v5506_v13  ;;  %2805 = vmatprep.subr.bf16.mxu0 %v5511_v14  ;;  %v5575_v13 = vld [vmem:[%s6265_s17 + $0x6a8] ss:$16 sps:$4 sm:$0xff]  }
 0x170   : > { %2858 = vmatprep.subr.bf16.mxu1 %v5514_v15  ;;  %v5578_v14 = vld [vmem:[%s6265_s17 + $0x8a8] ss:$16 sps:$4 sm:$0xff]  }
 0x172   : > { %2806 = vmatpush1.bf16.msra.mxu0 %v5509_v16 }
 0x173   : > { %2859 = vmatpush1.bf16.msra.mxu1 %v5512_v17  ;;  %2807 = vmatprep.subr.bf16.mxu0 %v5517_v18  ;;  %v5583_v17 = vld [vmem:[%s6265_s17 + $0x68c] ss:$16 sps:$4 sm:$0xff]  }
 0x174   : > { %2860 = vmatprep.subr.bf16.mxu1 %v5520_v19  ;;  %v5586_v18 = vld [vmem:[%s6265_s17 + $0x88c] ss:$16 sps:$4 sm:$0xff]   ;;  %v5662_v19 = vld [vmem:[%s6263_s30 + $0x58] ss:$40 sps:$4 sm:$0xff]  }
 0x176   : > { %2808 = vmatpush2.bf16.msra.mxu0 %v5515_v20  ;;  %v5581_v20 = vld [vmem:[%s6265_s17 + $0x688] ss:$16 sps:$4 sm:$0xff]  }
 0x177   : > { %2861 = vmatpush2.bf16.msra.mxu1 %v5518_v21  ;;  %2809 = vmatprep.subr.bf16.mxu0 %v5523_v22  ;;  %v5584_v21 = vld [vmem:[%s6265_s17 + $0x888] ss:$16 sps:$4 sm:$0xff]   ;;  %v5589_v22 = vld [vmem:[%s6265_s17 + $0x66c] ss:$16 sps:$4 sm:$0xff]  }
 0x178   : > { %2862 = vmatprep.subr.bf16.mxu1 %v5526_v23  ;;  %v5592_v23 = vld [vmem:[%s6265_s17 + $0x86c] ss:$16 sps:$4 sm:$0xff]  }
 0x17a   : > { %2810 = vmatpush2.bf16.msra.mxu0 %v5521_v25  ;;  %v5663_v25 = vld [vmem:[%s6263_s30 + $0x1c] ss:$40 sps:$4 sm:$0xff]  }
 0x17b   : > { %2863 = vmatpush2.bf16.msra.mxu1 %v5524_v26  ;;  %2811 = vmatprep.subr.bf16.mxu0 %v5529_v27  ;;  %v5590_v26 = vld [vmem:[%s6265_s17 + $0x868] ss:$16 sps:$4 sm:$0xff]   ;;  %v5595_v27 = vld [vmem:[%s6265_s17 + $0x64c] ss:$16 sps:$4 sm:$0xff]  }
 0x17c   : > { %2864 = vmatprep.subr.bf16.mxu1 %v5532_v28  ;;  %v5598_v28 = vld [vmem:[%s6265_s17 + $0x84c] ss:$16 sps:$4 sm:$0xff]  }
 0x17e   : > { %2812 = vmatpush2.bf16.msra.mxu0 %v5527_v29  ;;  %v5593_v29 = vld [vmem:[%s6265_s17 + $0x648] ss:$16 sps:$4 sm:$0xff]  }
 0x17f   : > { %2865 = vmatpush2.bf16.msra.mxu1 %v5530_v30  ;;  %2813 = vmatprep.subr.bf16.mxu0 %v5535_v31  ;;  %v5596_v30 = vld [vmem:[%s6265_s17 + $0x848] ss:$16 sps:$4 sm:$0xff]   ;;  %v5604_v31 = vld [vmem:[%s6265_s17 + $0x82c] ss:$16 sps:$4 sm:$0xff]  }
 0x180   : > { %2866 = vmatprep.subr.bf16.mxu1 %v5538_v32 }
 0x182   : > { %2814 = vmatpush2.bf16.msra.mxu0 %v5533_v33 }
 0x183   : > { %2867 = vmatpush2.bf16.msra.mxu1 %v5536_v35  ;;  %2815 = vmatprep.subr.bf16.mxu0 %v5541_v36  ;;  %v5599_v36 = vld [vmem:[%s6265_s17 + $0x628] ss:$16 sps:$4 sm:$0xff]  }
 0x184   : > { %2868 = vmatprep.subr.bf16.mxu1 %v5544_v37  ;;  %v5602_v37 = vld [vmem:[%s6265_s17 + $0x828] ss:$16 sps:$4 sm:$0xff]  }
 0x186   : > { %2816 = vmatpush2.bf16.msra.mxu0 %v5539_v38  ;;  %v5607_v38 = vld [vmem:[%s6265_s17 + $0x60c] ss:$16 sps:$4 sm:$0xff]  }
 0x187   : > { %2869 = vmatpush2.bf16.msra.mxu1 %v5542_v39  ;;  %2817 = vmatprep.subr.bf16.mxu0 %v5547_v41  ;;  %v5610_v39 = vld [vmem:[%s6265_s17 + $0x80c] ss:$16 sps:$4 sm:$0xff]   ;;  %v5605_v41 = vld [vmem:[%s6265_s17 + $0x608] ss:$16 sps:$4 sm:$0xff]  }
 0x188   : > { %2870 = vmatprep.subr.bf16.mxu1 %v5550_v42  ;;  %v5608_v42 = vld [vmem:[%s6265_s17 + $0x808] ss:$16 sps:$4 sm:$0xff]  }
 0x18a   : > { %2818 = vmatpush2.bf16.msra.mxu0 %v5545_v43  ;;  %v5613_v43 = vld [vmem:[%s6265_s17 + $0x7ec] ss:$16 sps:$4 sm:$0xff]  }
 0x18b   : > { %2871 = vmatpush2.bf16.msra.mxu1 %v5548_v44  ;;  %2819 = vmatprep.subr.bf16.mxu0 %v5553_v45  ;;  %v5616_v44 = vld [vmem:[%s6265_s17 + $0x9ec] ss:$16 sps:$4 sm:$0xff]   ;;  %v5611_v45 = vld [vmem:[%s6265_s17 + $0x7e8] ss:$16 sps:$4 sm:$0xff]  }
 0x18c   : > { %2872 = vmatprep.subr.bf16.mxu1 %v5556_v49  ;;  %v5614_v49 = vld [vmem:[%s6265_s17 + $0x9e8] ss:$16 sps:$4 sm:$0xff]  }
 0x18e   : > { %2820 = vmatpush2.bf16.msra.mxu0 %v5551_v51  ;;  %v5619_v51 = vld [vmem:[%s6265_s17 + $0x7cc] ss:$16 sps:$4 sm:$0xff]  }
 0x18f   : > { %2873 = vmatpush2.bf16.msra.mxu1 %v5554_v52  ;;  %2821 = vmatprep.subr.bf16.mxu0 %v5559_v53  ;;  %v5622_v52 = vld [vmem:[%s6265_s17 + $0x9cc] ss:$16 sps:$4 sm:$0xff]   ;;  %v5617_v53 = vld [vmem:[%s6265_s17 + $0x7c8] ss:$16 sps:$4 sm:$0xff]  }
 0x190   : > { %2874 = vmatprep.subr.bf16.mxu1 %v5562_v54  ;;  %v5620_v54 = vld [vmem:[%s6265_s17 + $0x9c8] ss:$16 sps:$4 sm:$0xff]  }
 0x192   : > { %2822 = vmatpush2.bf16.msra.mxu0 %v5557_v57  ;;  %v5625_v57 = vld [vmem:[%s6265_s17 + $0x7ac] ss:$16 sps:$4 sm:$0xff]  }
 0x193   : > { %2875 = vmatpush2.bf16.msra.mxu1 %v5560_v58  ;;  %2897 = vmatprep.subr.bf16.mxu0 %v5565_v59  ;;  %v5628_v58 = vld [vmem:[%s6265_s17 + $0x9ac] ss:$16 sps:$4 sm:$0xff]   ;;  %v5623_v59 = vld [vmem:[%s6265_s17 + $0x7a8] ss:$16 sps:$4 sm:$0xff]  }
 0x194   : > { %2950 = vmatprep.subr.bf16.mxu1 %v5568_v60  ;;  %v5626_v60 = vld [vmem:[%s6265_s17 + $0x9a8] ss:$16 sps:$4 sm:$0xff]  }
 0x195   : > { %v2507_v5 = vpop.f32.mrf.mxu0  ;;  %2824 = vmatmul.mubr.bf16.vlgmr.msra.gmra.mxu0 %v5660_v46  ;;  %v5635_v46 = vld [vmem:[%s6265_s17 + $0x768] ss:$16 sps:$4 sm:$0xff]  }
 0x196   : > { %v2560_v2 = vpop.f32.mrf.mxu1  ;;  %2877 = vmatmul.mubr.bf16.vlgmr.msra.gmra.mxu1 %v6439_v34  ;;  %2898 = vmatpush1.bf16.msra.mxu0 %v5563_v24  ;;  %v5631_v24 = vld [vmem:[%s6265_s17 + $0x78c] ss:$16 sps:$4 sm:$0xff]  }
 0x197   : > { %v6609_v3 = vadd.f32 %v2560_v2, %v2507_v5  ;;  %2951 = vmatpush1.bf16.msra.mxu1 %v5566_v63  ;;  %v2509_v7 = vpop.f32.mrf.mxu0  ;;  %2899 = vmatprep.subr.bf16.mxu0 %v5571_v0  ;;  %v5634_v63 = vld [vmem:[%s6265_s17 + $0x98c] ss:$16 sps:$4 sm:$0xff]   ;;  %v5629_v0 = vld [vmem:[%s6265_s17 + $0x788] ss:$16 sps:$4 sm:$0xff]  }
 0x198   : > { %v2562_v48 = vpop.f32.mrf.mxu1  ;;  %2952 = vmatprep.subr.bf16.mxu1 %v5574_v1  ;;  %2833 = vmatprep.mubr.bf16.mxu0 %v5661_v61  ;;  %v5632_v1 = vld [vmem:[%s6265_s17 + $0x988] ss:$16 sps:$4 sm:$0xff]   ;;  %v5637_v5 = vld [vmem:[%s6265_s17 + $0x76c] ss:$16 sps:$4 sm:$0xff]  }
 0x199   : > { %v6615_v10 = vadd.f32 %v2562_v48, %v2509_v7  ;;  %2886 = vmatprep.mubr.bf16.mxu1 %v6447_v40  ;;  %v2511_v34 = vpop.f32.mrf.mxu0  ;;  %v5640_v2 = vld [vmem:[%s6265_s17 + $0x96c] ss:$16 sps:$4 sm:$0xff]   ;;  %v5641_v48 = vld [vmem:[%s6265_s17 + $0x748] ss:$16 sps:$4 sm:$0xff]  }
 0x19a   : > { %v2564_v11 = vpop.f32.mrf.mxu1  ;;  %2900 = vmatpush1.bf16.msra.mxu0 %v5569_v4  ;;  %v5638_v4 = vld [vmem:[%s6265_s17 + $0x968] ss:$16 sps:$4 sm:$0xff]   ;;  %v5646_v7 = vld [vmem:[%s6265_s17 + $0x94c] ss:$16 sps:$4 sm:$0xff]  }
 0x19b   : > { %v6619_v12 = vadd.f32 %v2564_v11, %v2511_v34  ;;  %2953 = vmatpush1.bf16.msra.mxu1 %v5572_v6  ;;  %v2513_v15 = vpop.f32.mrf.mxu0  ;;  %2901 = vmatprep.subr.bf16.mxu0 %v5577_v8  ;;  %v5643_v6 = vld [vmem:[%s6265_s17 + $0x74c] ss:$16 sps:$4 sm:$0xff]   ;;  %v5644_v8 = vld [vmem:[%s6265_s17 + $0x948] ss:$16 sps:$4 sm:$0xff]  }
 0x19c   : > { %v2566_v16 = vpop.f32.mrf.mxu1  ;;  %2954 = vmatprep.subr.bf16.mxu1 %v5580_v9  ;;  %v5649_v9 = vld [vmem:[%s6265_s17 + $0x72c] ss:$16 sps:$4 sm:$0xff]   ;;  %v5647_v34 = vld [vmem:[%s6265_s17 + $0x728] ss:$16 sps:$4 sm:$0xff]  }
 0x19d   : > { %v6625_v40 = vadd.f32 %v2566_v16, %v2513_v15  ;;  %2834 = vmatmul.mubr.bf16.gmra.mxu0 %v5662_v19  ;;  %v2517_v32 = vpop.f32.mrf.mxu0  ;;  %v5652_v61 = vld [vmem:[%s6265_s17 + $0x92c] ss:$16 sps:$4 sm:$0xff]   ;;  %v5650_v11 = vld [vmem:[%s6265_s17 + $0x928] ss:$16 sps:$4 sm:$0xff]  }
 0x19e   : > { %2887 = vmatmul.mubr.bf16.gmra.mxu1 %v6457_v47  ;;  %2902 = vmatpush1.bf16.msra.mxu0 %v5575_v13  ;;  %v5587_v47 = vld [vmem:[%s6265_s17 + $0x668] ss:$16 sps:$4 sm:$0xff]   ;;  %v2570_v33 = vpop.f32.mrf.mxu1  ;;  %v5655_v13 = vld [vmem:[%s6265_s17 + $0x70c] ss:$16 sps:$4 sm:$0xff]  }
 0x19f   : > { %2955 = vmatpush1.bf16.msra.mxu1 %v5578_v14  ;;  %2903 = vmatprep.subr.bf16.mxu0 %v5583_v17  ;;  %v6643_v35 = vadd.f32 %v2570_v33, %v2517_v32  ;;  %v5658_v14 = vld [vmem:[%s6265_s17 + $0x90c] ss:$16 sps:$4 sm:$0xff]   ;;  %v5653_v15 = vld [vmem:[%s6265_s17 + $0x708] ss:$16 sps:$4 sm:$0xff]  }
 0x1a0   : > { %2956 = vmatprep.subr.bf16.mxu1 %v5586_v18  ;;  %2929 = vmatprep.mubr.bf16.mxu0 %v5663_v25  ;;  %v5656_v16 = vld [vmem:[%s6265_s17 + $0x908] ss:$16 sps:$4 sm:$0xff]   ;;  %v5665_v18 = vld [vmem:[%s6263_s30 + $0x6c] ss:$40 sps:$4 sm:$0xff]   ;;  %v2572_v25 = vpop.f32.mrf.mxu1 }
 0x1a1   : > { %2982 = vmatprep.mubr.bf16.mxu1 %v6468_v56  ;;  %v5601_v56 = vld [vmem:[%s6265_s17 + $0x62c] ss:$16 sps:$4 sm:$0xff]   ;;  %v5664_v17 = vld [vmem:[%s6263_s30 + $0x18] ss:$40 sps:$4 sm:$0xff]   ;;  %v5666_v19 = vld [vmem:[%s6263_s30 + $0x68] ss:$40 sps:$4 sm:$0xff]  }
 0x1a2   : > { %2904 = vmatpush1.bf16.msra.mxu0 %v5581_v20  ;;  %v2519_v20 = vpop.f32.mrf.mxu0 }
 0x1a3   : > { %2957 = vmatpush1.bf16.msra.mxu1 %v5584_v21  ;;  %2905 = vmatprep.subr.bf16.mxu0 %v5589_v22 }
 0x1a4   : > { %2958 = vmatprep.subr.bf16.mxu1 %v5592_v23  ;;  %v2521_v21 = vpop.f32.mrf.mxu0 }
 0x1a6   : > { %2906 = vmatpush1.bf16.msra.mxu0 %v5587_v47  ;;  %v2523_v22 = vpop.f32.mrf.mxu0 }
 0x1a7   : > { %2959 = vmatpush1.bf16.msra.mxu1 %v5590_v26  ;;  %2907 = vmatprep.subr.bf16.mxu0 %v5595_v27  ;;  %v2574_v26 = vpop.f32.mrf.mxu1 }
 0x1a8   : > { %2960 = vmatprep.subr.bf16.mxu1 %v5598_v28 }
 0x1a9   : > { %v2576_v28 = vpop.f32.mrf.mxu1 }
 0x1aa   : > { %2908 = vmatpush1.bf16.msra.mxu0 %v5593_v29 }
 0x1ab   : > { %2961 = vmatpush1.bf16.msra.mxu1 %v5596_v30  ;;  %2909 = vmatprep.subr.bf16.mxu0 %v5601_v56 }
 0x1ac   : > { %2962 = vmatprep.subr.bf16.mxu1 %v5604_v31 }
 0x1ae   : > { %2910 = vmatpush1.bf16.msra.mxu0 %v5599_v36 }
 0x1af   : > { %2963 = vmatpush1.bf16.msra.mxu1 %v5602_v37  ;;  %2911 = vmatprep.subr.bf16.mxu0 %v5607_v38 }
 0x1b0   : > { %2964 = vmatprep.subr.bf16.mxu1 %v5610_v39 }
 0x1b2   : > { %2912 = vmatpush1.bf16.msra.mxu0 %v5605_v41 }
 0x1b3   : > { %2965 = vmatpush1.bf16.msra.mxu1 %v5608_v42  ;;  %2913 = vmatprep.subr.bf16.mxu0 %v5613_v43 }
 0x1b4   : > { %2966 = vmatprep.subr.bf16.mxu1 %v5616_v44 }
 0x1b6   : > { %2914 = vmatpush2.bf16.msra.mxu0 %v5611_v45 }
 0x1b7   : > { %2967 = vmatpush2.bf16.msra.mxu1 %v5614_v49  ;;  %2915 = vmatprep.subr.bf16.mxu0 %v5619_v51 }
 0x1b8   : > { %2968 = vmatprep.subr.bf16.mxu1 %v5622_v52  ;;  %v2573_v52 = vadd.f32 %v2572_v25, %v2519_v20 }
 0x1ba   : > { %2916 = vmatpush2.bf16.msra.mxu0 %v5617_v53 }
 0x1bb   : > { %2969 = vmatpush2.bf16.msra.mxu1 %v5620_v54  ;;  %2917 = vmatprep.subr.bf16.mxu0 %v5625_v57  ;;  %v2575_v57 = vadd.f32 %v2574_v26, %v2521_v21 }
 0x1bc   : > { %2970 = vmatprep.subr.bf16.mxu1 %v5628_v58 }
 0x1be   : > { %2918 = vmatpush2.bf16.msra.mxu0 %v5623_v59 }
 0x1bf   : > { %2971 = vmatpush2.bf16.msra.mxu1 %v5626_v60  ;;  %2919 = vmatprep.subr.bf16.mxu0 %v5631_v24 }
 0x1c0   : > { %2972 = vmatprep.subr.bf16.mxu1 %v5634_v63  ;;  %v2577_v63 = vadd.f32 %v2576_v28, %v2523_v22 }
 0x1c2   : > { %2920 = vmatpush2.bf16.msra.mxu0 %v5629_v0 }
 0x1c3   : > { %2973 = vmatpush2.bf16.msra.mxu1 %v5632_v1  ;;  %2921 = vmatprep.subr.bf16.mxu0 %v5637_v5 }
 0x1c4   : > { %2974 = vmatprep.subr.bf16.mxu1 %v5640_v2 }
 0x1c6   : > { %2922 = vmatpush2.bf16.msra.mxu0 %v5635_v46 }
 0x1c7   : > { %2975 = vmatpush2.bf16.msra.mxu1 %v5638_v4  ;;  %2923 = vmatprep.subr.bf16.mxu0 %v5643_v6 }
 0x1c8   : > { %2976 = vmatprep.subr.bf16.mxu1 %v5646_v7 }
 0x1ca   : > { %2924 = vmatpush2.bf16.msra.mxu0 %v5641_v48 }
 0x1cb   : > { %2977 = vmatpush2.bf16.msra.mxu1 %v5644_v8  ;;  %2925 = vmatprep.subr.bf16.mxu0 %v5649_v9 }
 0x1cc   : > { %2978 = vmatprep.subr.bf16.mxu1 %v5652_v61 }
 0x1ce   : > { %2926 = vmatpush2.bf16.msra.mxu0 %v5647_v34 }
 0x1cf   : > { %2979 = vmatpush2.bf16.msra.mxu1 %v5650_v11  ;;  %2927 = vmatprep.subr.bf16.mxu0 %v5655_v13 }
 0x1d0   : > { %2980 = vmatprep.subr.bf16.mxu1 %v5658_v14 }
 0x1d2   : > { %2928 = vmatpush2.bf16.msra.mxu0 %v5653_v15 }
 0x1d3   : > { %2981 = vmatpush2.bf16.msra.mxu1 %v5656_v16 }
 0x1d5   : > { %2930 = vmatmul.mubr.bf16.vlgmr.msra.gmra.mxu0 %v5664_v17  ;;  %v2613_v23 = vpop.f32.mrf.mxu0 }
 0x1d6   : > { %2983 = vmatmul.mubr.bf16.vlgmr.msra.gmra.mxu1 %v6523_v50  ;;  %2939 = vmatprep.mubr.bf16.mxu0 %v5665_v18  ;;  %v2666_v30 = vpop.f32.mrf.mxu1  ;;  %v2614_v33 = vadd.f32 %v2613_v23, %v6609_v3 }
 0x1d7   : > { %2992 = vmatprep.mubr.bf16.mxu1 %v6530_v55  ;;  %v2615_v47 = vpop.f32.mrf.mxu0 }
 0x1d8   : > { %v2668_v56 = vpop.f32.mrf.mxu1  ;;  %v2667_v39 = vadd.f32 %v2666_v30, %v2614_v33 }
 0x1d9   : > { %v2617_v27 = vpop.f32.mrf.mxu0 }
 0x1da   : > { %v2670_v32 = vpop.f32.mrf.mxu1  ;;  %v2618_v41 = vadd.f32 %v2617_v27, %v6619_v12 }
 0x1db   : > { %v2619_v29 = vpop.f32.mrf.mxu0 }
 0x1dc   : > { %v2672_v36 = vpop.f32.mrf.mxu1  ;;  %v2620_v44 = vadd.f32 %v2619_v29, %v6625_v40  ;;  %v2671_v53 = vadd.f32 %v2670_v32, %v2618_v41 }
 0x1dd   : > { %2940 = vmatmul.mubr.bf16.gmra.mxu0 %v5666_v19  ;;  %v2623_v50 = vpop.f32.mrf.mxu0 }
 0x1de   : > { %2993 = vmatmul.mubr.bf16.gmra.mxu1 %v6540_v62  ;;  %v2616_v62 = vadd.f32 %v2615_v47, %v6615_v10  ;;  %v2676_v37 = vpop.f32.mrf.mxu1  ;;  %v2624_v3 = vadd.f32 %v2623_v50, %v6643_v35  ;;  %v2673_v58 = vadd.f32 %v2672_v36, %v2620_v44 }
 0x1df   : > { %v2625_v31 = vpop.f32.mrf.mxu0 }
 0x1e0   : > { %v2669_v43 = vadd.f32 %v2668_v56, %v2616_v62  ;;  %v2678_v49 = vpop.f32.mrf.mxu1  ;;  %v2626_v59 = vadd.f32 %v2625_v31, %v2573_v52  ;;  %v2677_v40 = vadd.f32 %v2676_v37, %v2624_v3 }
 0x1e1   : > { %v2627_v55 = vpop.f32.mrf.mxu0 }
 0x1e2   : > { %v2680_v12 = vpop.f32.mrf.mxu1  ;;  %v2628_v0 = vadd.f32 %v2627_v55, %v2575_v57  ;;  %v2679_v2 = vadd.f32 %v2678_v49, %v2626_v59 }
 0x1e3   : > { %v2629_v38 = vpop.f32.mrf.mxu0 }
 0x1e4   : > { %v2630_v46 = vadd.f32 %v2629_v38, %v2577_v63  ;;  %v2682_v35 = vpop.f32.mrf.mxu1  ;;  %v2681_v7 = vadd.f32 %v2680_v12, %v2628_v0 }
 0x1e6   : > { %v2683_v9 = vadd.f32 %v2682_v35, %v2630_v46 }
 0x215   : > { %v2719_v42 = vpop.f32.mrf.mxu0 }
 0x216   : > { %v6693_v45 = vadd.f32 %v2719_v42, %v2667_v39  ;;  %v2772_v13 = vpop.f32.mrf.mxu1 }
 0x217   : > { %v2721_v51 = vpop.f32.mrf.mxu0 }
 0x218   : > { %v6696_v54 = vadd.f32 %v2721_v51, %v2669_v43  ;;  %v2774_v14 = vpop.f32.mrf.mxu1 }
 0x219   : > { %v2723_v10 = vpop.f32.mrf.mxu0 }
 0x21a   : > { %v6698_v60 = vadd.f32 %v2723_v10, %v2671_v53  ;;  %v2776_v15 = vpop.f32.mrf.mxu1 }
 0x21b   : > { %v2725_v24 = vpop.f32.mrf.mxu0 }
 0x21c   : > { %v6700_v1 = vadd.f32 %v2725_v24, %v2673_v58  ;;  %v2778_v16 = vpop.f32.mrf.mxu1 }
 0x21d   : > { %v2729_v5 = vpop.f32.mrf.mxu0 }
 0x21e   : > { %v6702_v4 = vadd.f32 %v2729_v5, %v2677_v40  ;;  %v2782_v17 = vpop.f32.mrf.mxu1 }
 0x21f   : > { %v2731_v6 = vpop.f32.mrf.mxu0 }
 0x220   : > { %v6704_v48 = vadd.f32 %v2731_v6, %v2679_v2  ;;  %v2784_v18 = vpop.f32.mrf.mxu1 }
 0x221   : > { %v2733_v8 = vpop.f32.mrf.mxu0 }
 0x222   : > { %v6706_v61 = vadd.f32 %v2733_v8, %v2681_v7  ;;  %v2786_v19 = vpop.f32.mrf.mxu1 }
 0x223   : > { %v2735_v34 = vpop.f32.mrf.mxu0 }
 0x224   : > { %v6708_v11 = vadd.f32 %v2735_v34, %v2683_v9  ;;  %v2788_v20 = vpop.f32.mrf.mxu1 }
 0x255   : > { %v2825_v21 = vpop.f32.mrf.mxu0 }
 0x256   : > { %v2878_v22 = vpop.f32.mrf.mxu1  ;;  %v2826_v55 = vadd.f32 %v2825_v21, %v2772_v13 }
 0x257   : > { %v2827_v23 = vpop.f32.mrf.mxu0 }
 0x258   : > { %v2880_v25 = vpop.f32.mrf.mxu1  ;;  %v2828_v33 = vadd.f32 %v2827_v23, %v2774_v14  ;;  %v2879_v37 = vadd.f32 %v2878_v22, %v2826_v55 }
 0x259   : > { %v2829_v47 = vpop.f32.mrf.mxu0 }
 0x25a   : > { %v2882_v26 = vpop.f32.mrf.mxu1  ;;  %v2830_v38 = vadd.f32 %v2829_v47, %v2776_v15  ;;  %v2881_v42 = vadd.f32 %v2880_v25, %v2828_v33 }
 0x25b   : > { %v2831_v27 = vpop.f32.mrf.mxu0 }
 0x25c   : > { %v2884_v28 = vpop.f32.mrf.mxu1  ;;  %v2832_v43 = vadd.f32 %v2831_v27, %v2778_v16  ;;  %v2883_v52 = vadd.f32 %v2882_v26, %v2830_v38 }
 0x25d   : > { %v2835_v29 = vpop.f32.mrf.mxu0 }
 0x25e   : > { %v2888_v30 = vpop.f32.mrf.mxu1  ;;  %v2836_v53 = vadd.f32 %v2835_v29, %v2782_v17  ;;  %v2885_v59 = vadd.f32 %v2884_v28, %v2832_v43 }
 0x25f   : > { %v2837_v50 = vpop.f32.mrf.mxu0 }
 0x260   : > { %v2890_v56 = vpop.f32.mrf.mxu1  ;;  %v2838_v12 = vadd.f32 %v2837_v50, %v2784_v18  ;;  %v2889_v5 = vadd.f32 %v2888_v30, %v2836_v53 }
 0x261   : > { %v2839_v31 = vpop.f32.mrf.mxu0 }
 0x262   : > { %v2892_v32 = vpop.f32.mrf.mxu1  ;;  %v2840_v2 = vadd.f32 %v2839_v31, %v2786_v19  ;;  %v2891_v8 = vadd.f32 %v2890_v56, %v2838_v12 }
 0x263   : > { %v2841_v36 = vpop.f32.mrf.mxu0 }
 0x264   : > { %v2894_v62 = vpop.f32.mrf.mxu1  ;;  %v2842_v9 = vadd.f32 %v2841_v36, %v2788_v20  ;;  %v2893_v16 = vadd.f32 %v2892_v32, %v2840_v2 }
 0x266   : > { %v2895_v23 = vadd.f32 %v2894_v62, %v2842_v9 }
 0x295   : > { %v2931_v39 = vpop.f32.mrf.mxu0 }
 0x296   : > { %v2984_v41 = vpop.f32.mrf.mxu1  ;;  %v2932_v44 = vadd.f32 %v2931_v39, %v2879_v37 }
 0x297   : > { %v2933_v49 = vpop.f32.mrf.mxu0 }
 0x298   : > { %v2986_v51 = vpop.f32.mrf.mxu1  ;;  %v6710_v3 = vadd.f32 %v2984_v41, %v2932_v44  ;;  %v2934_v10 = vadd.f32 %v2933_v49, %v2881_v42 }
 0x299   : > { %v2935_v57 = vpop.f32.mrf.mxu0 }
 0x29a   : > { %v2988_v58 = vpop.f32.mrf.mxu1  ;;  %v6712_v24 = vadd.f32 %v2986_v51, %v2934_v10  ;;  %v2936_v63 = vadd.f32 %v2935_v57, %v2883_v52 }
 0x29b   : > { %v2937_v40 = vpop.f32.mrf.mxu0 }
 0x29c   : > { %v2990_v0 = vpop.f32.mrf.mxu1  ;;  %v6714_v46 = vadd.f32 %v2988_v58, %v2936_v63  ;;  %v2938_v35 = vadd.f32 %v2937_v40, %v2885_v59 }
 0x29d   : > { %v2941_v6 = vpop.f32.mrf.mxu0 }
 0x29e   : > { %v2994_v7 = vpop.f32.mrf.mxu1  ;;  %v6716_v34 = vadd.f32 %v2990_v0, %v2938_v35  ;;  %v2942_v13 = vadd.f32 %v2941_v6, %v2889_v5 }
 0x29f   : > { %v2943_v14 = vpop.f32.mrf.mxu0 }
 0x2a0   : > { %v2996_v15 = vpop.f32.mrf.mxu1  ;;  %v6718_v17 = vadd.f32 %v2994_v7, %v2942_v13  ;;  %v2944_v18 = vadd.f32 %v2943_v14, %v2891_v8 }
 0x2a1   : > { %v2945_v21 = vpop.f32.mrf.mxu0 }
 0x2a2   : > { %v2998_v22 = vpop.f32.mrf.mxu1  ;;  %v6720_v19 = vadd.f32 %v2996_v15, %v2944_v18  ;;  %v2946_v25 = vadd.f32 %v2945_v21, %v2893_v16  ;;  %3006 = sbr.rel (%p7542_p4) target bundleno = 697 (0x2b9), region = 99 }
 0x2a3   : > { %v2947_v47 = vpop.f32.mrf.mxu0 }
 0x2a4   : > { %v6722_v26 = vadd.f32 %v2998_v22, %v2946_v25  ;;  %v2948_v27 = vadd.f32 %v2947_v47, %v2895_v23  ;;  %v3000_v20 = vpop.f32.mrf.mxu1 }
 0x2a6   : > { %v6724_v28 = vadd.f32 %v3000_v20, %v2948_v27 }
 0x2a7   : > { %v3009_v29 = vlaneseq  ;;  %v3007_v50 = vld [vmem:[#allocation6] sm:$0xf] }
 0x2a9   : > { %v3010_v30 = vshrl.u32 %v3009_v29, 7 }
 0x2ab   : > { %v3011_v56 = vsub.s32 0, %v3010_v30  ;;  %v3015_v31 = vsub.s32 1, %v3010_v30  ;;  %v3019_v32 = vsub.s32 2, %v3010_v30  ;;  %v3023_v55 = vsub.s32 3, %v3010_v30 }
 0x2ad   : > { %v3012_v33 = vrot.slane %v3007_v50, %v3011_v56  ;;  %v3016_v36 = vrot.slane %v3007_v50, %v3015_v31  ;;  %v3020_v62 = vrot.slane %v3007_v50, %v3019_v32  ;;  %v3024_v37 = vrot.slane %v3007_v50, %v3023_v55 }
 0x2af   : > { %v3029_v38 = vadd.f32 %v3012_v33, %v6693_v45  ;;  %v3030_v39 = vadd.f32 %v3016_v36, %v6696_v54  ;;  %v3031_v41 = vadd.f32 %v3020_v62, %v6710_v3  ;;  %v3032_v42 = vadd.f32 %v3024_v37, %v6712_v24 }
 0x2b0   : > { %v3033_v43 = vadd.f32 %v3012_v33, %v6698_v60  ;;  %v3034_v44 = vadd.f32 %v3016_v36, %v6700_v1  ;;  %v3035_v49 = vadd.f32 %v3020_v62, %v6714_v46  ;;  %v3036_v51 = vadd.f32 %v3024_v37, %v6716_v34 }
 0x2b1   : > { %3045 = vst [vmem:[#allocation2 + $0x30] sm:$0xff] %v3029_v38  ;;  %3046 = vst [vmem:[#allocation2] sm:$0xff] %v3030_v39  ;;  %v3037_v52 = vadd.f32 %v3012_v33, %v6702_v4  ;;  %v3038_v53 = vadd.f32 %v3016_v36, %v6704_v48  ;;  %v3039_v10 = vadd.f32 %v3020_v62, %v6718_v17 }
 0x2b2   : > { %3047 = vst [vmem:[#allocation2 + $0x58] sm:$0xff] %v3031_v41  ;;  %3048 = vst [vmem:[#allocation2 + $0x18] sm:$0xff] %v3032_v42  ;;  %v3040_v57 = vadd.f32 %v3024_v37, %v6720_v19  ;;  %v3041_v58 = vadd.f32 %v3012_v33, %v6706_v61  ;;  %v3042_v59 = vadd.f32 %v3016_v36, %v6708_v11 }
 0x2b3   : > { %3049 = vst [vmem:[#allocation2 + $0x50] sm:$0xff] %v3033_v43  ;;  %3050 = vst [vmem:[#allocation2 + $0x68] sm:$0xff] %v3034_v44  ;;  %v3043_v12 = vadd.f32 %v3020_v62, %v6722_v26  ;;  %v3044_v63 = vadd.f32 %v3024_v37, %v6724_v28 }
 0x2b4   : > { %3051 = vst [vmem:[#allocation2 + $0x8] sm:$0xff] %v3035_v49  ;;  %3052 = vst [vmem:[#allocation2 + $0x48] sm:$0xff] %v3036_v51 }
 0x2b5   : > { %3053 = vst [vmem:[#allocation2 + $0x40] sm:$0xff] %v3037_v52  ;;  %3054 = vst [vmem:[#allocation2 + $0x20] sm:$0xff] %v3038_v53 }
 0x2b6   : > { %3055 = vst [vmem:[#allocation2 + $0x10] sm:$0xff] %v3039_v10  ;;  %3056 = vst [vmem:[#allocation2 + $0x38] sm:$0xff] %v3040_v57 }
 0x2b7   : > { %3057 = vst [vmem:[#allocation2 + $0x60] sm:$0xff] %v3041_v58  ;;  %3058 = vst [vmem:[#allocation2 + $0x70] sm:$0xff] %v3042_v59 }
 0x2b8   : > { %3059 = vst [vmem:[#allocation2 + $0x78] sm:$0xff] %v3043_v12  ;;  %3060 = vst [vmem:[#allocation2 + $0x28] sm:$0xff] %v3044_v63 }
 0x2b9 PF: > { %p7543_p6 = scmp.eq.s32.totalorder %s6087_s28, 0 }
 0x2bb   : > { %3064 = sbr.rel (%p7543_p6) target bundleno = 715 (0x2cb), region = 103 }
 0x2c0   : > { %v3065_v40 = vld [vmem:[#allocation2 + $0x30] sm:$0xff]  ;;  %v3066_v0 = vld [vmem:[#allocation2] sm:$0xff]  ;;  %v3067_v5 = vld [vmem:[#allocation2 + $0x58] sm:$0xff] }
 0x2c1   : > { %v3081_v2 = vadd.f32 %v3065_v40, %v6693_v45  ;;  %v3082_v35 = vadd.f32 %v3066_v0, %v6696_v54  ;;  %v3083_v6 = vadd.f32 %v3067_v5, %v6710_v3  ;;  %v3068_v7 = vld [vmem:[#allocation2 + $0x18] sm:$0xff]  ;;  %v3069_v8 = vld [vmem:[#allocation2 + $0x50] sm:$0xff]  ;;  %v3070_v9 = vld [vmem:[#allocation2 + $0x68] sm:$0xff] }
 0x2c2   : > { %v3084_v13 = vadd.f32 %v3068_v7, %v6712_v24  ;;  %v3085_v14 = vadd.f32 %v3069_v8, %v6698_v60  ;;  %v3086_v15 = vadd.f32 %v3070_v9, %v6700_v1  ;;  %v3071_v16 = vld [vmem:[#allocation2 + $0x8] sm:$0xff]  ;;  %v3073_v21 = vld [vmem:[#allocation2 + $0x40] sm:$0xff]  ;;  %v3075_v23 = vld [vmem:[#allocation2 + $0x10] sm:$0xff] }
 0x2c3   : > { %v3072_v18 = vld [vmem:[#allocation2 + $0x48] sm:$0xff]  ;;  %3097 = vst [vmem:[#allocation2 + $0x30] sm:$0xff] %v3081_v2  ;;  %3098 = vst [vmem:[#allocation2] sm:$0xff] %v3082_v35  ;;  %v3087_v45 = vadd.f32 %v3071_v16, %v6714_v46  ;;  %v3089_v3 = vadd.f32 %v3073_v21, %v6702_v4  ;;  %v3074_v22 = vld [vmem:[#allocation2 + $0x20] sm:$0xff]  ;;  %v3091_v1 = vadd.f32 %v3075_v23, %v6718_v17 }
 0x2c4   : > { %3099 = vst [vmem:[#allocation2 + $0x58] sm:$0xff] %v3083_v6  ;;  %v3088_v54 = vadd.f32 %v3072_v18, %v6716_v34  ;;  %v3076_v25 = vld [vmem:[#allocation2 + $0x38] sm:$0xff]  ;;  %3100 = vst [vmem:[#allocation2 + $0x18] sm:$0xff] %v3084_v13  ;;  %v3090_v60 = vadd.f32 %v3074_v22, %v6704_v48  ;;  %v3077_v47 = vld [vmem:[#allocation2 + $0x60] sm:$0xff] }
 0x2c5   : > { %3101 = vst [vmem:[#allocation2 + $0x50] sm:$0xff] %v3085_v14  ;;  %3102 = vst [vmem:[#allocation2 + $0x68] sm:$0xff] %v3086_v15  ;;  %v3092_v24 = vadd.f32 %v3076_v25, %v6720_v19  ;;  %v3078_v27 = vld [vmem:[#allocation2 + $0x70] sm:$0xff]  ;;  %v3079_v20 = vld [vmem:[#allocation2 + $0x78] sm:$0xff]  ;;  %v3093_v4 = vadd.f32 %v3077_v47, %v6706_v61 }
 0x2c6   : > { %3103 = vst [vmem:[#allocation2 + $0x8] sm:$0xff] %v3087_v45  ;;  %3104 = vst [vmem:[#allocation2 + $0x48] sm:$0xff] %v3088_v54  ;;  %v3094_v46 = vadd.f32 %v3078_v27, %v6708_v11  ;;  %v3095_v34 = vadd.f32 %v3079_v20, %v6722_v26  ;;  %v3080_v29 = vld [vmem:[#allocation2 + $0x28] sm:$0xff] }
 0x2c7   : > { %3105 = vst [vmem:[#allocation2 + $0x40] sm:$0xff] %v3089_v3  ;;  %3106 = vst [vmem:[#allocation2 + $0x20] sm:$0xff] %v3090_v60  ;;  %v3096_v48 = vadd.f32 %v3080_v29, %v6724_v28 }
 0x2c8   : > { %3107 = vst [vmem:[#allocation2 + $0x10] sm:$0xff] %v3091_v1  ;;  %3108 = vst [vmem:[#allocation2 + $0x38] sm:$0xff] %v3092_v24 }
 0x2c9   : > { %3109 = vst [vmem:[#allocation2 + $0x60] sm:$0xff] %v3093_v4  ;;  %3110 = vst [vmem:[#allocation2 + $0x70] sm:$0xff] %v3094_v46 }
 0x2ca   : > { %3111 = vst [vmem:[#allocation2 + $0x78] sm:$0xff] %v3095_v34  ;;  %3112 = vst [vmem:[#allocation2 + $0x28] sm:$0xff] %v3096_v48 }
 0x2cb PF: > { %p4800_p7 = scmp.ne.s32.totalorder %s6087_s28, 1 }
 0x2cd   : > { %3116 = sbr.rel (%p4800_p7) target bundleno = 1999 (0x7cf), region = 107 }
 0x2d2   : > { %v6763_v17 = vld [vmem:[#allocation8 + $0x74] ss:$8 sps:$4 sm:$0xff]   ;;  %v6768_v11 = vld [vmem:[#allocation8 + $0x70] ss:$8 sps:$4 sm:$0xff]   ;;  %v6773_v26 = vld [vmem:[#allocation8 + $0x64] ss:$8 sps:$4 sm:$0xff]  }
 0x2d3   : > { %7544 = vst [vmem:[#allocation18_spill] sm:$0xff] %v6763_v17  ;;  %v6765_v61 = vld [vmem:[#allocation8 + $0x174] ss:$8 sps:$4 sm:$0xff]   ;;  %3544 = vmatprep.subr.bf16.mxu0 %v6763_v17  ;;  %7546 = vst [vmem:[#allocation20_spill] sm:$0xff] %v6768_v11  ;;  %v6770_v19 = vld [vmem:[#allocation8 + $0x170] ss:$8 sps:$4 sm:$0xff]  }
 0x2d4   : > { %7545 = vst [vmem:[#allocation19_spill] sm:$0xff] %v6765_v61  ;;  %3585 = vmatprep.subr.bf16.mxu1 %v6765_v61  ;;  %7547 = vst [vmem:[#allocation21_spill] sm:$0xff] %v6773_v26  ;;  %3545 = vmatpush1.bf16.msra.mxu0 %v6768_v11  ;;  %v6777_v28 = vld [vmem:[#allocation8 + $0x164] ss:$8 sps:$4 sm:$0xff]   ;;  %v6779_v30 = vld [vmem:[#allocation8 + $0x60] ss:$8 sps:$4 sm:$0xff]  }
 0x2d5   : > { %3586 = vmatpush1.bf16.msra.mxu1 %v6770_v19  ;;  %7548 = vst [vmem:[#allocation22_spill] sm:$0xff] %v6779_v30  ;;  %3546 = vmatprep.subr.bf16.mxu0 %v6773_v26  ;;  %v6782_v50 = vld [vmem:[#allocation8 + $0x160] ss:$8 sps:$4 sm:$0xff]   ;;  %v6785_v56 = vld [vmem:[#allocation8 + $0x54] ss:$8 sps:$4 sm:$0xff]   ;;  %v3136_v27 = vld [vmem:[#allocation2 + $0x30] sm:$0xff] }
 0x2d6   : > { %3587 = vmatprep.subr.bf16.mxu1 %v6777_v28  ;;  %7549 = vst [vmem:[#allocation23_spill] sm:$0xff] %v6785_v56  ;;  %v6787_v31 = vld [vmem:[#allocation8 + $0x154] ss:$8 sps:$4 sm:$0xff]   ;;  %v6789_v32 = vld [vmem:[#allocation8 + $0x50] ss:$8 sps:$4 sm:$0xff]   ;;  %v3810_v22 = vld [vmem:[#allocation2 + $0x68] sm:$0xff] }
 0x2d7   : > { %7550 = vst [vmem:[#allocation24_spill] sm:$0xff] %v6789_v32  ;;  %v6791_v55 = vld [vmem:[#allocation8 + $0x150] ss:$8 sps:$4 sm:$0xff]   ;;  %v6795_v33 = vld [vmem:[#allocation8 + $0x44] ss:$8 sps:$4 sm:$0xff]   ;;  %v3137_v54 = vld [vmem:[#allocation2] sm:$0xff] }
 0x2d8   : > { %3547 = vmatpush1.bf16.msra.mxu0 %v6779_v30  ;;  %v6799_v36 = vld [vmem:[#allocation8 + $0x144] ss:$8 sps:$4 sm:$0xff]   ;;  %v6801_v62 = vld [vmem:[#allocation8 + $0x40] ss:$8 sps:$4 sm:$0xff]   ;;  %v6807_v38 = vld [vmem:[#allocation8 + $0x34] ss:$8 sps:$4 sm:$0xff]  }
 0x2d9   : > { %3588 = vmatpush1.bf16.msra.mxu1 %v6782_v50  ;;  %3548 = vmatprep.subr.bf16.mxu0 %v6785_v56  ;;  %v6805_v37 = vld [vmem:[#allocation8 + $0x140] ss:$8 sps:$4 sm:$0xff]   ;;  %v6811_v39 = vld [vmem:[#allocation8 + $0x134] ss:$8 sps:$4 sm:$0xff]   ;;  %v6813_v41 = vld [vmem:[#allocation8 + $0x30] ss:$8 sps:$4 sm:$0xff]  }
 0x2da   : > { %3589 = vmatprep.subr.bf16.mxu1 %v6787_v31  ;;  %v6815_v42 = vld [vmem:[#allocation8 + $0x130] ss:$8 sps:$4 sm:$0xff]   ;;  %v6819_v43 = vld [vmem:[#allocation8 + $0x24] ss:$8 sps:$4 sm:$0xff]   ;;  %v6825_v49 = vld [vmem:[#allocation8 + $0x20] ss:$8 sps:$4 sm:$0xff]  }
 0x2db   : > { %v6823_v44 = vld [vmem:[#allocation8 + $0x124] ss:$8 sps:$4 sm:$0xff]   ;;  %v6829_v51 = vld [vmem:[#allocation8 + $0x120] ss:$8 sps:$4 sm:$0xff]   ;;  %v6831_v52 = vld [vmem:[#allocation8 + $0x14] ss:$8 sps:$4 sm:$0xff]  }
 0x2dc   : > { %3549 = vmatpush1.bf16.msra.mxu0 %v6789_v32  ;;  %v6835_v53 = vld [vmem:[#allocation8 + $0x114] ss:$8 sps:$4 sm:$0xff]   ;;  %v6837_v10 = vld [vmem:[#allocation8 + $0x10] ss:$8 sps:$4 sm:$0xff]   ;;  %v6843_v58 = vld [vmem:[#allocation8 + $0x4] ss:$8 sps:$4 sm:$0xff]  }
 0x2dd   : > { %3590 = vmatpush1.bf16.msra.mxu1 %v6791_v55  ;;  %3550 = vmatprep.subr.bf16.mxu0 %v6795_v33  ;;  %v6839_v57 = vld [vmem:[#allocation8 + $0x110] ss:$8 sps:$4 sm:$0xff]   ;;  %v6847_v59 = vld [vmem:[#allocation8 + $0x104] ss:$8 sps:$4 sm:$0xff]   ;;  %v6849_v12 = vld [vmem:[#allocation8] ss:$8 sps:$4 sm:$0xff]  }
 0x2de   : > { %3591 = vmatprep.subr.bf16.mxu1 %v6799_v36  ;;  %v6853_v63 = vld [vmem:[#allocation8 + $0x100] ss:$8 sps:$4 sm:$0xff]   ;;  %v6855_v40 = vld [vmem:[#allocation8 + $0xf4] ss:$8 sps:$4 sm:$0xff]   ;;  %v6861_v5 = vld [vmem:[#allocation8 + $0xf0] ss:$8 sps:$4 sm:$0xff]  }
 0x2df   : > { %v6859_v0 = vld [vmem:[#allocation8 + $0x1f4] ss:$8 sps:$4 sm:$0xff]   ;;  %v6863_v2 = vld [vmem:[#allocation8 + $0x1f0] ss:$8 sps:$4 sm:$0xff]   ;;  %v6867_v35 = vld [vmem:[#allocation8 + $0xe4] ss:$8 sps:$4 sm:$0xff]  }
 0x2e0   : > { %3551 = vmatpush1.bf16.msra.mxu0 %v6801_v62  ;;  %7551 = vst [vmem:[#allocation25_spill] sm:$0xff] %v6863_v2  ;;  %v6871_v6 = vld [vmem:[#allocation8 + $0x1e4] ss:$8 sps:$4 sm:$0xff]   ;;  %v6873_v7 = vld [vmem:[#allocation8 + $0xe0] ss:$8 sps:$4 sm:$0xff]   ;;  %vm3145_vm0 = vcmp.gt.f32.partialorder %v3137_v54, 1.0 }
 0x2e1   : > { %3592 = vmatpush1.bf16.msra.mxu1 %v6805_v37  ;;  %3552 = vmatprep.subr.bf16.mxu0 %v6807_v38  ;;  %7552 = vst [vmem:[#allocation26_spill] sm:$0xff] %v6871_v6  ;;  %v6877_v8 = vld [vmem:[#allocation8 + $0x1e0] ss:$8 sps:$4 sm:$0xff]   ;;  %v6879_v9 = vld [vmem:[#allocation8 + $0xd4] ss:$8 sps:$4 sm:$0xff]   ;;  %v3814_v23 = vmul.f32 0.5, %v3137_v54  ;;  %vm4870_vm1 = vmpackc.low %vm3145_vm0, %vm3145_vm0 }
 0x2e2   : > { %3593 = vmatprep.subr.bf16.mxu1 %v6811_v39  ;;  %7553 = vst [vmem:[#allocation27_spill] sm:$0xff] %v6877_v8  ;;  %v6883_v13 = vld [vmem:[#allocation8 + $0x1d4] ss:$8 sps:$4 sm:$0xff]   ;;  %v6885_v14 = vld [vmem:[#allocation8 + $0xd0] ss:$8 sps:$4 sm:$0xff]   ;;  %v3812_v1 = vld [vmem:[#allocation2 + $0x48] sm:$0xff] }
 0x2e3   : > { %7554 = vst [vmem:[#allocation28_spill] sm:$0xff] %v6883_v13  ;;  %7555 = vst [vmem:[#allocation29_spill] sm:$0xff] %v6885_v14  ;;  %v6887_v15 = vld [vmem:[#allocation8 + $0x1d0] ss:$8 sps:$4 sm:$0xff]   ;;  %v6891_v16 = vld [vmem:[#allocation8 + $0xc4] ss:$8 sps:$4 sm:$0xff]   ;;  %v3818_v47 = vadd.f32 %v3814_v23, %v3810_v22 }
 0x2e4   : > { %3553 = vmatpush1.bf16.msra.mxu0 %v6813_v41  ;;  %7556 = vst [vmem:[#allocation30_spill] sm:$0xff] %v6887_v15  ;;  %7557 = vst [vmem:[#allocation31_spill] sm:$0xff] %v6891_v16  ;;  %v6895_v18 = vld [vmem:[#allocation8 + $0x1c4] ss:$8 sps:$4 sm:$0xff]   ;;  %v6897_v21 = vld [vmem:[#allocation8 + $0xc0] ss:$8 sps:$4 sm:$0xff]  }
 0x2e5   : > { %3594 = vmatpush1.bf16.msra.mxu1 %v6815_v42  ;;  %3554 = vmatprep.subr.bf16.mxu0 %v6819_v43  ;;  %7558 = vst [vmem:[#allocation32_spill] sm:$0xff] %v6895_v18  ;;  %7559 = vst [vmem:[#allocation33_spill] sm:$0xff] %v6897_v21  ;;  %v6899_v45 = vld [vmem:[#allocation8 + $0x1c0] ss:$8 sps:$4 sm:$0xff]   ;;  %v6901_v3 = vld [vmem:[#allocation8 + $0xb4] ss:$8 sps:$4 sm:$0xff]   ;;  %v6920_v23 = vsel %vm3145_vm0, %v3810_v22, %v3818_v47 }
 0x2e6   : > { %3595 = vmatprep.subr.bf16.mxu1 %v6823_v44  ;;  %7560 = vst [vmem:[#allocation34_spill] sm:$0xff] %v6899_v45  ;;  %7561 = vst [vmem:[#allocation35_spill] sm:$0xff] %v6901_v3  ;;  %v3139_v25 = vld [vmem:[#allocation2 + $0x18] sm:$0xff]  ;;  %v3809_v20 = vld [vmem:[#allocation2 + $0x50] sm:$0xff]  ;;  %v7450_v46 = vmov 1.0|1.0  }
 0x2e7   : > { %v6905_v60 = vld [vmem:[#allocation8 + $0x1b4] ss:$8 sps:$4 sm:$0xff]   ;;  %vm3147_vm2 = vcmp.gt.f32.partialorder %v3139_v25, 1.0  ;;  %v3816_v24 = vmul.f32 0.5, %v3139_v25  ;;  %v6913_v4 = vld [vmem:[#allocation8 + $0xb0] ss:$8 sps:$4 sm:$0xff]   ;;  %4871 = vmatprep.mubr.msk.bf16.mxu0 %vm4870_vm1, %v7450_v46 }
 0x2e8   : > { %3555 = vmatpush1.bf16.msra.mxu0 %v6825_v49  ;;  %vm4874_vm3 = vmpackc.low %vm3147_vm2, %vm3147_vm2  ;;  %7562 = vst [vmem:[#allocation36_spill] sm:$0xff] %v6913_v4  ;;  %v3813_v29 = vmul.f32 0.5, %v3136_v27  ;;  %v3138_v48 = vld [vmem:[#allocation2 + $0x58] sm:$0xff]  ;;  %vm3144_vm4 = vcmp.gt.f32.partialorder %v3136_v27, 1.0  ;;  %v6933_v22 = vld [vmem:[#allocation8 + $0xa0] ss:$8 sps:$4 sm:$0xff]  }
 0x2e9   : > { %3596 = vmatpush1.bf16.msra.mxu1 %v6829_v51  ;;  %3556 = vmatprep.subr.bf16.mxu0 %v6831_v52  ;;  %v3820_v34 = vadd.f32 %v3816_v24, %v3812_v1  ;;  %7565 = vst [vmem:[#allocation39_spill] sm:$0xff] %v6933_v22  ;;  %vm3146_vm5 = vcmp.gt.f32.partialorder %v3138_v48, 1.0  ;;  %v6945_v25 = vld [vmem:[#allocation8 + $0x94] ss:$8 sps:$4 sm:$0xff]   ;;  %vm4872_vm6 = vmpackc.low %vm3144_vm4, %vm3144_vm4  ;;  %vm3826_vm8 = vcmp.gt.f32.partialorder %v6920_v23, 1.0 }
 0x2ea   : > { %3597 = vmatprep.subr.bf16.mxu1 %v6835_v53  ;;  %4875 = vmatprep.mubr.msk.bf16.mxu1 %vm4874_vm3, %v7450_v46  ;;  %v3817_v24 = vadd.f32 %v3813_v29, %v3809_v20  ;;  %7568 = vst [vmem:[#allocation42_spill] sm:$0xff] %v6945_v25  ;;  %v6963_v29 = vld [vmem:[#allocation8 + $0x80] ss:$8 sps:$4 sm:$0xff]   ;;  %vm4876_vm7 = vmpackc.low %vm3146_vm5, %vm3146_vm5  ;;  %v6988_v27 = vld [vmem:[#allocation11 + $0x30] sm:$0xff]  }
 0x2eb   : > { %v6929_v46 = vsel %vm3147_vm2, %v3812_v1, %v3820_v34  ;;  %v6951_v1 = vld [vmem:[#allocation8 + $0x90] ss:$8 sps:$4 sm:$0xff]   ;;  %v6961_v34 = vld [vmem:[#allocation8 + $0x184] ss:$8 sps:$4 sm:$0xff]   ;;  %7573 = vst [vmem:[#allocation47_spill] sm:$0xff] %v6963_v29  ;;  %7579 = vst [vmem:[#allocation52_spill] sm:$0xff] %v6988_v27 }
 0x2ec   : > { %3557 = vmatpush1.bf16.msra.mxu0 %v6837_v10  ;;  %v6936_v47 = vsel %vm3144_vm4, %v3809_v20, %v3817_v24  ;;  %7570 = vst [vmem:[#allocation44_spill] sm:$0xff] %v6951_v1  ;;  %v6953_v20 = vld [vmem:[#allocation8 + $0x190] ss:$8 sps:$4 sm:$0xff]   ;;  %7572 = vst [vmem:[#allocation46_spill] sm:$0xff] %v6961_v34  ;;  %v6965_v24 = vld [vmem:[#allocation8 + $0x180] ss:$8 sps:$4 sm:$0xff]  }
 0x2ed   : > { %3598 = vmatpush1.bf16.msra.mxu1 %v6839_v57  ;;  %3558 = vmatprep.subr.bf16.mxu0 %v6843_v58  ;;  %7571 = vst [vmem:[#allocation45_spill] sm:$0xff] %v6953_v20  ;;  %7574 = vst [vmem:[#allocation48_spill] sm:$0xff] %v6965_v24  ;;  %vm3825_vm9 = vcmp.gt.f32.partialorder %v6936_v47, 1.0  ;;  %vm3828_vm12 = vcmp.gt.f32.partialorder %v6929_v46, 1.0 }
 0x2ee   : > { %3599 = vmatprep.subr.bf16.mxu1 %v6847_v59  ;;  %vm4905_vm10 = vmpackc.low %vm3826_vm8, %vm3826_vm8 }
 0x2ef   : > { %vm4907_vm11 = vmpackc.low %vm3825_vm9, %vm3825_vm9 }
 0x2f0   : > { %3559 = vmatpush1.bf16.msra.mxu0 %v6849_v12  ;;  %vm4909_vm15 = vmpackc.low %vm3828_vm12, %vm3828_vm12 }
 0x2f1   : > { %3600 = vmatpush1.bf16.msra.mxu1 %v6853_v63  ;;  %3560 = vmatprep.subr.bf16.mxu0 %v6855_v40 }
 0x2f2   : > { %3601 = vmatprep.subr.bf16.mxu1 %v6859_v0 }
 0x2f4   : > { %3561 = vmatpush2.bf16.msra.mxu0 %v6861_v5 }
 0x2f5   : > { %3602 = vmatpush2.bf16.msra.mxu1 %v6863_v2  ;;  %3562 = vmatprep.subr.bf16.mxu0 %v6867_v35 }
 0x2f6   : > { %3603 = vmatprep.subr.bf16.mxu1 %v6871_v6  ;;  %v6926_v6 = vld [vmem:[#allocation8 + $0x1a4] ss:$8 sps:$4 sm:$0xff]  }
 0x2f7   : > { %7564 = vst [vmem:[#allocation38_spill] sm:$0xff] %v6926_v6 }
 0x2f8   : > { %3563 = vmatpush2.bf16.msra.mxu0 %v6873_v7 }
 0x2f9   : > { %3604 = vmatpush2.bf16.msra.mxu1 %v6877_v8  ;;  %3564 = vmatprep.subr.bf16.mxu0 %v6879_v9  ;;  %v6924_v8 = vld [vmem:[#allocation8 + $0xa4] ss:$8 sps:$4 sm:$0xff]  }
 0x2fa   : > { %3605 = vmatprep.subr.bf16.mxu1 %v6883_v13  ;;  %v6917_v13 = vld [vmem:[#allocation8 + $0x1b0] ss:$8 sps:$4 sm:$0xff]   ;;  %7563 = vst [vmem:[#allocation37_spill] sm:$0xff] %v6924_v8 }
 0x2fc   : > { %3565 = vmatpush2.bf16.msra.mxu0 %v6885_v14 }
 0x2fd   : > { %3606 = vmatpush2.bf16.msra.mxu1 %v6887_v15  ;;  %3566 = vmatprep.subr.bf16.mxu0 %v6891_v16  ;;  %v3811_v15 = vld [vmem:[#allocation2 + $0x8] sm:$0xff] }
 0x2fe   : > { %3607 = vmatprep.subr.bf16.mxu1 %v6895_v18  ;;  %v3815_v18 = vmul.f32 0.5, %v3138_v48  ;;  %v6992_v48 = vld [vmem:[#allocation11 + $0x68] sm:$0xff]  }
 0x2ff   : > { %7580 = vst [vmem:[#allocation53_spill] sm:$0xff] %v6992_v48 }
 0x300   : > { %3567 = vmatpush2.bf16.msra.mxu0 %v6897_v21  ;;  %v3819_v54 = vadd.f32 %v3815_v18, %v3811_v15  ;;  %v6949_v18 = vld [vmem:[#allocation8 + $0x194] ss:$8 sps:$4 sm:$0xff]  }
 0x301   : > { %3608 = vmatpush2.bf16.msra.mxu1 %v6899_v45  ;;  %3568 = vmatprep.subr.bf16.mxu0 %v6901_v3  ;;  %v6938_v45 = vld [vmem:[#allocation8 + $0x1a0] ss:$8 sps:$4 sm:$0xff]   ;;  %7569 = vst [vmem:[#allocation43_spill] sm:$0xff] %v6949_v18 }
 0x302   : > { %3609 = vmatprep.subr.bf16.mxu1 %v6905_v60  ;;  %7566 = vst [vmem:[#allocation40_spill] sm:$0xff] %v6938_v45  ;;  %v6941_v2 = vsel %vm3146_vm5, %v3811_v15, %v3819_v54  ;;  %v6957_v15 = vld [vmem:[#allocation8 + $0x84] ss:$8 sps:$4 sm:$0xff]   ;;  %v6969_v54 = vld [vmem:[#allocation11 + $0x78] sm:$0xff]  }
 0x303   : > { %7567 = vst [vmem:[#allocation41_spill] sm:$0xff] %v6941_v2  ;;  %7575 = vst [vmem:[#allocation49_spill] sm:$0xff] %v6969_v54  ;;  %v6979_v2 = vld [vmem:[#allocation11 + $0x38] sm:$0xff]  }
 0x304   : > { %3569 = vmatpush2.bf16.msra.mxu0 %v6913_v4  ;;  %7576 = vst [vmem:[#allocation50_spill] sm:$0xff] %v6979_v2 }
 0x305   : > { %3610 = vmatpush2.bf16.msra.mxu1 %v6917_v13  ;;  %3570 = vmatprep.subr.bf16.mxu0 %v6924_v8 }
 0x306   : > { %3611 = vmatprep.subr.bf16.mxu1 %v6926_v6 }
 0x308   : > { %3571 = vmatpush2.bf16.msra.mxu0 %v6933_v22 }
 0x309   : > { %3612 = vmatpush2.bf16.msra.mxu1 %v6938_v45  ;;  %3572 = vmatprep.subr.bf16.mxu0 %v6945_v25 }
 0x30a   : > { %3613 = vmatprep.subr.bf16.mxu1 %v6949_v18  ;;  %v7578_v18 = vmov 1.0|1.0  }
 0x30c   : > { %3573 = vmatpush2.bf16.msra.mxu0 %v6951_v1 }
 0x30d   : > { %3614 = vmatpush2.bf16.msra.mxu1 %v6953_v20  ;;  %3574 = vmatprep.subr.bf16.mxu0 %v6957_v15  ;;  %v6982_v20 = vld [vmem:[#allocation11 + $0x70] sm:$0xff]  }
 0x30e   : > { %3615 = vmatprep.subr.bf16.mxu1 %v6961_v34  ;;  %7577 = vst [vmem:[#allocation51_spill] sm:$0xff] %v6982_v20 }
 0x310   : > { %3575 = vmatpush2.bf16.msra.mxu0 %v6963_v29 }
 0x311   : > { %3616 = vmatpush2.bf16.msra.mxu1 %v6965_v24  ;;  %4964 = vmatprep.subr.bf16.mxu0 %v6969_v54  ;;  %v6996_v24 = vld [vmem:[#allocation11 + $0x28] sm:$0xff]  }
 0x312   : > { %3841 = vmatprep.subr.bf16.mxu1 %v6763_v17  ;;  %7581 = vst [vmem:[#allocation54_spill] sm:$0xff] %v6996_v24  ;;  %v7000_v17 = vld [vmem:[#allocation11 + $0x60] sm:$0xff]  }
 0x313   : > { %4873 = vmatmul.mubr.msk.bf16.vlgmr.msra.gmra.mxu0 %vm4872_vm6, %v7578_v18  ;;  %7582 = vst [vmem:[#allocation55_spill] sm:$0xff] %v7000_v17 }
 0x314   : > { %4877 = vmatmul.mubr.msk.bf16.vlgmr.msra.gmra.mxu1 %vm4876_vm7, %v7578_v18  ;;  %4965 = vmatpush3.bf16.msra.mxu0 %v6979_v2 }
 0x315   : > { %3842 = vmatpush1.bf16.msra.mxu1 %v6768_v11  ;;  %4966 = vmatprep.subr.bf16.mxu0 %v6982_v20  ;;  %v7004_v11 = vld [vmem:[#allocation11 + $0x20] sm:$0xff]  }
 0x316   : > { %3843 = vmatprep.subr.bf16.mxu1 %v6773_v26  ;;  %7583 = vst [vmem:[#allocation56_spill] sm:$0xff] %v7004_v11  ;;  %v7008_v26 = vld [vmem:[#allocation11 + $0x58] sm:$0xff]   ;;  %4906 = vmatprep.mubr.msk.bf16.mxu1 %vm4905_vm10, %v7578_v18 }
 0x317   : > { %7584 = vst [vmem:[#allocation57_spill] sm:$0xff] %v7008_v26 }
 0x318   : > { %4967 = vmatpush3.bf16.msra.mxu0 %v6988_v27 }
 0x319   : > { %3844 = vmatpush1.bf16.msra.mxu1 %v6779_v30  ;;  %4968 = vmatprep.subr.bf16.mxu0 %v6992_v48  ;;  %v7012_v30 = vld [vmem:[#allocation11 + $0x18] sm:$0xff]  }
 0x31a   : > { %3845 = vmatprep.subr.bf16.mxu1 %v6785_v56  ;;  %7585 = vst [vmem:[#allocation58_spill] sm:$0xff] %v7012_v30  ;;  %v7016_v56 = vld [vmem:[#allocation11 + $0x50] sm:$0xff]  }
 0x31b   : > { %7586 = vst [vmem:[#allocation59_spill] sm:$0xff] %v7016_v56 }
 0x31c   : > { %4969 = vmatpush3.bf16.msra.mxu0 %v6996_v24 }
 0x31d   : > { %3846 = vmatpush1.bf16.msra.mxu1 %v6789_v32  ;;  %4970 = vmatprep.subr.bf16.mxu0 %v7000_v17  ;;  %v7020_v32 = vld [vmem:[#allocation11 + $0x10] sm:$0xff]  }
 0x31e   : > { %3847 = vmatprep.subr.bf16.mxu1 %v6795_v33  ;;  %7587 = vst [vmem:[#allocation60_spill] sm:$0xff] %v7020_v32 }
 0x320   : > { %4971 = vmatpush3.bf16.msra.mxu0 %v7004_v11 }
 0x321   : > { %3848 = vmatpush1.bf16.msra.mxu1 %v6801_v62  ;;  %4972 = vmatprep.subr.bf16.mxu0 %v7008_v26 }
 0x322   : > { %3849 = vmatprep.subr.bf16.mxu1 %v6807_v38 }
 0x324   : > { %4973 = vmatpush3.bf16.msra.mxu0 %v7012_v30 }
 0x325   : > { %3850 = vmatpush1.bf16.msra.mxu1 %v6813_v41  ;;  %4974 = vmatprep.subr.bf16.mxu0 %v7016_v56 }
 0x326   : > { %3851 = vmatprep.subr.bf16.mxu1 %v6819_v43 }
 0x328   : > { %4975 = vmatpush3.bf16.msra.mxu0 %v7020_v32 }
 0x329   : > { %3852 = vmatpush1.bf16.msra.mxu1 %v6825_v49 }
 0x32a   : > { %3853 = vmatprep.subr.bf16.mxu1 %v6831_v52 }
 0x32d   : > { %3854 = vmatpush1.bf16.msra.mxu1 %v6837_v10 }
 0x32e   : > { %3855 = vmatprep.subr.bf16.mxu1 %v6843_v58 }
 0x331   : > { %3856 = vmatpush1.bf16.msra.mxu1 %v6849_v12 }
 0x332   : > { %3857 = vmatprep.subr.bf16.mxu1 %v6855_v40 }
 0x335   : > { %3858 = vmatpush2.bf16.msra.mxu1 %v6861_v5 }
 0x336   : > { %3859 = vmatprep.subr.bf16.mxu1 %v6867_v35 }
 0x339   : > { %3860 = vmatpush2.bf16.msra.mxu1 %v6873_v7 }
 0x33a   : > { %3861 = vmatprep.subr.bf16.mxu1 %v6879_v9 }
 0x33d   : > { %3862 = vmatpush2.bf16.msra.mxu1 %v6885_v14 }
 0x33e   : > { %3863 = vmatprep.subr.bf16.mxu1 %v6891_v16  ;;  %v7048_v16 = vld [vmem:[#allocation11 + $0x48] sm:$0xff]  }
 0x33f   : > { %7588 = vst [vmem:[#allocation61_spill] sm:$0xff] %v7048_v16  ;;  %4976 = vmatprep.subr.bf16.mxu0 %v7048_v16 }
 0x341   : > { %3864 = vmatpush2.bf16.msra.mxu1 %v6897_v21  ;;  %v7050_v21 = vld [vmem:[#allocation11 + $0x8] sm:$0xff]  }
 0x342   : > { %3865 = vmatprep.subr.bf16.mxu1 %v6901_v3  ;;  %7589 = vst [vmem:[#allocation62_spill] sm:$0xff] %v7050_v21  ;;  %4977 = vmatpush3.bf16.msra.mxu0 %v7050_v21 }
 0x345   : > { %3866 = vmatpush2.bf16.msra.mxu1 %v6913_v4 }
 0x346   : > { %3867 = vmatprep.subr.bf16.mxu1 %v6924_v8  ;;  %v7054_v8 = vld [vmem:[#allocation11 + $0x40] sm:$0xff]  }
 0x347   : > { %7590 = vst [vmem:[#allocation63_spill] sm:$0xff] %v7054_v8  ;;  %4978 = vmatprep.subr.bf16.mxu0 %v7054_v8 }
 0x349   : > { %3868 = vmatpush2.bf16.msra.mxu1 %v6933_v22  ;;  %v7056_v22 = vld [vmem:[#allocation11] sm:$0xff]  }
 0x34a   : > { %3869 = vmatprep.subr.bf16.mxu1 %v6945_v25  ;;  %7591 = vst [vmem:[#allocation64_spill] sm:$0xff] %v7056_v22  ;;  %4979 = vmatpush3.bf16.msra.mxu0 %v7056_v22 }
 0x34b   : > { %3882 = vmatprep.subr.bf16.mxu0 %v6765_v61 }
 0x34d   : > { %3870 = vmatpush2.bf16.msra.mxu1 %v6951_v1 }
 0x34e   : > { %3871 = vmatprep.subr.bf16.mxu1 %v6957_v15 }
 0x351   : > { %3872 = vmatpush2.bf16.msra.mxu1 %v6963_v29 }
 0x352   : > { %4986 = vmatprep.subr.bf16.mxu1 %v6969_v54 }
 0x354   : > { %4908 = vmatmul.mubr.msk.bf16.vlgmr.msra.gmra.mxu1 %vm4907_vm11, %v7578_v18 }
 0x355   : > { %4987 = vmatpush3.bf16.msra.mxu1 %v6979_v2 }
 0x356   : > { %4988 = vmatprep.subr.bf16.mxu1 %v6982_v20 }
 0x359   : > { %4989 = vmatpush3.bf16.msra.mxu1 %v6988_v27 }
 0x35a   : > { %4990 = vmatprep.subr.bf16.mxu1 %v6992_v48 }
 0x35d   : > { %4991 = vmatpush3.bf16.msra.mxu1 %v6996_v24 }
 0x35e   : > { %4992 = vmatprep.subr.bf16.mxu1 %v7000_v17  ;;  %v3119_v17 = vlaneseq }
 0x361   : > { %4993 = vmatpush3.bf16.msra.mxu1 %v7004_v11  ;;  %v3120_v11 = vshrl.u32 %v3119_v17, 7 }
 0x362   : > { %4994 = vmatprep.subr.bf16.mxu1 %v7008_v26  ;;  %v3117_v26 = vld [vmem:[#allocation9] sm:$0x3] }
 0x363   : > { %v3121_v24 = vsub.s32 0, %v3120_v11  ;;  %v3125_v48 = vsub.s32 1, %v3120_v11 }
 0x365   : > { %4995 = vmatpush3.bf16.msra.mxu1 %v7012_v30  ;;  %v7087_v30 = vrot.slane %v3117_v26, %v3121_v24  ;;  %v7600_v24 = vld [vmem:[#allocation43_spill] sm:$0xff] }
 0x366   : > { %4996 = vmatprep.subr.bf16.mxu1 %v7016_v56  ;;  %v7089_v56 = vrot.slane %v3117_v26, %v3125_v48  ;;  %v7602_v48 = vld [vmem:[#allocation41_spill] sm:$0xff] }
 0x367   : > { %7592 = vst [vmem:[#allocation65_spill] sm:$0xff] %v7087_v30  ;;  %vm3827_vm2 = vcmp.gt.f32.partialorder %v7602_v48, 1.0 }
 0x368   : > { %vm4911_vm3 = vmpackc.low %vm3827_vm2, %vm3827_vm2 }
 0x369   : > { %4997 = vmatpush3.bf16.msra.mxu1 %v7020_v32 }
 0x36a   : > { %4998 = vmatprep.subr.bf16.mxu1 %v7048_v16 }
 0x36d   : > { %4999 = vmatpush3.bf16.msra.mxu1 %v7050_v21 }
 0x36e   : > { %5000 = vmatprep.subr.bf16.mxu1 %v7054_v8 }
 0x371   : > { %5001 = vmatpush3.bf16.msra.mxu1 %v7056_v22 }
 0x372   : > { %4057 = vmatprep.subr.bf16.mxu1 %v6765_v61 }
 0x3d3   : > { %v3578_v32 = vpop.f32.mrf.mxu0 }
 0x3d4   : > { %v3619_v27 = vpop.f32.mrf.mxu1  ;;  %v3579_v16 = vadd.f32 %v3578_v32, %v7087_v30  ;;  %v7594_v32 = vld [vmem:[#allocation26_spill] sm:$0xff] }
 0x3d5   : > { %v3580_v21 = vpop.f32.mrf.mxu0 }
 0x3d6   : > { %v3621_v20 = vpop.f32.mrf.mxu1  ;;  %v7092_v8 = vadd.f32 %v3619_v27, %v3579_v16  ;;  %v3581_v22 = vadd.f32 %v3580_v21, %v7089_v56  ;;  %v7596_v16 = vld [vmem:[#allocation28_spill] sm:$0xff]  ;;  %v7597_v21 = vld [vmem:[#allocation30_spill] sm:$0xff]  ;;  %v7601_v27 = vld [vmem:[#allocation45_spill] sm:$0xff] }
 0x3d7   : > { %v3582_v61 = vpop.f32.mrf.mxu0 }
 0x3d8   : > { %v3623_v2 = vpop.f32.mrf.mxu1  ;;  %v7096_v17 = vadd.f32 %v3621_v20, %v3581_v22  ;;  %vm3628_vm13 = vcmp.gt.f32.partialorder %v7092_v8, 1.0  ;;  %v7593_v61 = vld [vmem:[#allocation25_spill] sm:$0xff]  ;;  %v7598_v22 = vld [vmem:[#allocation32_spill] sm:$0xff]  ;;  %v7599_v20 = vld [vmem:[#allocation34_spill] sm:$0xff] }
 0x3d9   : > { %v3583_v11 = vpop.f32.mrf.mxu0  ;;  %vm4898_vm1 = vmpackc.low %vm3628_vm13, %vm3628_vm13  ;;  %v7595_v2 = vld [vmem:[#allocation27_spill] sm:$0xff] }
 0x3da   : > { %v3624_v26 = vpop.f32.mrf.mxu1  ;;  %vm3629_vm14 = vcmp.gt.f32.partialorder %v7096_v17, 1.0  ;;  %v7603_v11 = vld [vmem:[#allocation48_spill] sm:$0xff] }
 0x3db   : > { %vm4896_vm0 = vmpackc.low %vm3629_vm14, %vm3629_vm14  ;;  %v7604_v26 = vld [vmem:[#allocation18_spill] sm:$0xff] }
 0x3dc   : > { %4897 = vmatprep.mubr.msk.bf16.mxu0 %vm4896_vm0, %v7578_v18 }
 0x3dd   : > { %4899 = vmatmul.mubr.msk.bf16.vlgmr.msra.gmra.mxu0 %vm4898_vm1, %v7578_v18 }
 0x3de   : > { %3883 = vmatpush1.bf16.msra.mxu0 %v6770_v19  ;;  %4910 = vmatprep.mubr.msk.bf16.mxu0 %vm4909_vm15, %v7578_v18 }
 0x3df   : > { %3884 = vmatprep.subr.bf16.mxu0 %v6777_v28 }
 0x3e2   : > { %3885 = vmatpush1.bf16.msra.mxu0 %v6782_v50 }
 0x3e3   : > { %3886 = vmatprep.subr.bf16.mxu0 %v6787_v31 }
 0x3e6   : > { %3887 = vmatpush1.bf16.msra.mxu0 %v6791_v55 }
 0x3e7   : > { %3888 = vmatprep.subr.bf16.mxu0 %v6799_v36 }
 0x3ea   : > { %3889 = vmatpush1.bf16.msra.mxu0 %v6805_v37 }
 0x3eb   : > { %3890 = vmatprep.subr.bf16.mxu0 %v6811_v39 }
 0x3ee   : > { %3891 = vmatpush1.bf16.msra.mxu0 %v6815_v42 }
 0x3ef   : > { %3892 = vmatprep.subr.bf16.mxu0 %v6823_v44 }
 0x3f2   : > { %3893 = vmatpush1.bf16.msra.mxu0 %v6829_v51 }
 0x3f3   : > { %3894 = vmatprep.subr.bf16.mxu0 %v6835_v53 }
 0x3f6   : > { %3895 = vmatpush1.bf16.msra.mxu0 %v6839_v57 }
 0x3f7   : > { %3896 = vmatprep.subr.bf16.mxu0 %v6847_v59 }
 0x3fa   : > { %3897 = vmatpush1.bf16.msra.mxu0 %v6853_v63 }
 0x3fb   : > { %3898 = vmatprep.subr.bf16.mxu0 %v6859_v0 }
 0x3fe   : > { %3899 = vmatpush2.bf16.msra.mxu0 %v7593_v61 }
 0x3ff   : > { %3900 = vmatprep.subr.bf16.mxu0 %v7594_v32 }
 0x402   : > { %3901 = vmatpush2.bf16.msra.mxu0 %v7595_v2 }
 0x403   : > { %3902 = vmatprep.subr.bf16.mxu0 %v7596_v16 }
 0x406   : > { %3903 = vmatpush2.bf16.msra.mxu0 %v7597_v21 }
 0x407   : > { %3904 = vmatprep.subr.bf16.mxu0 %v7598_v22 }
 0x40a   : > { %3905 = vmatpush2.bf16.msra.mxu0 %v7599_v20 }
 0x40b   : > { %3906 = vmatprep.subr.bf16.mxu0 %v6905_v60 }
 0x40e   : > { %3907 = vmatpush2.bf16.msra.mxu0 %v6917_v13 }
 0x40f   : > { %3908 = vmatprep.subr.bf16.mxu0 %v6926_v6  ;;  %v7605_v6 = vld [vmem:[#allocation20_spill] sm:$0xff] }
 0x412   : > { %3909 = vmatpush2.bf16.msra.mxu0 %v6938_v45  ;;  %v7606_v45 = vld [vmem:[#allocation21_spill] sm:$0xff] }
 0x413   : > { %3910 = vmatprep.subr.bf16.mxu0 %v7600_v24  ;;  %v7607_v24 = vld [vmem:[#allocation22_spill] sm:$0xff] }
 0x416   : > { %3911 = vmatpush2.bf16.msra.mxu0 %v7601_v27  ;;  %v7608_v27 = vld [vmem:[#allocation23_spill] sm:$0xff] }
 0x417   : > { %3912 = vmatprep.subr.bf16.mxu0 %v6961_v34  ;;  %v7609_v34 = vld [vmem:[#allocation24_spill] sm:$0xff] }
 0x41a   : > { %3913 = vmatpush2.bf16.msra.mxu0 %v7603_v11 }
 0x41b   : > { %4016 = vmatprep.subr.bf16.mxu0 %v7604_v26 }
 0x41d   : > { %4912 = vmatmul.mubr.msk.bf16.vlgmr.msra.gmra.mxu0 %vm4911_vm3, %v7578_v18 }
 0x41e   : > { %4017 = vmatpush1.bf16.msra.mxu0 %v7605_v6  ;;  %v7611_v6 = vld [vmem:[#allocation33_spill] sm:$0xff] }
 0x41f   : > { %4018 = vmatprep.subr.bf16.mxu0 %v7606_v45  ;;  %v7612_v45 = vld [vmem:[#allocation37_spill] sm:$0xff] }
 0x422   : > { %4019 = vmatpush1.bf16.msra.mxu0 %v7607_v24  ;;  %v3875_v24 = vpop.f32.mrf.mxu1 }
 0x423   : > { %4020 = vmatprep.subr.bf16.mxu0 %v7608_v27 }
 0x424   : > { %v3877_v27 = vpop.f32.mrf.mxu1 }
 0x426   : > { %4021 = vmatpush1.bf16.msra.mxu0 %v7609_v34  ;;  %v7613_v34 = vld [vmem:[#allocation39_spill] sm:$0xff]  ;;  %v3879_v26 = vpop.f32.mrf.mxu1 }
 0x427   : > { %4022 = vmatprep.subr.bf16.mxu0 %v6795_v33  ;;  %v7610_v33 = vld [vmem:[#allocation31_spill] sm:$0xff] }
 0x42a   : > { %4023 = vmatpush1.bf16.msra.mxu0 %v6801_v62 }
 0x42b   : > { %4024 = vmatprep.subr.bf16.mxu0 %v6807_v38 }
 0x42e   : > { %4025 = vmatpush1.bf16.msra.mxu0 %v6813_v41 }
 0x42f   : > { %4026 = vmatprep.subr.bf16.mxu0 %v6819_v43 }
 0x432   : > { %4027 = vmatpush1.bf16.msra.mxu0 %v6825_v49 }
 0x433   : > { %4028 = vmatprep.subr.bf16.mxu0 %v6831_v52 }
 0x436   : > { %4029 = vmatpush1.bf16.msra.mxu0 %v6837_v10 }
 0x437   : > { %4030 = vmatprep.subr.bf16.mxu0 %v6843_v58 }
 0x43a   : > { %4031 = vmatpush1.bf16.msra.mxu0 %v6849_v12 }
 0x43b   : > { %4032 = vmatprep.subr.bf16.mxu0 %v6855_v40 }
 0x43e   : > { %4033 = vmatpush2.bf16.msra.mxu0 %v6861_v5 }
 0x43f   : > { %4034 = vmatprep.subr.bf16.mxu0 %v6867_v35 }
 0x442   : > { %4035 = vmatpush2.bf16.msra.mxu0 %v6873_v7 }
 0x443   : > { %4036 = vmatprep.subr.bf16.mxu0 %v6879_v9 }
 0x446   : > { %4037 = vmatpush2.bf16.msra.mxu0 %v6885_v14 }
 0x447   : > { %4038 = vmatprep.subr.bf16.mxu0 %v7610_v33 }
 0x44a   : > { %4039 = vmatpush2.bf16.msra.mxu0 %v7611_v6  ;;  %v3880_v6 = vpop.f32.mrf.mxu1 }
 0x44b   : > { %4040 = vmatprep.subr.bf16.mxu0 %v6901_v3  ;;  %v3985_v3 = vld [vmem:[#allocation2 + $0x20] sm:$0xff] }
 0x44e   : > { %4041 = vmatpush2.bf16.msra.mxu0 %v6913_v4  ;;  %v3989_v4 = vmul.f32 0.5, %v6920_v23  ;;  %v7617_v23 = vld [vmem:[#allocation50_spill] sm:$0xff] }
 0x44f   : > { %4042 = vmatprep.subr.bf16.mxu0 %v7612_v45  ;;  %v3988_v45 = vmul.f32 0.5, %v6936_v47  ;;  %v7618_v47 = vld [vmem:[#allocation51_spill] sm:$0xff] }
 0x450   : > { %v3993_v33 = vadd.f32 %v3989_v4, %v3985_v3 }
 0x452   : > { %4043 = vmatpush2.bf16.msra.mxu0 %v7613_v34  ;;  %v3984_v34 = vld [vmem:[#allocation2 + $0x40] sm:$0xff] }
 0x453   : > { %4044 = vmatprep.subr.bf16.mxu0 %v6945_v25  ;;  %v3992_v25 = vadd.f32 %v3988_v45, %v3984_v34  ;;  %v7620_v45 = vld [vmem:[#allocation53_spill] sm:$0xff] }
 0x455   : > { %v7190_v6 = vsel %vm3825_vm9, %v3984_v34, %v3992_v25  ;;  %v7621_v34 = vld [vmem:[#allocation54_spill] sm:$0xff] }
 0x456   : > { %4045 = vmatpush2.bf16.msra.mxu0 %v6951_v1  ;;  %v7185_v1 = vsel %vm3826_vm8, %v3985_v3, %v3993_v33  ;;  %7615 = vst [vmem:[#allocation26_spill] sm:$0xff] %v7190_v6  ;;  %vm4000_vm6 = vcmp.gt.f32.partialorder %v7190_v6, 1.0  ;;  %v7619_v33 = vld [vmem:[#allocation52_spill] sm:$0xff] }
 0x457   : > { %4046 = vmatprep.subr.bf16.mxu0 %v6957_v15  ;;  %7614 = vst [vmem:[#allocation25_spill] sm:$0xff] %v7185_v1  ;;  %vm4001_vm4 = vcmp.gt.f32.partialorder %v7185_v1, 1.0  ;;  %vm4926_vm7 = vmpackc.low %vm4000_vm6, %vm4000_vm6  ;;  %v7622_v1 = vld [vmem:[#allocation55_spill] sm:$0xff]  ;;  %v7623_v6 = vld [vmem:[#allocation56_spill] sm:$0xff] }
 0x458   : > { %vm4924_vm5 = vmpackc.low %vm4001_vm4, %vm4001_vm4 }
 0x459   : > { %4925 = vmatprep.mubr.msk.bf16.mxu0 %vm4924_vm5, %v7578_v18 }
 0x45a   : > { %4047 = vmatpush2.bf16.msra.mxu0 %v6963_v29 }
 0x45b   : > { %5008 = vmatprep.subr.bf16.mxu0 %v6969_v54 }
 0x45d   : > { %4927 = vmatmul.mubr.msk.bf16.vlgmr.msra.gmra.mxu0 %vm4926_vm7, %v7578_v18 }
 0x45e   : > { %5009 = vmatpush3.bf16.msra.mxu0 %v7617_v23  ;;  %v7627_v23 = vld [vmem:[#allocation60_spill] sm:$0xff] }
 0x45f   : > { %5010 = vmatprep.subr.bf16.mxu0 %v7618_v47  ;;  %v7628_v47 = vld [vmem:[#allocation61_spill] sm:$0xff] }
 0x462   : > { %5011 = vmatpush3.bf16.msra.mxu0 %v7619_v33  ;;  %v7630_v33 = vld [vmem:[#allocation63_spill] sm:$0xff] }
 0x463   : > { %5012 = vmatprep.subr.bf16.mxu0 %v7620_v45  ;;  %v7631_v45 = vld [vmem:[#allocation64_spill] sm:$0xff] }
 0x466   : > { %5013 = vmatpush3.bf16.msra.mxu0 %v7621_v34  ;;  %v7632_v34 = vld [vmem:[#allocation19_spill] sm:$0xff] }
 0x467   : > { %5014 = vmatprep.subr.bf16.mxu0 %v7622_v1  ;;  %v3987_v1 = vld [vmem:[#allocation2 + $0x38] sm:$0xff] }
 0x46a   : > { %5015 = vmatpush3.bf16.msra.mxu0 %v7623_v6  ;;  %v3991_v6 = vmul.f32 0.5, %v6929_v46 }
 0x49d   : > { %v4980_v14 = vpop.f32.mrf.mxu0 }
 0x49f   : > { %v4981_v26 = vpop.f32.mrf.mxu0 }
 0x4a0   : > { %v7200_v3 = vadd.f32 %v4981_v26, %v4980_v14  ;;  %v7624_v14 = vld [vmem:[#allocation57_spill] sm:$0xff]  ;;  %v7625_v26 = vld [vmem:[#allocation58_spill] sm:$0xff] }
 0x4a1   : > { %v4983_v4 = vpop.f32.mrf.mxu0  ;;  %5016 = vmatprep.subr.bf16.mxu0 %v7624_v14  ;;  %v3876_v14 = vadd.f32 %v3875_v24, %v7087_v30 }
 0x4a2   : > { %7616 = vst [vmem:[#allocation27_spill] sm:$0xff] %v7200_v3  ;;  %5017 = vmatpush3.bf16.msra.mxu0 %v7625_v26  ;;  %v7626_v4 = vld [vmem:[#allocation59_spill] sm:$0xff]  ;;  %v3995_v26 = vadd.f32 %v3991_v6, %v3987_v1 }
 0x4a3   : > { %v4984_v25 = vpop.f32.mrf.mxu0  ;;  %5018 = vmatprep.subr.bf16.mxu0 %v7626_v4  ;;  %v3923_v4 = vmul.f32 0.5, %v7092_v8  ;;  %v7648_v8 = vld [vmem:[#allocation49_spill] sm:$0xff] }
 0x4a4   : > { %v7629_v25 = vld [vmem:[#allocation62_spill] sm:$0xff] }
 0x4a6   : > { %5019 = vmatpush3.bf16.msra.mxu0 %v7627_v23  ;;  %v3878_v23 = vadd.f32 %v3877_v27, %v7089_v56 }
 0x4a7   : > { %5020 = vmatprep.subr.bf16.mxu0 %v7628_v47 }
 0x4aa   : > { %5021 = vmatpush3.bf16.msra.mxu0 %v7629_v25 }
 0x4ab   : > { %5022 = vmatprep.subr.bf16.mxu0 %v7630_v33  ;;  %v7225_v33 = vsel %vm3828_vm12, %v3987_v1, %v3995_v26  ;;  %v7650_v1 = vld [vmem:[#allocation26_spill] sm:$0xff] }
 0x4ac   : > { %vm4003_vm8 = vcmp.gt.f32.partialorder %v7225_v33, 1.0 }
 0x4ad   : > { %vm4928_vm11 = vmpackc.low %vm4003_vm8, %vm4003_vm8 }
 0x4ae   : > { %5023 = vmatpush3.bf16.msra.mxu0 %v7631_v45  ;;  %v3924_v45 = vmul.f32 0.5, %v7096_v17 }
 0x4af   : > { %4232 = vmatprep.subr.bf16.mxu0 %v7632_v34 }
 0x4dd   : > { %v3916_v3 = vpop.f32.mrf.mxu0 }
 0x4de   : > { %v3917_v47 = vadd.f32 %v3916_v3, %v3876_v14  ;;  %v7653_v14 = vld [vmem:[#allocation51_spill] sm:$0xff] }
 0x4df   : > { %v3918_v54 = vpop.f32.mrf.mxu0 }
 0x4e0   : > { %v3925_v34 = vadd.f32 %v3923_v4, %v3917_v47  ;;  %v3919_v25 = vadd.f32 %v3918_v54, %v3878_v23  ;;  %v4160_v54 = vld [vmem:[#allocation2 + $0x70] sm:$0xff]  ;;  %v7652_v23 = vld [vmem:[#allocation50_spill] sm:$0xff] }
 0x4e1   : > { %v3920_v29 = vpop.f32.mrf.mxu0 }
 0x4e2   : > { %v7230_v24 = vsel %vm3628_vm13, %v3917_v47, %v3925_v34  ;;  %v3926_v6 = vadd.f32 %v3924_v45, %v3919_v25  ;;  %v4163_v29 = vmul.f32 0.5, %v7650_v1 }
 0x4e3   : > { %v3921_v30 = vpop.f32.mrf.mxu0  ;;  %vm3929_vm9 = vcmp.gt.f32.partialorder %v7230_v24, 1.0 }
 0x4e4   : > { %v7236_v46 = vsel %vm3629_vm14, %v3919_v25, %v3926_v6  ;;  %vm4917_vm13 = vmpackc.low %vm3929_vm9, %vm3929_vm9  ;;  %v7633_v30 = vld [vmem:[#allocation38_spill] sm:$0xff]  ;;  %v7654_v25 = vld [vmem:[#allocation52_spill] sm:$0xff] }
 0x4e5   : > { %vm3930_vm10 = vcmp.gt.f32.partialorder %v7236_v46, 1.0  ;;  %v7655_v6 = vld [vmem:[#allocation53_spill] sm:$0xff] }
 0x4e6   : > { %vm4915_vm12 = vmpackc.low %vm3930_vm10, %vm3930_vm10 }
 0x4e7   : > { %4916 = vmatprep.mubr.msk.bf16.mxu1 %vm4915_vm12, %v7578_v18 }
 0x4e8   : > { %4918 = vmatmul.mubr.msk.bf16.vlgmr.msra.gmra.mxu1 %vm4917_vm13, %v7578_v18 }
 0x4e9   : > { %4058 = vmatpush1.bf16.msra.mxu1 %v6770_v19  ;;  %4929 = vmatprep.mubr.msk.bf16.mxu1 %vm4928_vm11, %v7578_v18  ;;  %v3990_v19 = vmul.f32 0.5, %v7602_v48 }
 0x4ea   : > { %4059 = vmatprep.subr.bf16.mxu1 %v6777_v28  ;;  %v3986_v28 = vld [vmem:[#allocation2 + $0x10] sm:$0xff] }
 0x4ed   : > { %4060 = vmatpush1.bf16.msra.mxu1 %v6782_v50  ;;  %v3994_v50 = vadd.f32 %v3990_v19, %v3986_v28  ;;  %v6027_v19 = vmov 0.0  }
 0x4ee   : > { %4061 = vmatprep.subr.bf16.mxu1 %v6787_v31  ;;  %v7634_v31 = vld [vmem:[#allocation40_spill] sm:$0xff] }
 0x4f1   : > { %4062 = vmatpush1.bf16.msra.mxu1 %v6791_v55  ;;  %v7635_v55 = vld [vmem:[#allocation43_spill] sm:$0xff] }
 0x4f2   : > { %4063 = vmatprep.subr.bf16.mxu1 %v6799_v36  ;;  %v7282_v36 = vsel %vm3827_vm2, %v3986_v28, %v3994_v50 }
 0x4f3   : > { %vm4002_vm14 = vcmp.gt.f32.partialorder %v7282_v36, 1.0 }
 0x4f4   : > { %vm4930_vm15 = vmpackc.low %vm4002_vm14, %vm4002_vm14 }
 0x4f5   : > { %4064 = vmatpush1.bf16.msra.mxu1 %v6805_v37  ;;  %v7636_v37 = vld [vmem:[#allocation45_spill] sm:$0xff] }
 0x4f6   : > { %4065 = vmatprep.subr.bf16.mxu1 %v6811_v39  ;;  %v7637_v39 = vld [vmem:[#allocation46_spill] sm:$0xff] }
 0x4f9   : > { %4066 = vmatpush1.bf16.msra.mxu1 %v6815_v42  ;;  %v5779_v42 = vld [vmem:[#allocation8 + $0x74] ss:$8 sps:$4 sm:$0xff]  }
 0x4fa   : > { %4067 = vmatprep.subr.bf16.mxu1 %v6823_v44  ;;  %v5780_v44 = vld [vmem:[#allocation8 + $0x70] ss:$8 sps:$4 sm:$0xff]  }
 0x4fd   : > { %4068 = vmatpush1.bf16.msra.mxu1 %v6829_v51  ;;  %v5781_v51 = vld [vmem:[#allocation8 + $0x64] ss:$8 sps:$4 sm:$0xff]  }
 0x4fe   : > { %4069 = vmatprep.subr.bf16.mxu1 %v6835_v53  ;;  %v5782_v53 = vld [vmem:[#allocation8 + $0x60] ss:$8 sps:$4 sm:$0xff]  }
 0x501   : > { %4070 = vmatpush1.bf16.msra.mxu1 %v6839_v57  ;;  %v5783_v57 = vld [vmem:[#allocation8 + $0x54] ss:$8 sps:$4 sm:$0xff]  }
 0x502   : > { %4071 = vmatprep.subr.bf16.mxu1 %v6847_v59  ;;  %v5784_v59 = vld [vmem:[#allocation8 + $0x50] ss:$8 sps:$4 sm:$0xff]  }
 0x505   : > { %4072 = vmatpush1.bf16.msra.mxu1 %v6853_v63  ;;  %v5785_v63 = vld [vmem:[#allocation8 + $0x44] ss:$8 sps:$4 sm:$0xff]  }
 0x506   : > { %4073 = vmatprep.subr.bf16.mxu1 %v6859_v0 }
 0x509   : > { %4074 = vmatpush2.bf16.msra.mxu1 %v7593_v61  ;;  %v4159_v61 = vld [vmem:[#allocation2 + $0x60] sm:$0xff] }
 0x50a   : > { %4075 = vmatprep.subr.bf16.mxu1 %v7594_v32  ;;  %v7320_v32 = vld [vmem:[#allocation12] ss:$0 sm:$0xff] }
 0x50d   : > { %4076 = vmatpush2.bf16.msra.mxu1 %v7595_v2  ;;  %v4167_v2 = vadd.f32 %v4163_v29, %v4159_v61 }
 0x50e   : > { %4077 = vmatprep.subr.bf16.mxu1 %v7596_v16 }
 0x511   : > { %4078 = vmatpush2.bf16.msra.mxu1 %v7597_v21  ;;  %v4171_v21 = vsel %vm4000_vm6, %v4159_v61, %v4167_v2 }
 0x512   : > { %4079 = vmatprep.subr.bf16.mxu1 %v7598_v22  ;;  %v7651_v22 = vld [vmem:[#allocation27_spill] sm:$0xff]  ;;  %vm4175_vm2 = vcmp.gt.f32.partialorder %v4171_v21, 1.0 }
 0x513   : > { %vm4945_vm3 = vmpackc.low %vm4175_vm2, %vm4175_vm2  ;;  %v5790_v21 = vld [vmem:[#allocation8 + $0x150] ss:$8 sps:$4 sm:$0xff]  }
 0x515   : > { %4080 = vmatpush2.bf16.msra.mxu1 %v7599_v20  ;;  %v3799_v20 = vadd.f32 %v7651_v22, %v7320_v32  ;;  %v5791_v22 = vld [vmem:[#allocation8 + $0x144] ss:$8 sps:$4 sm:$0xff]  }
 0x516   : > { %4081 = vmatprep.subr.bf16.mxu1 %v6905_v60 }
 0x517   : > { %v3977_v47 = vmul.f32 0.5, %v3799_v20 }
 0x519   : > { %4082 = vmatpush2.bf16.msra.mxu1 %v6917_v13 }
 0x51a   : > { %4083 = vmatprep.subr.bf16.mxu1 %v7633_v30 }
 0x51d   : > { %4084 = vmatpush2.bf16.msra.mxu1 %v7634_v31 }
 0x51e   : > { %4085 = vmatprep.subr.bf16.mxu1 %v7635_v55 }
 0x521   : > { %4086 = vmatpush2.bf16.msra.mxu1 %v7636_v37 }
 0x522   : > { %4087 = vmatprep.subr.bf16.mxu1 %v7637_v39 }
 0x525   : > { %4088 = vmatpush2.bf16.msra.mxu1 %v7603_v11 }
 0x526   : > { %4191 = vmatprep.subr.bf16.mxu1 %v5779_v42 }
 0x528   : > { %4931 = vmatmul.mubr.msk.bf16.vlgmr.msra.gmra.mxu1 %vm4930_vm15, %v7578_v18 }
 0x529   : > { %4192 = vmatpush1.bf16.msra.mxu1 %v5780_v44  ;;  %v7656_v44 = vld [vmem:[#allocation54_spill] sm:$0xff] }
 0x52a   : > { %4193 = vmatprep.subr.bf16.mxu1 %v5781_v51  ;;  %v7657_v51 = vld [vmem:[#allocation55_spill] sm:$0xff] }
 0x52d   : > { %4194 = vmatpush1.bf16.msra.mxu1 %v5782_v53  ;;  %v7658_v53 = vld [vmem:[#allocation56_spill] sm:$0xff] }
 0x52e   : > { %4195 = vmatprep.subr.bf16.mxu1 %v5783_v57  ;;  %v7659_v57 = vld [vmem:[#allocation57_spill] sm:$0xff] }
 0x531   : > { %4196 = vmatpush1.bf16.msra.mxu1 %v5784_v59  ;;  %v7660_v59 = vld [vmem:[#allocation58_spill] sm:$0xff] }
 0x532   : > { %4197 = vmatprep.subr.bf16.mxu1 %v5785_v63  ;;  %v7661_v63 = vld [vmem:[#allocation59_spill] sm:$0xff] }
 0x535   : > { %4198 = vmatpush1.bf16.msra.mxu1 %v6801_v62  ;;  %v7638_v62 = vld [vmem:[#allocation29_spill] sm:$0xff] }
 0x536   : > { %4199 = vmatprep.subr.bf16.mxu1 %v6807_v38  ;;  %v7639_v38 = vld [vmem:[#allocation31_spill] sm:$0xff] }
 0x539   : > { %4200 = vmatpush1.bf16.msra.mxu1 %v6813_v41  ;;  %v7640_v41 = vld [vmem:[#allocation33_spill] sm:$0xff] }
 0x53a   : > { %4201 = vmatprep.subr.bf16.mxu1 %v6819_v43  ;;  %v7641_v43 = vld [vmem:[#allocation35_spill] sm:$0xff] }
 0x53d   : > { %4202 = vmatpush1.bf16.msra.mxu1 %v6825_v49  ;;  %v7642_v49 = vld [vmem:[#allocation36_spill] sm:$0xff] }
 0x53e   : > { %4203 = vmatprep.subr.bf16.mxu1 %v6831_v52  ;;  %v7643_v52 = vld [vmem:[#allocation37_spill] sm:$0xff] }
 0x541   : > { %4204 = vmatpush1.bf16.msra.mxu1 %v6837_v10  ;;  %v7644_v10 = vld [vmem:[#allocation39_spill] sm:$0xff] }
 0x542   : > { %4205 = vmatprep.subr.bf16.mxu1 %v6843_v58  ;;  %v7645_v58 = vld [vmem:[#allocation42_spill] sm:$0xff] }
 0x545   : > { %4206 = vmatpush1.bf16.msra.mxu1 %v6849_v12  ;;  %v4050_v12 = vpop.f32.mrf.mxu0 }
 0x546   : > { %4207 = vmatprep.subr.bf16.mxu1 %v6855_v40  ;;  %v7646_v40 = vld [vmem:[#allocation44_spill] sm:$0xff] }
 0x547   : > { %v4052_v0 = vpop.f32.mrf.mxu0 }
 0x549   : > { %4208 = vmatpush2.bf16.msra.mxu1 %v6861_v5  ;;  %v4054_v5 = vpop.f32.mrf.mxu0 }
 0x54a   : > { %4209 = vmatprep.subr.bf16.mxu1 %v6867_v35  ;;  %v7647_v35 = vld [vmem:[#allocation47_spill] sm:$0xff] }
 0x54d   : > { %4210 = vmatpush2.bf16.msra.mxu1 %v6873_v7  ;;  %v4055_v7 = vpop.f32.mrf.mxu0 }
 0x54e   : > { %4211 = vmatprep.subr.bf16.mxu1 %v6879_v9  ;;  %v7649_v9 = vld [vmem:[#allocation25_spill] sm:$0xff]  ;;  %v4053_v7 = vadd.f32 %v4052_v0, %v7089_v56 }
 0x54f   : > { %v4164_v60 = vmul.f32 0.5, %v7649_v9  ;;  %v4098_v9 = vmul.f32 0.5, %v7230_v24  ;;  %v5787_v24 = vld [vmem:[#allocation8 + $0x164] ss:$8 sps:$4 sm:$0xff]  }
 0x551   : > { %4212 = vmatpush2.bf16.msra.mxu1 %v7638_v62  ;;  %v4168_v17 = vadd.f32 %v4164_v60, %v4160_v54  ;;  %v7662_v62 = vld [vmem:[#allocation60_spill] sm:$0xff] }
 0x552   : > { %4213 = vmatprep.subr.bf16.mxu1 %v7639_v38  ;;  %v7663_v38 = vld [vmem:[#allocation61_spill] sm:$0xff] }
 0x553   : > { %v4172_v16 = vsel %vm4001_vm4, %v4160_v54, %v4168_v17  ;;  %vm3805_vm4 = vcmp.gt.f32.partialorder %v3799_v20, 1.0  ;;  %v4099_v17 = vmul.f32 0.5, %v7236_v46  ;;  %v5788_v46 = vld [vmem:[#allocation8 + $0x160] ss:$8 sps:$4 sm:$0xff]  }
 0x554   : > { %vm4176_vm0 = vcmp.gt.f32.partialorder %v4172_v16, 1.0  ;;  %v4900_v28 = vsel %vm3805_vm4, 1.0, %v6027_v19  ;;  %v5792_v20 = vld [vmem:[#allocation8 + $0x140] ss:$8 sps:$4 sm:$0xff]  }
 0x555   : > { %4214 = vmatpush2.bf16.msra.mxu1 %v7640_v41  ;;  %vm4943_vm1 = vmpackc.low %vm4176_vm0, %vm4176_vm0  ;;  %v7664_v41 = vld [vmem:[#allocation62_spill] sm:$0xff] }
 0x556   : > { %4215 = vmatprep.subr.bf16.mxu1 %v7641_v43  ;;  %4944 = vmatprep.mubr.msk.bf16.mxu1 %vm4943_vm1, %v7578_v18  ;;  %v7665_v43 = vld [vmem:[#allocation63_spill] sm:$0xff] }
 0x559   : > { %4216 = vmatpush2.bf16.msra.mxu1 %v7642_v49  ;;  %v7666_v49 = vld [vmem:[#allocation64_spill] sm:$0xff] }
 0x55a   : > { %4217 = vmatprep.subr.bf16.mxu1 %v7643_v52  ;;  %v4166_v52 = vmul.f32 0.5, %v7225_v33  ;;  %v5786_v33 = vld [vmem:[#allocation8 + $0x170] ss:$8 sps:$4 sm:$0xff]  }
 0x55d   : > { %4218 = vmatpush2.bf16.msra.mxu1 %v7644_v10  ;;  %v4162_v10 = vld [vmem:[#allocation2 + $0x28] sm:$0xff] }
 0x55e   : > { %4219 = vmatprep.subr.bf16.mxu1 %v7645_v58  ;;  %v7667_v58 = vld [vmem:[#allocation65_spill] sm:$0xff]  ;;  %v4170_v5 = vadd.f32 %v4166_v52, %v4162_v10 }
 0x560   : > { %v4174_v1 = vsel %vm4003_vm8, %v4162_v10, %v4170_v5 }
 0x561   : > { %4220 = vmatpush2.bf16.msra.mxu1 %v7646_v40  ;;  %v4051_v40 = vadd.f32 %v4050_v12, %v7667_v58  ;;  %vm4178_vm6 = vcmp.gt.f32.partialorder %v4174_v1, 1.0 }
 0x562   : > { %4221 = vmatprep.subr.bf16.mxu1 %v6957_v15  ;;  %vm4947_vm11 = vmpackc.low %vm4178_vm6, %vm4178_vm6 }
 0x565   : > { %4222 = vmatpush2.bf16.msra.mxu1 %v7647_v35 }
 0x566   : > { %5030 = vmatprep.subr.bf16.mxu1 %v7648_v8 }
 0x568   : > { %4946 = vmatmul.mubr.msk.bf16.vlgmr.msra.gmra.mxu1 %vm4945_vm3, %v7578_v18 }
 0x569   : > { %5031 = vmatpush3.bf16.msra.mxu1 %v7652_v23  ;;  %v5796_v23 = vld [vmem:[#allocation8 + $0x120] ss:$8 sps:$4 sm:$0xff]  }
 0x56a   : > { %5032 = vmatprep.subr.bf16.mxu1 %v7653_v14  ;;  %v5799_v14 = vld [vmem:[#allocation8 + $0x104] ss:$8 sps:$4 sm:$0xff]  }
 0x56d   : > { %5033 = vmatpush3.bf16.msra.mxu1 %v7654_v25  ;;  %v5802_v25 = vld [vmem:[#allocation8 + $0x1f0] ss:$8 sps:$4 sm:$0xff]  }
 0x56e   : > { %5034 = vmatprep.subr.bf16.mxu1 %v7655_v6  ;;  %v5803_v6 = vld [vmem:[#allocation8 + $0x1e4] ss:$8 sps:$4 sm:$0xff]  }
 0x571   : > { %5035 = vmatpush3.bf16.msra.mxu1 %v7656_v44  ;;  %v5806_v44 = vld [vmem:[#allocation8 + $0x1d0] ss:$8 sps:$4 sm:$0xff]  }
 0x572   : > { %5036 = vmatprep.subr.bf16.mxu1 %v7657_v51  ;;  %v5807_v51 = vld [vmem:[#allocation8 + $0x1c4] ss:$8 sps:$4 sm:$0xff]  }
 0x575   : > { %5037 = vmatpush3.bf16.msra.mxu1 %v7658_v53  ;;  %v5808_v53 = vld [vmem:[#allocation8 + $0x1c0] ss:$8 sps:$4 sm:$0xff]  }
 0x576   : > { %5038 = vmatprep.subr.bf16.mxu1 %v7659_v57  ;;  %v5809_v57 = vld [vmem:[#allocation8 + $0x1b4] ss:$8 sps:$4 sm:$0xff]  }
 0x579   : > { %5039 = vmatpush3.bf16.msra.mxu1 %v7660_v59  ;;  %v4165_v59 = vmul.f32 0.5, %v7282_v36 }
 0x57a   : > { %5040 = vmatprep.subr.bf16.mxu1 %v7661_v63  ;;  %v4161_v63 = vld [vmem:[#allocation2 + $0x78] sm:$0xff] }
 0x57d   : > { %5041 = vmatpush3.bf16.msra.mxu1 %v7662_v62  ;;  %v4169_v62 = vadd.f32 %v4165_v59, %v4161_v63 }
 0x57e   : > { %5042 = vmatprep.subr.bf16.mxu1 %v7663_v38 }
 0x57f   : > { %v4173_v38 = vsel %vm4002_vm14, %v4161_v63, %v4169_v62 }
 0x581   : > { %5043 = vmatpush3.bf16.msra.mxu1 %v7664_v41 }
 0x582   : > { %5044 = vmatprep.subr.bf16.mxu1 %v7665_v43 }
 0x585   : > { %5045 = vmatpush3.bf16.msra.mxu1 %v7666_v49 }
 0x5a8   : > { %v5002_v15 = vpop.f32.mrf.mxu1 }
 0x5aa   : > { %v5003_v48 = vpop.f32.mrf.mxu1 }
 0x5ab   : > { %v5004_v27 = vadd.f32 %v5003_v48, %v5002_v15  ;;  %v5789_v15 = vld [vmem:[#allocation8 + $0x154] ss:$8 sps:$4 sm:$0xff]  }
 0x5ac   : > { %v5005_v3 = vpop.f32.mrf.mxu1  ;;  %v5793_v48 = vld [vmem:[#allocation8 + $0x134] ss:$8 sps:$4 sm:$0xff]  }
 0x5ad   : > { %v3972_v45 = vadd.f32 %v5004_v27, %v7320_v32  ;;  %v5794_v27 = vld [vmem:[#allocation8 + $0x130] ss:$8 sps:$4 sm:$0xff]   ;;  %v5795_v3 = vld [vmem:[#allocation8 + $0x124] ss:$8 sps:$4 sm:$0xff]  }
 0x5ae   : > { %v5006_v26 = vpop.f32.mrf.mxu1 }
 0x5af   : > { %v3978_v4 = vadd.f32 %v3977_v47, %v3972_v45  ;;  %v5797_v47 = vld [vmem:[#allocation8 + $0x114] ss:$8 sps:$4 sm:$0xff]   ;;  %v5800_v26 = vld [vmem:[#allocation8 + $0x100] ss:$8 sps:$4 sm:$0xff]  }
 0x5b1   : > { %v7334_v34 = vsel %vm3805_vm4, %v3972_v45, %v3978_v4  ;;  %v5798_v45 = vld [vmem:[#allocation8 + $0x110] ss:$8 sps:$4 sm:$0xff]   ;;  %v5801_v4 = vld [vmem:[#allocation8 + $0x1f4] ss:$8 sps:$4 sm:$0xff]  }
 0x5b2   : > { %vm3980_vm5 = vcmp.gt.f32.partialorder %v7334_v34, 1.0 }
 0x5b3   : > { %v4919_v50 = vsel %vm3980_vm5, 1.0, %v6027_v19 }
 0x5b4   : > { %v7342_v42 = vadd.f32 %v4919_v50, %v4900_v28  ;;  %v5804_v28 = vld [vmem:[#allocation8 + $0x1e0] ss:$8 sps:$4 sm:$0xff]   ;;  %v5805_v50 = vld [vmem:[#allocation8 + $0x1d4] ss:$8 sps:$4 sm:$0xff]  }
 0x5e8   : > { %v4091_v35 = vpop.f32.mrf.mxu1 }
 0x5e9   : > { %v4092_v8 = vadd.f32 %v4091_v35, %v4051_v40 }
 0x5ea   : > { %v4093_v60 = vpop.f32.mrf.mxu1 }
 0x5eb   : > { %v4100_v29 = vadd.f32 %v4098_v9, %v4092_v8  ;;  %v4094_v54 = vadd.f32 %v4093_v60, %v4053_v7 }
 0x5ec   : > { %v4095_v61 = vpop.f32.mrf.mxu1 }
 0x5ed   : > { %v7364_v2 = vsel %vm3929_vm9, %v4092_v8, %v4100_v29  ;;  %v4101_v12 = vadd.f32 %v4099_v17, %v4094_v54 }
 0x5ee   : > { %v4096_v16 = vpop.f32.mrf.mxu1  ;;  %vm4104_vm7 = vcmp.gt.f32.partialorder %v7364_v2, 1.0  ;;  %v4273_v60 = vmul.f32 0.5, %v7364_v2 }
 0x5ef   : > { %v7369_v0 = vsel %vm3930_vm10, %v4094_v54, %v4101_v12  ;;  %vm4936_vm9 = vmpackc.low %vm4104_vm7, %vm4104_vm7  ;;  %vm4177_vm10 = vcmp.gt.f32.partialorder %v4173_v38, 1.0 }
 0x5f0   : > { %vm4105_vm8 = vcmp.gt.f32.partialorder %v7369_v0, 1.0  ;;  %vm4949_vm13 = vmpackc.low %vm4177_vm10, %vm4177_vm10 }
 0x5f1   : > { %vm4934_vm12 = vmpackc.low %vm4105_vm8, %vm4105_vm8 }
 0x5f2   : > { %4935 = vmatprep.mubr.msk.bf16.mxu0 %vm4934_vm12, %v7578_v18 }
 0x5f3   : > { %4937 = vmatmul.mubr.msk.bf16.vlgmr.msra.gmra.mxu0 %vm4936_vm9, %v7578_v18 }
 0x5f4   : > { %4233 = vmatpush1.bf16.msra.mxu0 %v5786_v33  ;;  %4948 = vmatprep.mubr.msk.bf16.mxu0 %vm4947_vm11, %v7578_v18 }
 0x5f5   : > { %4234 = vmatprep.subr.bf16.mxu0 %v5787_v24 }
 0x5f8   : > { %4235 = vmatpush1.bf16.msra.mxu0 %v5788_v46 }
 0x5f9   : > { %4236 = vmatprep.subr.bf16.mxu0 %v5789_v15 }
 0x5fc   : > { %4237 = vmatpush1.bf16.msra.mxu0 %v5790_v21 }
 0x5fd   : > { %4238 = vmatprep.subr.bf16.mxu0 %v5791_v22 }
 0x600   : > { %4239 = vmatpush1.bf16.msra.mxu0 %v5792_v20 }
 0x601   : > { %4240 = vmatprep.subr.bf16.mxu0 %v5793_v48 }
 0x604   : > { %4241 = vmatpush1.bf16.msra.mxu0 %v5794_v27 }
 0x605   : > { %4242 = vmatprep.subr.bf16.mxu0 %v5795_v3 }
 0x608   : > { %4243 = vmatpush1.bf16.msra.mxu0 %v5796_v23 }
 0x609   : > { %4244 = vmatprep.subr.bf16.mxu0 %v5797_v47 }
 0x60c   : > { %4245 = vmatpush1.bf16.msra.mxu0 %v5798_v45 }
 0x60d   : > { %4246 = vmatprep.subr.bf16.mxu0 %v5799_v14 }
 0x610   : > { %4247 = vmatpush1.bf16.msra.mxu0 %v5800_v26 }
 0x611   : > { %4248 = vmatprep.subr.bf16.mxu0 %v5801_v4 }
 0x614   : > { %4249 = vmatpush2.bf16.msra.mxu0 %v5802_v25 }
 0x615   : > { %4250 = vmatprep.subr.bf16.mxu0 %v5803_v6 }
 0x618   : > { %4251 = vmatpush2.bf16.msra.mxu0 %v5804_v28 }
 0x619   : > { %4252 = vmatprep.subr.bf16.mxu0 %v5805_v50 }
 0x61c   : > { %4253 = vmatpush2.bf16.msra.mxu0 %v5806_v44 }
 0x61d   : > { %4254 = vmatprep.subr.bf16.mxu0 %v5807_v51 }
 0x620   : > { %4255 = vmatpush2.bf16.msra.mxu0 %v5808_v53 }
 0x621   : > { %4256 = vmatprep.subr.bf16.mxu0 %v5809_v57 }
 0x624   : > { %4257 = vmatpush2.bf16.msra.mxu0 %v6917_v13 }
 0x625   : > { %4258 = vmatprep.subr.bf16.mxu0 %v7633_v30 }
 0x628   : > { %4259 = vmatpush2.bf16.msra.mxu0 %v7634_v31  ;;  %v4225_v13 = vpop.f32.mrf.mxu1 }
 0x629   : > { %4260 = vmatprep.subr.bf16.mxu0 %v7635_v55  ;;  %v4226_v35 = vadd.f32 %v4225_v13, %v7667_v58 }
 0x62a   : > { %v4227_v30 = vpop.f32.mrf.mxu1 }
 0x62b   : > { %v4228_v8 = vadd.f32 %v4227_v30, %v7089_v56 }
 0x62c   : > { %4261 = vmatpush2.bf16.msra.mxu0 %v7636_v37  ;;  %v4229_v41 = vpop.f32.mrf.mxu1  ;;  %v4152_v37 = vmul.f32 0.5, %v7334_v34  ;;  %v4274_v34 = vmul.f32 0.5, %v7369_v0 }
 0x62d   : > { %4262 = vmatprep.subr.bf16.mxu0 %v7637_v39 }
 0x62e   : > { %v4230_v43 = vpop.f32.mrf.mxu1 }
 0x630   : > { %4263 = vmatpush2.bf16.msra.mxu0 %v7603_v11 }
 0x633   : > { %4950 = vmatmul.mubr.msk.bf16.vlgmr.msra.gmra.mxu0 %vm4949_vm13, %v7578_v18 }
 0x6b3   : > { %v5024_v31 = vpop.f32.mrf.mxu0 }
 0x6b5   : > { %v5025_v49 = vpop.f32.mrf.mxu0 }
 0x6b6   : > { %v5026_v55 = vadd.f32 %v5025_v49, %v5024_v31 }
 0x6b7   : > { %v5027_v52 = vpop.f32.mrf.mxu0 }
 0x6b8   : > { %v4147_v36 = vadd.f32 %v5026_v55, %v7320_v32 }
 0x6b9   : > { %v5028_v10 = vpop.f32.mrf.mxu0 }
 0x6ba   : > { %v4153_v39 = vadd.f32 %v4152_v37, %v4147_v36 }
 0x6bc   : > { %v4154_v11 = vsel %vm3980_vm5, %v4147_v36, %v4153_v39 }
 0x6bd   : > { %vm4155_vm14 = vcmp.gt.f32.partialorder %v4154_v11, 1.0  ;;  %v4327_v46 = vmul.f32 0.5, %v4154_v11 }
 0x6be   : > { %v4938_v40 = vsel %vm4155_vm14, 1.0, %v6027_v19 }
 0x6bf   : > { %v4158_v5 = vadd.f32 %v4938_v40, %v7342_v42 }
 0x6f3   : > { %v4266_v7 = vpop.f32.mrf.mxu0 }
 0x6f4   : > { %v4267_v9 = vadd.f32 %v4266_v7, %v4226_v35 }
 0x6f5   : > { %v4268_v1 = vpop.f32.mrf.mxu0 }
 0x6f6   : > { %v4275_v29 = vadd.f32 %v4273_v60, %v4267_v9  ;;  %v4269_v54 = vadd.f32 %v4268_v1, %v4228_v8 }
 0x6f7   : > { %v4270_v17 = vpop.f32.mrf.mxu0 }
 0x6f8   : > { %v4277_v61 = vsel %vm4104_vm7, %v4267_v9, %v4275_v29  ;;  %v4276_v12 = vadd.f32 %v4274_v34, %v4269_v54 }
 0x6f9   : > { %v4271_v16 = vpop.f32.mrf.mxu0  ;;  %vm4279_vm15 = vcmp.gt.f32.partialorder %v4277_v61, 1.0 }
 0x6fa   : > { %v4278_v42 = vsel %vm4105_vm8, %v4269_v54, %v4276_v12  ;;  %vm4955_vm2 = vmpackc.low %vm4279_vm15, %vm4279_vm15 }
 0x6fb   : > { %vm4280_vm0 = vcmp.gt.f32.partialorder %v4278_v42, 1.0 }
 0x6fc   : > { %vm4953_vm1 = vmpackc.low %vm4280_vm0, %vm4280_vm0 }
 0x6fd   : > { %4954 = vmatprep.mubr.msk.bf16.mxu1 %vm4953_vm1, %v7578_v18 }
 0x6fe   : > { %4956 = vmatmul.mubr.msk.bf16.vlgmr.msra.gmra.mxu1 %vm4955_vm2, %v7578_v18 }
 0x7be   : > { %v5046_v56 = vpop.f32.mrf.mxu1 }
 0x7c0   : > { %v5047_v58 = vpop.f32.mrf.mxu1 }
 0x7c1   : > { %v5048_v33 = vadd.f32 %v5047_v58, %v5046_v56 }
 0x7c2   : > { %v5049_v24 = vpop.f32.mrf.mxu1 }
 0x7c3   : > { %v4322_v2 = vadd.f32 %v5048_v33, %v7320_v32 }
 0x7c4   : > { %v5050_v15 = vpop.f32.mrf.mxu1 }
 0x7c5   : > { %v4328_v21 = vadd.f32 %v4327_v46, %v4322_v2 }
 0x7c7   : > { %v4329_v22 = vsel %vm4155_vm14, %v4322_v2, %v4328_v21 }
 0x7c8   : > { %vm4330_vm3 = vcmp.gt.f32.partialorder %v4329_v22, 1.0 }
 0x7c9   : > { %v4957_v0 = vsel %vm4330_vm3, 1.0, %v6027_v19 }
 0x7ca   : > { %v4333_v20 = vadd.f32 %v4957_v0, %v4158_v5 }
 0x7cc   : > { %v4334_v48 = vmul.f32 0.25, %v4333_v20 }
 0x7ce   : > { %4335 = vst [vmem:[%s7435_s7] sm:$0xff] %v4334_v48 }
 0x7cf PF: > { %p20_p11 = scmp.ge.s32.totalorder %s6090_s29, 4   ;;  %s7668_s24 = smov %s6004_s25 }
 0x7d0   : > { %s7669_s25 = smov %s6008_s26  ;;  %s7670_s26 = smov %s6100_s9 }
 0x7d1   : > { %s7671_s27 = smov %s6090_s29  ;;  %22 = sbr.rel (!%p20_p11) target bundleno = 6 (0x6), region = 147 }
 0x7d6   :  { %4347 = vsyncpa [#allocation5], 1 }
 0x7d7   :  { %4349 = vsyncpa [#allocation5 + $0x1], 1 }
 0x7d8   :  { %4350 = vsyncpa [#allocation7], 1 }
 0x7d9   :  { %4351 = vsyncpa [#allocation10], 1 }
 0x7da   :  { %4352 = vsyncpa [#allocation13], 1 }

</bundles_post_ra>
